<compile_context>
chip_gen: v7x
topology: tpu7x:2x2x1
jax: 0.10.0
libtpu: 0.0.40
codegen_flags: <defaults>
</compile_context>

<pallas_src>
import math
import functools

import jax
import jax.numpy as jnp
from jax.experimental import pallas as pl
from jax.experimental.pallas import tpu as pltpu

# ---- config (mirrors the module's globals) ----------------------------------
CONFIG = dict(
    batch_size=2,
    hidden_size=32,
    enc_num_layers=2,
    enc_bidirectional=True,
)
INPUT_SIZE = 16
SEQ_LEN = 8

BP = 8      # batch rows padded to one 8-row sublane group
G = 128     # lane-aligned gate-group width: [fwd H | bwd H | zero pad]


# ---- fused Pallas kernel: whole 2-layer bidirectional GRU encoder ------------
def _make_encoder_kernel(T, H, num_layers):
    """Kernel for fixed static sizes.  Assumes bidirectional (2 directions),
    B <= BP, 2*H <= G, layer input widths <= G.

    refs:
      x_ref  : (T*BP, G)        time-major input, features in lanes [0, I)
      h0_ref : (L, BP, G)       initial hidden, lanes [h_fwd | h_bwd | 0]
      w_ref  : (2L, G, 3G)      [W_ih_fused_l, W_hh_fused_l] per layer
      b_ref  : (L, BP, 3G + G)  row0[:3G]=b_ih(+b_hh_{r,z}) fold; [:,3G:]=b_hh_n
      y_ref  : (T*BP, G)        last-layer output, lanes [fwd H | bwd H | 0]
      hn_ref : (L, BP, G)       final hidden per layer, lanes [fwd | bwd | 0]
    """
    three_g = 3 * G

    def kernel(x_ref, h0_ref, w_ref, b_ref, y_ref, hn_ref):
        f32 = jnp.float32
        # lane masks (built once): "forward" lanes within each 128-lane group
        lane1 = jax.lax.broadcasted_iota(jnp.int32, (BP, G), 1)
        sel1 = lane1 < H
        lane3 = jax.lax.broadcasted_iota(jnp.int32, (BP, three_g), 1)
        sel3 = jnp.bitwise_and(lane3, G - 1) < H

        layer_in = x_ref[...]                              # (T*BP, G)

        for l in range(num_layers):
            wih = w_ref[2 * l]                             # (G, 3G)
            whh = w_ref[2 * l + 1]                         # (G, 3G)
            bl = b_ref[l]                                  # (BP, 3G + G)
            bfold = bl[0:1, 0:three_g]                     # (1, 3G)
            bhhn = bl[:, three_g:three_g + G]              # (BP, G), replicated

            # Hoisted fused input projection: both directions, all timesteps,
            # b_ih and b_hh_{r,z} folded in.  One MXU dot per layer.
            gi_all = jnp.dot(layer_in, wih,
                             preferred_element_type=f32) + bfold   # (T*BP, 3G)

            # Per-step gi with the backward half time-reversed.  Independent of
            # the recurrent state -> off the serial critical path.
            gi_steps = []
            for s in range(T):
                a = gi_all[s * BP:(s + 1) * BP]            # fwd time s
                b = gi_all[(T - 1 - s) * BP:(T - s) * BP]  # bwd time T-1-s
                gi_steps.append(jnp.where(sel3, a, b))     # (BP, 3G)

            # Fused fwd+bwd recurrence: ONE dependent MXU dot per step.
            h = h0_ref[l]                                  # (BP, G)
            hs = []
            for s in range(T):                             # fully unrolled
                gh = jnp.dot(h, whh, preferred_element_type=f32)   # (BP, 3G)
                gi = gi_steps[s]
                # PyTorch GRU gates; all slices 128-lane aligned (free).
                r = jax.nn.sigmoid(gi[:, 0:G] + gh[:, 0:G])
                z = jax.nn.sigmoid(gi[:, G:2 * G] + gh[:, G:2 * G])
                n = jnp.tanh(gi[:, 2 * G:3 * G]
                             + r * (gh[:, 2 * G:3 * G] + bhhn))
                h = (1.0 - z) * n + z * h
                hs.append(h)

            hn_ref[l] = h      # last step holds final hidden of BOTH directions

            # Time-ordered layer output: lanes [0,H)=fwd@t (step t),
            # [H,2H)=bwd@t (step T-1-t), [2H,G)=0.  One full-vreg select per
            # timestep, no lane shuffles, no per-step stores.
            y = jnp.concatenate(
                [jnp.where(sel1, hs[t], hs[T - 1 - t]) for t in range(T)],
                axis=0)                                    # (T*BP, G)

            if l == num_layers - 1:
                y_ref[...] = y                             # single slab store
            else:
                layer_in = y                               # value; no scratch

    return kernel


def gru_encoder_pallas(x_pad, h0_pack, w_pack, b_pack, *, T, H, num_layers):
    kernel = _make_encoder_kernel(T, H, num_layers)
    vmem = pltpu.MemorySpace.VMEM
    y_pad, hn_pack = pl.pallas_call(
        kernel,
        out_shape=(
            jax.ShapeDtypeStruct((T * BP, G), jnp.float32),
            jax.ShapeDtypeStruct((num_layers, BP, G), jnp.float32),
        ),
        in_specs=[pl.BlockSpec(memory_space=vmem)] * 4,
        out_specs=(pl.BlockSpec(memory_space=vmem),
                   pl.BlockSpec(memory_space=vmem)),
    )(x_pad, h0_pack, w_pack, b_pack)
    return y_pad, hn_pack


# ---- parameter init (PyTorch GRU default layout & init) ----------------------
def init_gru_params(key, input_size, hidden_size, num_layers, bidirectional):
    num_dir = 2 if bidirectional else 1
    k = 1.0 / math.sqrt(hidden_size)
    params = {}
    for l in range(num_layers):
        layer_in = input_size if l == 0 else hidden_size * num_dir
        for d in range(num_dir):
            key, k1, k2, k3, k4 = jax.random.split(key, 5)
            w_ih = jax.random.uniform(k1, (3 * hidden_size, layer_in),
                                      jnp.float32, -k, k)
            w_hh = jax.random.uniform(k2, (3 * hidden_size, hidden_size),
                                      jnp.float32, -k, k)
            b_ih = jax.random.uniform(k3, (3 * hidden_size,), jnp.float32, -k, k)
            b_hh = jax.random.uniform(k4, (3 * hidden_size,), jnp.float32, -k, k)
            params[(l, d)] = (w_ih, w_hh, b_ih, b_hh)      # PyTorch layout
    return params


def pack_encoder_params(params, input_size, H, num_layers, num_dir):
    """Pack all per-(layer, direction) GRU weights into 2 fused VMEM buffers.

    w_pack: (2L, G, 3G)  — per layer: W_ih_fused then W_hh_fused; gate group g
            occupies lanes [g*G, g*G+2H): fwd cols then bwd cols, rest zero.
    b_pack: (L, BP, 3G+G) — row 0 lanes [0,3G): b_ih (+ b_hh for r,z gates);
            lanes [3G, 3G+2H) on ALL rows: b_hh_n replicated (no in-kernel
            broadcast on the serial path).
    """
    assert num_dir == 2 and 2 * H <= G
    w_blocks, b_blocks = [], []
    for l in range(num_layers):
        in_l = input_size if l == 0 else num_dir * H
        assert in_l <= G
        wih_f = jnp.zeros((G, 3 * G), jnp.float32)
        whh_f = jnp.zeros((G, 3 * G), jnp.float32)
        bias = jnp.zeros((BP, 3 * G + G), jnp.float32)
        for d in range(num_dir):
            w_ih, w_hh, b_ih, b_hh = params[(l, d)]
            for g in range(3):                    # PyTorch gate order: r, z, n
                c0 = g * G + d * H
                wih_f = wih_f.at[0:in_l, c0:c0 + H].set(
                    jnp.transpose(w_ih[g * H:(g + 1) * H, :]))
                whh_f = whh_f.at[d * H:(d + 1) * H, c0:c0 + H].set(
                    jnp.transpose(w_hh[g * H:(g + 1) * H, :]))
                bg = b_ih[g * H:(g + 1) * H]
                if g < 2:                         # fold b_hh_r / b_hh_z
                    bg = bg + b_hh[g * H:(g + 1) * H]
                bias = bias.at[0, c0:c0 + H].set(bg)
            bias = bias.at[:, 3 * G + d * H:3 * G + (d + 1) * H].set(
                jnp.broadcast_to(b_hh[2 * H:3 * H], (BP, H)))
        w_blocks.extend([wih_f, whh_f])
        b_blocks.append(bias)
    return jnp.stack(w_blocks, axis=0), jnp.stack(b_blocks, axis=0)


# ---- EncoderRNN.forward ------------------------------------------------------
def encoder_rnn_forward(x, input_len, params, hidden_size, num_layers,
                        bidirectional, hidden=None):
    """x: (B, T, input_size).  input_len accepted but unused (the reference
    forward never applies pack_padded_sequence)."""
    del input_len
    B, T, I = x.shape
    H = hidden_size
    num_dir = 2 if bidirectional else 1
    assert num_dir == 2 and B <= BP and 2 * H <= G and I <= G

    # time-major, batch padded to the 8-row sublane group, features to 128 lanes
    xt = jnp.transpose(x, (1, 0, 2))                          # (T, B, I)
    x_pad = jnp.pad(xt, ((0, 0), (0, BP - B), (0, G - I))).reshape(T * BP, G)

    # packed initial hidden: (L, BP, G), lanes [h_fwd | h_bwd | 0]
    h0_pack = jnp.zeros((num_layers, BP, G), jnp.float32)
    if hidden is not None:
        hid = hidden.reshape(num_layers, num_dir, B, H)
        h0_pack = h0_pack.at[:, :B, 0:H].set(hid[:, 0])
        h0_pack = h0_pack.at[:, :B, H:2 * H].set(hid[:, 1])

    w_pack, b_pack = pack_encoder_params(params, I, H, num_layers, num_dir)

    y_pad, hn_pack = gru_encoder_pallas(x_pad, h0_pack, w_pack, b_pack,
                                        T=T, H=H, num_layers=num_layers)

    # (T*BP, G) -> (B, T, num_dir*H)
    y = y_pad.reshape(T, BP, G)[:, :B, 0:num_dir * H]
    output = jnp.transpose(y, (1, 0, 2))

    # (L, BP, G) -> (L*num_dir, B, H), PyTorch ordering [l0_fwd, l0_bwd, ...]
    hn = hn_pack[:, :B, 0:num_dir * H].reshape(num_layers, B, num_dir, H)
    hidden_out = jnp.transpose(hn, (0, 2, 1, 3)).reshape(
        num_layers * num_dir, B, H)
    return output, hidden_out


# ---- pure-JAX reference (for sanity check) -----------------------------------
def _ref_gru_layer(x_tbi, w_ih, w_hh, b_ih, b_hh, h0, H):
    hp = jax.lax.Precision.HIGHEST
    wih, whh = jnp.transpose(w_ih), jnp.transpose(w_hh)

    def step(h, x_t):
        gi = jnp.dot(x_t, wih, precision=hp) + b_ih
        gh = jnp.dot(h, whh, precision=hp) + b_hh
        r = jax.nn.sigmoid(gi[:, :H] + gh[:, :H])
        z = jax.nn.sigmoid(gi[:, H:2 * H] + gh[:, H:2 * H])
        n = jnp.tanh(gi[:, 2 * H:] + r * gh[:, 2 * H:])
        h_new = (1.0 - z) * n + z * h
        return h_new, h_new

    hT, ys = jax.lax.scan(step, h0, x_tbi)
    return ys, hT


def _ref_forward(x, params, hidden_size, num_layers, bidirectional):
    B, T, _ = x.shape
    H = hidden_size
    num_dir = 2 if bidirectional else 1
    hidden = jnp.zeros((num_layers * num_dir, B, H), jnp.float32)
    layer_in = x
    h_finals = []
    for l in range(num_layers):
        dir_outs = []
        for d in range(num_dir):
            h0 = hidden[l * num_dir + d]
            xd = layer_in if d == 0 else layer_in[:, ::-1, :]
            xt = jnp.transpose(xd, (1, 0, 2))
            y, hT = _ref_gru_layer(xt, *params[(l, d)], h0, H)
            y = jnp.transpose(y, (1, 0, 2))
            if d == 1:
                y = y[:, ::-1, :]
            dir_outs.append(y)
            h_finals.append(hT)
        layer_in = (jnp.concatenate(dir_outs, axis=-1)
                    if num_dir == 2 else dir_outs[0])
    return layer_in, jnp.stack(h_finals, axis=0)


# ---- main --------------------------------------------------------------------
if __name__ == "__main__":
    B = CONFIG["batch_size"]
    H = CONFIG["hidden_size"]
    L = CONFIG["enc_num_layers"]
    BIDIR = CONFIG["enc_bidirectional"]

    key = jax.random.PRNGKey(0)
    key, pkey, xkey = jax.random.split(key, 3)

    params = init_gru_params(pkey, INPUT_SIZE, H, L, BIDIR)
    x = jax.random.normal(xkey, (B, SEQ_LEN, INPUT_SIZE), jnp.float32)
    # forward() accepts input_len but never uses it (no pack_padded_sequence)
    input_len = jnp.full((B,), SEQ_LEN, dtype=jnp.int32)

    fwd = functools.partial(encoder_rnn_forward,
                            hidden_size=H, num_layers=L, bidirectional=BIDIR)
    output, hidden = fwd(x, input_len, params)
    jax.block_until_ready((output, hidden))

    # sanity check against pure-JAX reference
    ref_out, ref_hid = _ref_forward(x, params, H, L, BIDIR)
    num_dir = 2 if BIDIR else 1
    assert output.shape == (B, SEQ_LEN, num_dir * H)
    assert hidden.shape == (L * num_dir, B, H)
    assert jnp.allclose(output, ref_out, atol=1e-2, rtol=1e-2)
    assert jnp.allclose(hidden, ref_hid, atol=1e-2, rtol=1e-2)

    print("KERNEL_OK")
</pallas_src>

<mosaic_0001>
module attributes {stable_mosaic.version = 11 : i64} {
  func.func @kernel(%arg0: memref<64x128xf32, #tpu.memory_space<vmem>>, %arg1: memref<2x8x128xf32, #tpu.memory_space<vmem>>, %arg2: memref<4x128x384xf32, #tpu.memory_space<vmem>>, %arg3: memref<2x8x512xf32, #tpu.memory_space<vmem>>, %arg4: memref<64x128xf32, #tpu.memory_space<vmem>>, %arg5: memref<2x8x128xf32, #tpu.memory_space<vmem>>) attributes {dimension_semantics = [], scalar_prefetch = 0 : i64, scratch_operands = 0 : i64, tpu.core_type = #tpu.core_type<tc>} {
    %0 = tpu.iota {dimensions = array<i32: 1>} : vector<8x128xi32>
    %c32_i32 = arith.constant 32 : i32
    %1 = vector.broadcast %c32_i32 : i32 to vector<8x128xi32>
    %2 = arith.cmpi slt, %0, %1 : vector<8x128xi32>
    %3 = tpu.iota {dimensions = array<i32: 1>} : vector<8x384xi32>
    %c127_i32 = arith.constant 127 : i32
    %4 = vector.broadcast %c127_i32 : i32 to vector<8x384xi32>
    %5 = arith.andi %3, %4 : vector<8x384xi32>
    %c32_i32_0 = arith.constant 32 : i32
    %6 = vector.broadcast %c32_i32_0 : i32 to vector<8x384xi32>
    %7 = arith.cmpi slt, %5, %6 : vector<8x384xi32>
    %c0 = arith.constant 0 : index
    %c0_1 = arith.constant 0 : index
    %8 = vector.load %arg0[%c0, %c0_1] : memref<64x128xf32, #tpu.memory_space<vmem>>, vector<64x128xf32>
    %c0_2 = arith.constant 0 : index
    %c0_3 = arith.constant 0 : index
    %c0_4 = arith.constant 0 : index
    %9 = vector.load %arg2[%c0_2, %c0_3, %c0_4] : memref<4x128x384xf32, #tpu.memory_space<vmem>>, vector<1x128x384xf32>
    %10 = vector.shape_cast %9 : vector<1x128x384xf32> to vector<128x384xf32>
    %c1 = arith.constant 1 : index
    %c0_5 = arith.constant 0 : index
    %c0_6 = arith.constant 0 : index
    %11 = vector.load %arg2[%c1, %c0_5, %c0_6] : memref<4x128x384xf32, #tpu.memory_space<vmem>>, vector<1x128x384xf32>
    %12 = vector.shape_cast %11 : vector<1x128x384xf32> to vector<128x384xf32>
    %c0_7 = arith.constant 0 : index
    %c0_8 = arith.constant 0 : index
    %c0_9 = arith.constant 0 : index
    %13 = vector.load %arg3[%c0_7, %c0_8, %c0_9] : memref<2x8x512xf32, #tpu.memory_space<vmem>>, vector<1x8x512xf32>
    %14 = vector.shape_cast %13 : vector<1x8x512xf32> to vector<8x512xf32>
    %15 = vector.extract_strided_slice %14 {offsets = [0, 0], sizes = [1, 384], strides = [1, 1]} : vector<8x512xf32> to vector<1x384xf32>
    %16 = vector.extract_strided_slice %14 {offsets = [0, 384], sizes = [8, 128], strides = [1, 1]} : vector<8x512xf32> to vector<8x128xf32>
    %cst = arith.constant dense<0.000000e+00> : vector<64x384xf32>
    %17 = tpu.matmul %8, %10, %cst {dimension_numbers = #tpu.dot_dimension_numbers<[1], [0], [0], [1], [0, 0, 1, 1], [], []>} : vector<64x128xf32>, vector<128x384xf32>, vector<64x384xf32> -> vector<64x384xf32>
    %18 = vector.broadcast %15 : vector<1x384xf32> to vector<64x384xf32>
    %19 = arith.addf %17, %18 : vector<64x384xf32>
    %20 = vector.extract_strided_slice %19 {offsets = [0, 0], sizes = [8, 384], strides = [1, 1]} : vector<64x384xf32> to vector<8x384xf32>
    %21 = vector.extract_strided_slice %19 {offsets = [56, 0], sizes = [8, 384], strides = [1, 1]} : vector<64x384xf32> to vector<8x384xf32>
    %22 = arith.select %7, %20, %21 : vector<8x384xi1>, vector<8x384xf32>
    %23 = vector.extract_strided_slice %19 {offsets = [8, 0], sizes = [8, 384], strides = [1, 1]} : vector<64x384xf32> to vector<8x384xf32>
    %24 = vector.extract_strided_slice %19 {offsets = [48, 0], sizes = [8, 384], strides = [1, 1]} : vector<64x384xf32> to vector<8x384xf32>
    %25 = arith.select %7, %23, %24 : vector<8x384xi1>, vector<8x384xf32>
    %26 = vector.extract_strided_slice %19 {offsets = [16, 0], sizes = [8, 384], strides = [1, 1]} : vector<64x384xf32> to vector<8x384xf32>
    %27 = vector.extract_strided_slice %19 {offsets = [40, 0], sizes = [8, 384], strides = [1, 1]} : vector<64x384xf32> to vector<8x384xf32>
    %28 = arith.select %7, %26, %27 : vector<8x384xi1>, vector<8x384xf32>
    %29 = vector.extract_strided_slice %19 {offsets = [24, 0], sizes = [8, 384], strides = [1, 1]} : vector<64x384xf32> to vector<8x384xf32>
    %30 = vector.extract_strided_slice %19 {offsets = [32, 0], sizes = [8, 384], strides = [1, 1]} : vector<64x384xf32> to vector<8x384xf32>
    %31 = arith.select %7, %29, %30 : vector<8x384xi1>, vector<8x384xf32>
    %32 = vector.extract_strided_slice %19 {offsets = [32, 0], sizes = [8, 384], strides = [1, 1]} : vector<64x384xf32> to vector<8x384xf32>
    %33 = vector.extract_strided_slice %19 {offsets = [24, 0], sizes = [8, 384], strides = [1, 1]} : vector<64x384xf32> to vector<8x384xf32>
    %34 = arith.select %7, %32, %33 : vector<8x384xi1>, vector<8x384xf32>
    %35 = vector.extract_strided_slice %19 {offsets = [40, 0], sizes = [8, 384], strides = [1, 1]} : vector<64x384xf32> to vector<8x384xf32>
    %36 = vector.extract_strided_slice %19 {offsets = [16, 0], sizes = [8, 384], strides = [1, 1]} : vector<64x384xf32> to vector<8x384xf32>
    %37 = arith.select %7, %35, %36 : vector<8x384xi1>, vector<8x384xf32>
    %38 = vector.extract_strided_slice %19 {offsets = [48, 0], sizes = [8, 384], strides = [1, 1]} : vector<64x384xf32> to vector<8x384xf32>
    %39 = vector.extract_strided_slice %19 {offsets = [8, 0], sizes = [8, 384], strides = [1, 1]} : vector<64x384xf32> to vector<8x384xf32>
    %40 = arith.select %7, %38, %39 : vector<8x384xi1>, vector<8x384xf32>
    %41 = vector.extract_strided_slice %19 {offsets = [56, 0], sizes = [8, 384], strides = [1, 1]} : vector<64x384xf32> to vector<8x384xf32>
    %42 = vector.extract_strided_slice %19 {offsets = [0, 0], sizes = [8, 384], strides = [1, 1]} : vector<64x384xf32> to vector<8x384xf32>
    %43 = arith.select %7, %41, %42 : vector<8x384xi1>, vector<8x384xf32>
    %c0_10 = arith.constant 0 : index
    %c0_11 = arith.constant 0 : index
    %c0_12 = arith.constant 0 : index
    %44 = vector.load %arg1[%c0_10, %c0_11, %c0_12] : memref<2x8x128xf32, #tpu.memory_space<vmem>>, vector<1x8x128xf32>
    %45 = vector.shape_cast %44 : vector<1x8x128xf32> to vector<8x128xf32>
    %cst_13 = arith.constant dense<0.000000e+00> : vector<8x384xf32>
    %46 = tpu.matmul %45, %12, %cst_13 {dimension_numbers = #tpu.dot_dimension_numbers<[1], [0], [0], [1], [0, 0, 1, 1], [], []>} : vector<8x128xf32>, vector<128x384xf32>, vector<8x384xf32> -> vector<8x384xf32>
    %47 = vector.extract_strided_slice %22 {offsets = [0, 0], sizes = [8, 128], strides = [1, 1]} : vector<8x384xf32> to vector<8x128xf32>
    %48 = vector.extract_strided_slice %46 {offsets = [0, 0], sizes = [8, 128], strides = [1, 1]} : vector<8x384xf32> to vector<8x128xf32>
    %49 = arith.addf %47, %48 : vector<8x128xf32>
    %50 = arith.negf %49 : vector<8x128xf32>
    %51 = math.exp %50 : vector<8x128xf32>
    %cst_14 = arith.constant 1.000000e+00 : f32
    %52 = vector.broadcast %cst_14 : f32 to vector<8x128xf32>
    %53 = arith.addf %52, %51 : vector<8x128xf32>
    %54 = arith.divf %52, %53 : vector<8x128xf32>
    %55 = vector.extract_strided_slice %22 {offsets = [0, 128], sizes = [8, 128], strides = [1, 1]} : vector<8x384xf32> to vector<8x128xf32>
    %56 = vector.extract_strided_slice %46 {offsets = [0, 128], sizes = [8, 128], strides = [1, 1]} : vector<8x384xf32> to vector<8x128xf32>
    %57 = arith.addf %55, %56 : vector<8x128xf32>
    %58 = arith.negf %57 : vector<8x128xf32>
    %59 = math.exp %58 : vector<8x128xf32>
    %cst_15 = arith.constant 1.000000e+00 : f32
    %60 = vector.broadcast %cst_15 : f32 to vector<8x128xf32>
    %61 = arith.addf %60, %59 : vector<8x128xf32>
    %62 = arith.divf %60, %61 : vector<8x128xf32>
    %63 = vector.extract_strided_slice %22 {offsets = [0, 256], sizes = [8, 128], strides = [1, 1]} : vector<8x384xf32> to vector<8x128xf32>
    %64 = vector.extract_strided_slice %46 {offsets = [0, 256], sizes = [8, 128], strides = [1, 1]} : vector<8x384xf32> to vector<8x128xf32>
    %65 = arith.addf %64, %16 : vector<8x128xf32>
    %66 = arith.mulf %54, %65 : vector<8x128xf32>
    %67 = arith.addf %63, %66 : vector<8x128xf32>
    %68 = math.tanh %67 : vector<8x128xf32>
    %cst_16 = arith.constant 1.000000e+00 : f32
    %69 = vector.broadcast %cst_16 : f32 to vector<8x128xf32>
    %70 = arith.subf %69, %62 : vector<8x128xf32>
    %71 = arith.mulf %70, %68 : vector<8x128xf32>
    %72 = arith.mulf %62, %45 : vector<8x128xf32>
    %73 = arith.addf %71, %72 : vector<8x128xf32>
    %cst_17 = arith.constant dense<0.000000e+00> : vector<8x384xf32>
    %74 = tpu.matmul %73, %12, %cst_17 {dimension_numbers = #tpu.dot_dimension_numbers<[1], [0], [0], [1], [0, 0, 1, 1], [], []>} : vector<8x128xf32>, vector<128x384xf32>, vector<8x384xf32> -> vector<8x384xf32>
    %75 = vector.extract_strided_slice %25 {offsets = [0, 0], sizes = [8, 128], strides = [1, 1]} : vector<8x384xf32> to vector<8x128xf32>
    %76 = vector.extract_strided_slice %74 {offsets = [0, 0], sizes = [8, 128], strides = [1, 1]} : vector<8x384xf32> to vector<8x128xf32>
    %77 = arith.addf %75, %76 : vector<8x128xf32>
    %78 = arith.negf %77 : vector<8x128xf32>
    %79 = math.exp %78 : vector<8x128xf32>
    %cst_18 = arith.constant 1.000000e+00 : f32
    %80 = vector.broadcast %cst_18 : f32 to vector<8x128xf32>
    %81 = arith.addf %80, %79 : vector<8x128xf32>
    %82 = arith.divf %80, %81 : vector<8x128xf32>
    %83 = vector.extract_strided_slice %25 {offsets = [0, 128], sizes = [8, 128], strides = [1, 1]} : vector<8x384xf32> to vector<8x128xf32>
    %84 = vector.extract_strided_slice %74 {offsets = [0, 128], sizes = [8, 128], strides = [1, 1]} : vector<8x384xf32> to vector<8x128xf32>
    %85 = arith.addf %83, %84 : vector<8x128xf32>
    %86 = arith.negf %85 : vector<8x128xf32>
    %87 = math.exp %86 : vector<8x128xf32>
    %cst_19 = arith.constant 1.000000e+00 : f32
    %88 = vector.broadcast %cst_19 : f32 to vector<8x128xf32>
    %89 = arith.addf %88, %87 : vector<8x128xf32>
    %90 = arith.divf %88, %89 : vector<8x128xf32>
    %91 = vector.extract_strided_slice %25 {offsets = [0, 256], sizes = [8, 128], strides = [1, 1]} : vector<8x384xf32> to vector<8x128xf32>
    %92 = vector.extract_strided_slice %74 {offsets = [0, 256], sizes = [8, 128], strides = [1, 1]} : vector<8x384xf32> to vector<8x128xf32>
    %93 = arith.addf %92, %16 : vector<8x128xf32>
    %94 = arith.mulf %82, %93 : vector<8x128xf32>
    %95 = arith.addf %91, %94 : vector<8x128xf32>
    %96 = math.tanh %95 : vector<8x128xf32>
    %cst_20 = arith.constant 1.000000e+00 : f32
    %97 = vector.broadcast %cst_20 : f32 to vector<8x128xf32>
    %98 = arith.subf %97, %90 : vector<8x128xf32>
    %99 = arith.mulf %98, %96 : vector<8x128xf32>
    %100 = arith.mulf %90, %73 : vector<8x128xf32>
    %101 = arith.addf %99, %100 : vector<8x128xf32>
    %cst_21 = arith.constant dense<0.000000e+00> : vector<8x384xf32>
    %102 = tpu.matmul %101, %12, %cst_21 {dimension_numbers = #tpu.dot_dimension_numbers<[1], [0], [0], [1], [0, 0, 1, 1], [], []>} : vector<8x128xf32>, vector<128x384xf32>, vector<8x384xf32> -> vector<8x384xf32>
    %103 = vector.extract_strided_slice %28 {offsets = [0, 0], sizes = [8, 128], strides = [1, 1]} : vector<8x384xf32> to vector<8x128xf32>
    %104 = vector.extract_strided_slice %102 {offsets = [0, 0], sizes = [8, 128], strides = [1, 1]} : vector<8x384xf32> to vector<8x128xf32>
    %105 = arith.addf %103, %104 : vector<8x128xf32>
    %106 = arith.negf %105 : vector<8x128xf32>
    %107 = math.exp %106 : vector<8x128xf32>
    %cst_22 = arith.constant 1.000000e+00 : f32
    %108 = vector.broadcast %cst_22 : f32 to vector<8x128xf32>
    %109 = arith.addf %108, %107 : vector<8x128xf32>
    %110 = arith.divf %108, %109 : vector<8x128xf32>
    %111 = vector.extract_strided_slice %28 {offsets = [0, 128], sizes = [8, 128], strides = [1, 1]} : vector<8x384xf32> to vector<8x128xf32>
    %112 = vector.extract_strided_slice %102 {offsets = [0, 128], sizes = [8, 128], strides = [1, 1]} : vector<8x384xf32> to vector<8x128xf32>
    %113 = arith.addf %111, %112 : vector<8x128xf32>
    %114 = arith.negf %113 : vector<8x128xf32>
    %115 = math.exp %114 : vector<8x128xf32>
    %cst_23 = arith.constant 1.000000e+00 : f32
    %116 = vector.broadcast %cst_23 : f32 to vector<8x128xf32>
    %117 = arith.addf %116, %115 : vector<8x128xf32>
    %118 = arith.divf %116, %117 : vector<8x128xf32>
    %119 = vector.extract_strided_slice %28 {offsets = [0, 256], sizes = [8, 128], strides = [1, 1]} : vector<8x384xf32> to vector<8x128xf32>
    %120 = vector.extract_strided_slice %102 {offsets = [0, 256], sizes = [8, 128], strides = [1, 1]} : vector<8x384xf32> to vector<8x128xf32>
    %121 = arith.addf %120, %16 : vector<8x128xf32>
    %122 = arith.mulf %110, %121 : vector<8x128xf32>
    %123 = arith.addf %119, %122 : vector<8x128xf32>
    %124 = math.tanh %123 : vector<8x128xf32>
    %cst_24 = arith.constant 1.000000e+00 : f32
    %125 = vector.broadcast %cst_24 : f32 to vector<8x128xf32>
    %126 = arith.subf %125, %118 : vector<8x128xf32>
    %127 = arith.mulf %126, %124 : vector<8x128xf32>
    %128 = arith.mulf %118, %101 : vector<8x128xf32>
    %129 = arith.addf %127, %128 : vector<8x128xf32>
    %cst_25 = arith.constant dense<0.000000e+00> : vector<8x384xf32>
    %130 = tpu.matmul %129, %12, %cst_25 {dimension_numbers = #tpu.dot_dimension_numbers<[1], [0], [0], [1], [0, 0, 1, 1], [], []>} : vector<8x128xf32>, vector<128x384xf32>, vector<8x384xf32> -> vector<8x384xf32>
    %131 = vector.extract_strided_slice %31 {offsets = [0, 0], sizes = [8, 128], strides = [1, 1]} : vector<8x384xf32> to vector<8x128xf32>
    %132 = vector.extract_strided_slice %130 {offsets = [0, 0], sizes = [8, 128], strides = [1, 1]} : vector<8x384xf32> to vector<8x128xf32>
    %133 = arith.addf %131, %132 : vector<8x128xf32>
    %134 = arith.negf %133 : vector<8x128xf32>
    %135 = math.exp %134 : vector<8x128xf32>
    %cst_26 = arith.constant 1.000000e+00 : f32
    %136 = vector.broadcast %cst_26 : f32 to vector<8x128xf32>
    %137 = arith.addf %136, %135 : vector<8x128xf32>
    %138 = arith.divf %136, %137 : vector<8x128xf32>
    %139 = vector.extract_strided_slice %31 {offsets = [0, 128], sizes = [8, 128], strides = [1, 1]} : vector<8x384xf32> to vector<8x128xf32>
    %140 = vector.extract_strided_slice %130 {offsets = [0, 128], sizes = [8, 128], strides = [1, 1]} : vector<8x384xf32> to vector<8x128xf32>
    %141 = arith.addf %139, %140 : vector<8x128xf32>
    %142 = arith.negf %141 : vector<8x128xf32>
    %143 = math.exp %142 : vector<8x128xf32>
    %cst_27 = arith.constant 1.000000e+00 : f32
    %144 = vector.broadcast %cst_27 : f32 to vector<8x128xf32>
    %145 = arith.addf %144, %143 : vector<8x128xf32>
    %146 = arith.divf %144, %145 : vector<8x128xf32>
    %147 = vector.extract_strided_slice %31 {offsets = [0, 256], sizes = [8, 128], strides = [1, 1]} : vector<8x384xf32> to vector<8x128xf32>
    %148 = vector.extract_strided_slice %130 {offsets = [0, 256], sizes = [8, 128], strides = [1, 1]} : vector<8x384xf32> to vector<8x128xf32>
    %149 = arith.addf %148, %16 : vector<8x128xf32>
    %150 = arith.mulf %138, %149 : vector<8x128xf32>
    %151 = arith.addf %147, %150 : vector<8x128xf32>
    %152 = math.tanh %151 : vector<8x128xf32>
    %cst_28 = arith.constant 1.000000e+00 : f32
    %153 = vector.broadcast %cst_28 : f32 to vector<8x128xf32>
    %154 = arith.subf %153, %146 : vector<8x128xf32>
    %155 = arith.mulf %154, %152 : vector<8x128xf32>
    %156 = arith.mulf %146, %129 : vector<8x128xf32>
    %157 = arith.addf %155, %156 : vector<8x128xf32>
    %cst_29 = arith.constant dense<0.000000e+00> : vector<8x384xf32>
    %158 = tpu.matmul %157, %12, %cst_29 {dimension_numbers = #tpu.dot_dimension_numbers<[1], [0], [0], [1], [0, 0, 1, 1], [], []>} : vector<8x128xf32>, vector<128x384xf32>, vector<8x384xf32> -> vector<8x384xf32>
    %159 = vector.extract_strided_slice %34 {offsets = [0, 0], sizes = [8, 128], strides = [1, 1]} : vector<8x384xf32> to vector<8x128xf32>
    %160 = vector.extract_strided_slice %158 {offsets = [0, 0], sizes = [8, 128], strides = [1, 1]} : vector<8x384xf32> to vector<8x128xf32>
    %161 = arith.addf %159, %160 : vector<8x128xf32>
    %162 = arith.negf %161 : vector<8x128xf32>
    %163 = math.exp %162 : vector<8x128xf32>
    %cst_30 = arith.constant 1.000000e+00 : f32
    %164 = vector.broadcast %cst_30 : f32 to vector<8x128xf32>
    %165 = arith.addf %164, %163 : vector<8x128xf32>
    %166 = arith.divf %164, %165 : vector<8x128xf32>
    %167 = vector.extract_strided_slice %34 {offsets = [0, 128], sizes = [8, 128], strides = [1, 1]} : vector<8x384xf32> to vector<8x128xf32>
    %168 = vector.extract_strided_slice %158 {offsets = [0, 128], sizes = [8, 128], strides = [1, 1]} : vector<8x384xf32> to vector<8x128xf32>
    %169 = arith.addf %167, %168 : vector<8x128xf32>
    %170 = arith.negf %169 : vector<8x128xf32>
    %171 = math.exp %170 : vector<8x128xf32>
    %cst_31 = arith.constant 1.000000e+00 : f32
    %172 = vector.broadcast %cst_31 : f32 to vector<8x128xf32>
    %173 = arith.addf %172, %171 : vector<8x128xf32>
    %174 = arith.divf %172, %173 : vector<8x128xf32>
    %175 = vector.extract_strided_slice %34 {offsets = [0, 256], sizes = [8, 128], strides = [1, 1]} : vector<8x384xf32> to vector<8x128xf32>
    %176 = vector.extract_strided_slice %158 {offsets = [0, 256], sizes = [8, 128], strides = [1, 1]} : vector<8x384xf32> to vector<8x128xf32>
    %177 = arith.addf %176, %16 : vector<8x128xf32>
    %178 = arith.mulf %166, %177 : vector<8x128xf32>
    %179 = arith.addf %175, %178 : vector<8x128xf32>
    %180 = math.tanh %179 : vector<8x128xf32>
    %cst_32 = arith.constant 1.000000e+00 : f32
    %181 = vector.broadcast %cst_32 : f32 to vector<8x128xf32>
    %182 = arith.subf %181, %174 : vector<8x128xf32>
    %183 = arith.mulf %182, %180 : vector<8x128xf32>
    %184 = arith.mulf %174, %157 : vector<8x128xf32>
    %185 = arith.addf %183, %184 : vector<8x128xf32>
    %cst_33 = arith.constant dense<0.000000e+00> : vector<8x384xf32>
    %186 = tpu.matmul %185, %12, %cst_33 {dimension_numbers = #tpu.dot_dimension_numbers<[1], [0], [0], [1], [0, 0, 1, 1], [], []>} : vector<8x128xf32>, vector<128x384xf32>, vector<8x384xf32> -> vector<8x384xf32>
    %187 = vector.extract_strided_slice %37 {offsets = [0, 0], sizes = [8, 128], strides = [1, 1]} : vector<8x384xf32> to vector<8x128xf32>
    %188 = vector.extract_strided_slice %186 {offsets = [0, 0], sizes = [8, 128], strides = [1, 1]} : vector<8x384xf32> to vector<8x128xf32>
    %189 = arith.addf %187, %188 : vector<8x128xf32>
    %190 = arith.negf %189 : vector<8x128xf32>
    %191 = math.exp %190 : vector<8x128xf32>
    %cst_34 = arith.constant 1.000000e+00 : f32
    %192 = vector.broadcast %cst_34 : f32 to vector<8x128xf32>
    %193 = arith.addf %192, %191 : vector<8x128xf32>
    %194 = arith.divf %192, %193 : vector<8x128xf32>
    %195 = vector.extract_strided_slice %37 {offsets = [0, 128], sizes = [8, 128], strides = [1, 1]} : vector<8x384xf32> to vector<8x128xf32>
    %196 = vector.extract_strided_slice %186 {offsets = [0, 128], sizes = [8, 128], strides = [1, 1]} : vector<8x384xf32> to vector<8x128xf32>
    %197 = arith.addf %195, %196 : vector<8x128xf32>
    %198 = arith.negf %197 : vector<8x128xf32>
    %199 = math.exp %198 : vector<8x128xf32>
    %cst_35 = arith.constant 1.000000e+00 : f32
    %200 = vector.broadcast %cst_35 : f32 to vector<8x128xf32>
    %201 = arith.addf %200, %199 : vector<8x128xf32>
    %202 = arith.divf %200, %201 : vector<8x128xf32>
    %203 = vector.extract_strided_slice %37 {offsets = [0, 256], sizes = [8, 128], strides = [1, 1]} : vector<8x384xf32> to vector<8x128xf32>
    %204 = vector.extract_strided_slice %186 {offsets = [0, 256], sizes = [8, 128], strides = [1, 1]} : vector<8x384xf32> to vector<8x128xf32>
    %205 = arith.addf %204, %16 : vector<8x128xf32>
    %206 = arith.mulf %194, %205 : vector<8x128xf32>
    %207 = arith.addf %203, %206 : vector<8x128xf32>
    %208 = math.tanh %207 : vector<8x128xf32>
    %cst_36 = arith.constant 1.000000e+00 : f32
    %209 = vector.broadcast %cst_36 : f32 to vector<8x128xf32>
    %210 = arith.subf %209, %202 : vector<8x128xf32>
    %211 = arith.mulf %210, %208 : vector<8x128xf32>
    %212 = arith.mulf %202, %185 : vector<8x128xf32>
    %213 = arith.addf %211, %212 : vector<8x128xf32>
    %cst_37 = arith.constant dense<0.000000e+00> : vector<8x384xf32>
    %214 = tpu.matmul %213, %12, %cst_37 {dimension_numbers = #tpu.dot_dimension_numbers<[1], [0], [0], [1], [0, 0, 1, 1], [], []>} : vector<8x128xf32>, vector<128x384xf32>, vector<8x384xf32> -> vector<8x384xf32>
    %215 = vector.extract_strided_slice %40 {offsets = [0, 0], sizes = [8, 128], strides = [1, 1]} : vector<8x384xf32> to vector<8x128xf32>
    %216 = vector.extract_strided_slice %214 {offsets = [0, 0], sizes = [8, 128], strides = [1, 1]} : vector<8x384xf32> to vector<8x128xf32>
    %217 = arith.addf %215, %216 : vector<8x128xf32>
    %218 = arith.negf %217 : vector<8x128xf32>
    %219 = math.exp %218 : vector<8x128xf32>
    %cst_38 = arith.constant 1.000000e+00 : f32
    %220 = vector.broadcast %cst_38 : f32 to vector<8x128xf32>
    %221 = arith.addf %220, %219 : vector<8x128xf32>
    %222 = arith.divf %220, %221 : vector<8x128xf32>
    %223 = vector.extract_strided_slice %40 {offsets = [0, 128], sizes = [8, 128], strides = [1, 1]} : vector<8x384xf32> to vector<8x128xf32>
    %224 = vector.extract_strided_slice %214 {offsets = [0, 128], sizes = [8, 128], strides = [1, 1]} : vector<8x384xf32> to vector<8x128xf32>
    %225 = arith.addf %223, %224 : vector<8x128xf32>
    %226 = arith.negf %225 : vector<8x128xf32>
    %227 = math.exp %226 : vector<8x128xf32>
    %cst_39 = arith.constant 1.000000e+00 : f32
    %228 = vector.broadcast %cst_39 : f32 to vector<8x128xf32>
    %229 = arith.addf %228, %227 : vector<8x128xf32>
    %230 = arith.divf %228, %229 : vector<8x128xf32>
    %231 = vector.extract_strided_slice %40 {offsets = [0, 256], sizes = [8, 128], strides = [1, 1]} : vector<8x384xf32> to vector<8x128xf32>
    %232 = vector.extract_strided_slice %214 {offsets = [0, 256], sizes = [8, 128], strides = [1, 1]} : vector<8x384xf32> to vector<8x128xf32>
    %233 = arith.addf %232, %16 : vector<8x128xf32>
    %234 = arith.mulf %222, %233 : vector<8x128xf32>
    %235 = arith.addf %231, %234 : vector<8x128xf32>
    %236 = math.tanh %235 : vector<8x128xf32>
    %cst_40 = arith.constant 1.000000e+00 : f32
    %237 = vector.broadcast %cst_40 : f32 to vector<8x128xf32>
    %238 = arith.subf %237, %230 : vector<8x128xf32>
    %239 = arith.mulf %238, %236 : vector<8x128xf32>
    %240 = arith.mulf %230, %213 : vector<8x128xf32>
    %241 = arith.addf %239, %240 : vector<8x128xf32>
    %cst_41 = arith.constant dense<0.000000e+00> : vector<8x384xf32>
    %242 = tpu.matmul %241, %12, %cst_41 {dimension_numbers = #tpu.dot_dimension_numbers<[1], [0], [0], [1], [0, 0, 1, 1], [], []>} : vector<8x128xf32>, vector<128x384xf32>, vector<8x384xf32> -> vector<8x384xf32>
    %243 = vector.extract_strided_slice %43 {offsets = [0, 0], sizes = [8, 128], strides = [1, 1]} : vector<8x384xf32> to vector<8x128xf32>
    %244 = vector.extract_strided_slice %242 {offsets = [0, 0], sizes = [8, 128], strides = [1, 1]} : vector<8x384xf32> to vector<8x128xf32>
    %245 = arith.addf %243, %244 : vector<8x128xf32>
    %246 = arith.negf %245 : vector<8x128xf32>
    %247 = math.exp %246 : vector<8x128xf32>
    %cst_42 = arith.constant 1.000000e+00 : f32
    %248 = vector.broadcast %cst_42 : f32 to vector<8x128xf32>
    %249 = arith.addf %248, %247 : vector<8x128xf32>
    %250 = arith.divf %248, %249 : vector<8x128xf32>
    %251 = vector.extract_strided_slice %43 {offsets = [0, 128], sizes = [8, 128], strides = [1, 1]} : vector<8x384xf32> to vector<8x128xf32>
    %252 = vector.extract_strided_slice %242 {offsets = [0, 128], sizes = [8, 128], strides = [1, 1]} : vector<8x384xf32> to vector<8x128xf32>
    %253 = arith.addf %251, %252 : vector<8x128xf32>
    %254 = arith.negf %253 : vector<8x128xf32>
    %255 = math.exp %254 : vector<8x128xf32>
    %cst_43 = arith.constant 1.000000e+00 : f32
    %256 = vector.broadcast %cst_43 : f32 to vector<8x128xf32>
    %257 = arith.addf %256, %255 : vector<8x128xf32>
    %258 = arith.divf %256, %257 : vector<8x128xf32>
    %259 = vector.extract_strided_slice %43 {offsets = [0, 256], sizes = [8, 128], strides = [1, 1]} : vector<8x384xf32> to vector<8x128xf32>
    %260 = vector.extract_strided_slice %242 {offsets = [0, 256], sizes = [8, 128], strides = [1, 1]} : vector<8x384xf32> to vector<8x128xf32>
    %261 = arith.addf %260, %16 : vector<8x128xf32>
    %262 = arith.mulf %250, %261 : vector<8x128xf32>
    %263 = arith.addf %259, %262 : vector<8x128xf32>
    %264 = math.tanh %263 : vector<8x128xf32>
    %cst_44 = arith.constant 1.000000e+00 : f32
    %265 = vector.broadcast %cst_44 : f32 to vector<8x128xf32>
    %266 = arith.subf %265, %258 : vector<8x128xf32>
    %267 = arith.mulf %266, %264 : vector<8x128xf32>
    %268 = arith.mulf %258, %241 : vector<8x128xf32>
    %269 = arith.addf %267, %268 : vector<8x128xf32>
    %c0_45 = arith.constant 0 : index
    %c0_46 = arith.constant 0 : index
    %c0_47 = arith.constant 0 : index
    %270 = vector.load %arg5[%c0_45, %c0_46, %c0_47] : memref<2x8x128xf32, #tpu.memory_space<vmem>>, vector<1x8x128xf32>
    %271 = vector.shape_cast %270 : vector<1x8x128xf32> to vector<8x128xf32>
    %272 = vector.shape_cast %269 : vector<8x128xf32> to vector<1x8x128xf32>
    tpu.vector_store %arg5[%c0_45, %c0_46, %c0_47], %272 {strides = array<i32>} : memref<2x8x128xf32, #tpu.memory_space<vmem>>, vector<1x8x128xf32>,
    %273 = arith.select %2, %73, %269 : vector<8x128xi1>, vector<8x128xf32>
    %274 = arith.select %2, %101, %241 : vector<8x128xi1>, vector<8x128xf32>
    %275 = arith.select %2, %129, %213 : vector<8x128xi1>, vector<8x128xf32>
    %276 = arith.select %2, %157, %185 : vector<8x128xi1>, vector<8x128xf32>
    %277 = arith.select %2, %185, %157 : vector<8x128xi1>, vector<8x128xf32>
    %278 = arith.select %2, %213, %129 : vector<8x128xi1>, vector<8x128xf32>
    %279 = arith.select %2, %241, %101 : vector<8x128xi1>, vector<8x128xf32>
    %280 = arith.select %2, %269, %73 : vector<8x128xi1>, vector<8x128xf32>
    %281 = tpu.concatenate %273, %274, %275, %276, %277, %278, %279, %280 in 0 : vector<8x128xf32>, vector<8x128xf32>, vector<8x128xf32>, vector<8x128xf32>, vector<8x128xf32>, vector<8x128xf32>, vector<8x128xf32>, vector<8x128xf32> -> vector<64x128xf32>
    %c2 = arith.constant 2 : index
    %c0_48 = arith.constant 0 : index
    %c0_49 = arith.constant 0 : index
    %282 = vector.load %arg2[%c2, %c0_48, %c0_49] : memref<4x128x384xf32, #tpu.memory_space<vmem>>, vector<1x128x384xf32>
    %283 = vector.shape_cast %282 : vector<1x128x384xf32> to vector<128x384xf32>
    %c3 = arith.constant 3 : index
    %c0_50 = arith.constant 0 : index
    %c0_51 = arith.constant 0 : index
    %284 = vector.load %arg2[%c3, %c0_50, %c0_51] : memref<4x128x384xf32, #tpu.memory_space<vmem>>, vector<1x128x384xf32>
    %285 = vector.shape_cast %284 : vector<1x128x384xf32> to vector<128x384xf32>
    %c1_52 = arith.constant 1 : index
    %c0_53 = arith.constant 0 : index
    %c0_54 = arith.constant 0 : index
    %286 = vector.load %arg3[%c1_52, %c0_53, %c0_54] : memref<2x8x512xf32, #tpu.memory_space<vmem>>, vector<1x8x512xf32>
    %287 = vector.shape_cast %286 : vector<1x8x512xf32> to vector<8x512xf32>
    %288 = vector.extract_strided_slice %287 {offsets = [0, 0], sizes = [1, 384], strides = [1, 1]} : vector<8x512xf32> to vector<1x384xf32>
    %289 = vector.extract_strided_slice %287 {offsets = [0, 384], sizes = [8, 128], strides = [1, 1]} : vector<8x512xf32> to vector<8x128xf32>
    %cst_55 = arith.constant dense<0.000000e+00> : vector<64x384xf32>
    %290 = tpu.matmul %281, %283, %cst_55 {dimension_numbers = #tpu.dot_dimension_numbers<[1], [0], [0], [1], [0, 0, 1, 1], [], []>} : vector<64x128xf32>, vector<128x384xf32>, vector<64x384xf32> -> vector<64x384xf32>
    %291 = vector.broadcast %288 : vector<1x384xf32> to vector<64x384xf32>
    %292 = arith.addf %290, %291 : vector<64x384xf32>
    %293 = vector.extract_strided_slice %292 {offsets = [0, 0], sizes = [8, 384], strides = [1, 1]} : vector<64x384xf32> to vector<8x384xf32>
    %294 = vector.extract_strided_slice %292 {offsets = [56, 0], sizes = [8, 384], strides = [1, 1]} : vector<64x384xf32> to vector<8x384xf32>
    %295 = arith.select %7, %293, %294 : vector<8x384xi1>, vector<8x384xf32>
    %296 = vector.extract_strided_slice %292 {offsets = [8, 0], sizes = [8, 384], strides = [1, 1]} : vector<64x384xf32> to vector<8x384xf32>
    %297 = vector.extract_strided_slice %292 {offsets = [48, 0], sizes = [8, 384], strides = [1, 1]} : vector<64x384xf32> to vector<8x384xf32>
    %298 = arith.select %7, %296, %297 : vector<8x384xi1>, vector<8x384xf32>
    %299 = vector.extract_strided_slice %292 {offsets = [16, 0], sizes = [8, 384], strides = [1, 1]} : vector<64x384xf32> to vector<8x384xf32>
    %300 = vector.extract_strided_slice %292 {offsets = [40, 0], sizes = [8, 384], strides = [1, 1]} : vector<64x384xf32> to vector<8x384xf32>
    %301 = arith.select %7, %299, %300 : vector<8x384xi1>, vector<8x384xf32>
    %302 = vector.extract_strided_slice %292 {offsets = [24, 0], sizes = [8, 384], strides = [1, 1]} : vector<64x384xf32> to vector<8x384xf32>
    %303 = vector.extract_strided_slice %292 {offsets = [32, 0], sizes = [8, 384], strides = [1, 1]} : vector<64x384xf32> to vector<8x384xf32>
    %304 = arith.select %7, %302, %303 : vector<8x384xi1>, vector<8x384xf32>
    %305 = vector.extract_strided_slice %292 {offsets = [32, 0], sizes = [8, 384], strides = [1, 1]} : vector<64x384xf32> to vector<8x384xf32>
    %306 = vector.extract_strided_slice %292 {offsets = [24, 0], sizes = [8, 384], strides = [1, 1]} : vector<64x384xf32> to vector<8x384xf32>
    %307 = arith.select %7, %305, %306 : vector<8x384xi1>, vector<8x384xf32>
    %308 = vector.extract_strided_slice %292 {offsets = [40, 0], sizes = [8, 384], strides = [1, 1]} : vector<64x384xf32> to vector<8x384xf32>
    %309 = vector.extract_strided_slice %292 {offsets = [16, 0], sizes = [8, 384], strides = [1, 1]} : vector<64x384xf32> to vector<8x384xf32>
    %310 = arith.select %7, %308, %309 : vector<8x384xi1>, vector<8x384xf32>
    %311 = vector.extract_strided_slice %292 {offsets = [48, 0], sizes = [8, 384], strides = [1, 1]} : vector<64x384xf32> to vector<8x384xf32>
    %312 = vector.extract_strided_slice %292 {offsets = [8, 0], sizes = [8, 384], strides = [1, 1]} : vector<64x384xf32> to vector<8x384xf32>
    %313 = arith.select %7, %311, %312 : vector<8x384xi1>, vector<8x384xf32>
    %314 = vector.extract_strided_slice %292 {offsets = [56, 0], sizes = [8, 384], strides = [1, 1]} : vector<64x384xf32> to vector<8x384xf32>
    %315 = vector.extract_strided_slice %292 {offsets = [0, 0], sizes = [8, 384], strides = [1, 1]} : vector<64x384xf32> to vector<8x384xf32>
    %316 = arith.select %7, %314, %315 : vector<8x384xi1>, vector<8x384xf32>
    %c1_56 = arith.constant 1 : index
    %c0_57 = arith.constant 0 : index
    %c0_58 = arith.constant 0 : index
    %317 = vector.load %arg1[%c1_56, %c0_57, %c0_58] : memref<2x8x128xf32, #tpu.memory_space<vmem>>, vector<1x8x128xf32>
    %318 = vector.shape_cast %317 : vector<1x8x128xf32> to vector<8x128xf32>
    %cst_59 = arith.constant dense<0.000000e+00> : vector<8x384xf32>
    %319 = tpu.matmul %318, %285, %cst_59 {dimension_numbers = #tpu.dot_dimension_numbers<[1], [0], [0], [1], [0, 0, 1, 1], [], []>} : vector<8x128xf32>, vector<128x384xf32>, vector<8x384xf32> -> vector<8x384xf32>
    %320 = vector.extract_strided_slice %295 {offsets = [0, 0], sizes = [8, 128], strides = [1, 1]} : vector<8x384xf32> to vector<8x128xf32>
    %321 = vector.extract_strided_slice %319 {offsets = [0, 0], sizes = [8, 128], strides = [1, 1]} : vector<8x384xf32> to vector<8x128xf32>
    %322 = arith.addf %320, %321 : vector<8x128xf32>
    %323 = arith.negf %322 : vector<8x128xf32>
    %324 = math.exp %323 : vector<8x128xf32>
    %cst_60 = arith.constant 1.000000e+00 : f32
    %325 = vector.broadcast %cst_60 : f32 to vector<8x128xf32>
    %326 = arith.addf %325, %324 : vector<8x128xf32>
    %327 = arith.divf %325, %326 : vector<8x128xf32>
    %328 = vector.extract_strided_slice %295 {offsets = [0, 128], sizes = [8, 128], strides = [1, 1]} : vector<8x384xf32> to vector<8x128xf32>
    %329 = vector.extract_strided_slice %319 {offsets = [0, 128], sizes = [8, 128], strides = [1, 1]} : vector<8x384xf32> to vector<8x128xf32>
    %330 = arith.addf %328, %329 : vector<8x128xf32>
    %331 = arith.negf %330 : vector<8x128xf32>
    %332 = math.exp %331 : vector<8x128xf32>
    %cst_61 = arith.constant 1.000000e+00 : f32
    %333 = vector.broadcast %cst_61 : f32 to vector<8x128xf32>
    %334 = arith.addf %333, %332 : vector<8x128xf32>
    %335 = arith.divf %333, %334 : vector<8x128xf32>
    %336 = vector.extract_strided_slice %295 {offsets = [0, 256], sizes = [8, 128], strides = [1, 1]} : vector<8x384xf32> to vector<8x128xf32>
    %337 = vector.extract_strided_slice %319 {offsets = [0, 256], sizes = [8, 128], strides = [1, 1]} : vector<8x384xf32> to vector<8x128xf32>
    %338 = arith.addf %337, %289 : vector<8x128xf32>
    %339 = arith.mulf %327, %338 : vector<8x128xf32>
    %340 = arith.addf %336, %339 : vector<8x128xf32>
    %341 = math.tanh %340 : vector<8x128xf32>
    %cst_62 = arith.constant 1.000000e+00 : f32
    %342 = vector.broadcast %cst_62 : f32 to vector<8x128xf32>
    %343 = arith.subf %342, %335 : vector<8x128xf32>
    %344 = arith.mulf %343, %341 : vector<8x128xf32>
    %345 = arith.mulf %335, %318 : vector<8x128xf32>
    %346 = arith.addf %344, %345 : vector<8x128xf32>
    %cst_63 = arith.constant dense<0.000000e+00> : vector<8x384xf32>
    %347 = tpu.matmul %346, %285, %cst_63 {dimension_numbers = #tpu.dot_dimension_numbers<[1], [0], [0], [1], [0, 0, 1, 1], [], []>} : vector<8x128xf32>, vector<128x384xf32>, vector<8x384xf32> -> vector<8x384xf32>
    %348 = vector.extract_strided_slice %298 {offsets = [0, 0], sizes = [8, 128], strides = [1, 1]} : vector<8x384xf32> to vector<8x128xf32>
    %349 = vector.extract_strided_slice %347 {offsets = [0, 0], sizes = [8, 128], strides = [1, 1]} : vector<8x384xf32> to vector<8x128xf32>
    %350 = arith.addf %348, %349 : vector<8x128xf32>
    %351 = arith.negf %350 : vector<8x128xf32>
    %352 = math.exp %351 : vector<8x128xf32>
    %cst_64 = arith.constant 1.000000e+00 : f32
    %353 = vector.broadcast %cst_64 : f32 to vector<8x128xf32>
    %354 = arith.addf %353, %352 : vector<8x128xf32>
    %355 = arith.divf %353, %354 : vector<8x128xf32>
    %356 = vector.extract_strided_slice %298 {offsets = [0, 128], sizes = [8, 128], strides = [1, 1]} : vector<8x384xf32> to vector<8x128xf32>
    %357 = vector.extract_strided_slice %347 {offsets = [0, 128], sizes = [8, 128], strides = [1, 1]} : vector<8x384xf32> to vector<8x128xf32>
    %358 = arith.addf %356, %357 : vector<8x128xf32>
    %359 = arith.negf %358 : vector<8x128xf32>
    %360 = math.exp %359 : vector<8x128xf32>
    %cst_65 = arith.constant 1.000000e+00 : f32
    %361 = vector.broadcast %cst_65 : f32 to vector<8x128xf32>
    %362 = arith.addf %361, %360 : vector<8x128xf32>
    %363 = arith.divf %361, %362 : vector<8x128xf32>
    %364 = vector.extract_strided_slice %298 {offsets = [0, 256], sizes = [8, 128], strides = [1, 1]} : vector<8x384xf32> to vector<8x128xf32>
    %365 = vector.extract_strided_slice %347 {offsets = [0, 256], sizes = [8, 128], strides = [1, 1]} : vector<8x384xf32> to vector<8x128xf32>
    %366 = arith.addf %365, %289 : vector<8x128xf32>
    %367 = arith.mulf %355, %366 : vector<8x128xf32>
    %368 = arith.addf %364, %367 : vector<8x128xf32>
    %369 = math.tanh %368 : vector<8x128xf32>
    %cst_66 = arith.constant 1.000000e+00 : f32
    %370 = vector.broadcast %cst_66 : f32 to vector<8x128xf32>
    %371 = arith.subf %370, %363 : vector<8x128xf32>
    %372 = arith.mulf %371, %369 : vector<8x128xf32>
    %373 = arith.mulf %363, %346 : vector<8x128xf32>
    %374 = arith.addf %372, %373 : vector<8x128xf32>
    %cst_67 = arith.constant dense<0.000000e+00> : vector<8x384xf32>
    %375 = tpu.matmul %374, %285, %cst_67 {dimension_numbers = #tpu.dot_dimension_numbers<[1], [0], [0], [1], [0, 0, 1, 1], [], []>} : vector<8x128xf32>, vector<128x384xf32>, vector<8x384xf32> -> vector<8x384xf32>
    %376 = vector.extract_strided_slice %301 {offsets = [0, 0], sizes = [8, 128], strides = [1, 1]} : vector<8x384xf32> to vector<8x128xf32>
    %377 = vector.extract_strided_slice %375 {offsets = [0, 0], sizes = [8, 128], strides = [1, 1]} : vector<8x384xf32> to vector<8x128xf32>
    %378 = arith.addf %376, %377 : vector<8x128xf32>
    %379 = arith.negf %378 : vector<8x128xf32>
    %380 = math.exp %379 : vector<8x128xf32>
    %cst_68 = arith.constant 1.000000e+00 : f32
    %381 = vector.broadcast %cst_68 : f32 to vector<8x128xf32>
    %382 = arith.addf %381, %380 : vector<8x128xf32>
    %383 = arith.divf %381, %382 : vector<8x128xf32>
    %384 = vector.extract_strided_slice %301 {offsets = [0, 128], sizes = [8, 128], strides = [1, 1]} : vector<8x384xf32> to vector<8x128xf32>
    %385 = vector.extract_strided_slice %375 {offsets = [0, 128], sizes = [8, 128], strides = [1, 1]} : vector<8x384xf32> to vector<8x128xf32>
    %386 = arith.addf %384, %385 : vector<8x128xf32>
    %387 = arith.negf %386 : vector<8x128xf32>
    %388 = math.exp %387 : vector<8x128xf32>
    %cst_69 = arith.constant 1.000000e+00 : f32
    %389 = vector.broadcast %cst_69 : f32 to vector<8x128xf32>
    %390 = arith.addf %389, %388 : vector<8x128xf32>
    %391 = arith.divf %389, %390 : vector<8x128xf32>
    %392 = vector.extract_strided_slice %301 {offsets = [0, 256], sizes = [8, 128], strides = [1, 1]} : vector<8x384xf32> to vector<8x128xf32>
    %393 = vector.extract_strided_slice %375 {offsets = [0, 256], sizes = [8, 128], strides = [1, 1]} : vector<8x384xf32> to vector<8x128xf32>
    %394 = arith.addf %393, %289 : vector<8x128xf32>
    %395 = arith.mulf %383, %394 : vector<8x128xf32>
    %396 = arith.addf %392, %395 : vector<8x128xf32>
    %397 = math.tanh %396 : vector<8x128xf32>
    %cst_70 = arith.constant 1.000000e+00 : f32
    %398 = vector.broadcast %cst_70 : f32 to vector<8x128xf32>
    %399 = arith.subf %398, %391 : vector<8x128xf32>
    %400 = arith.mulf %399, %397 : vector<8x128xf32>
    %401 = arith.mulf %391, %374 : vector<8x128xf32>
    %402 = arith.addf %400, %401 : vector<8x128xf32>
    %cst_71 = arith.constant dense<0.000000e+00> : vector<8x384xf32>
    %403 = tpu.matmul %402, %285, %cst_71 {dimension_numbers = #tpu.dot_dimension_numbers<[1], [0], [0], [1], [0, 0, 1, 1], [], []>} : vector<8x128xf32>, vector<128x384xf32>, vector<8x384xf32> -> vector<8x384xf32>
    %404 = vector.extract_strided_slice %304 {offsets = [0, 0], sizes = [8, 128], strides = [1, 1]} : vector<8x384xf32> to vector<8x128xf32>
    %405 = vector.extract_strided_slice %403 {offsets = [0, 0], sizes = [8, 128], strides = [1, 1]} : vector<8x384xf32> to vector<8x128xf32>
    %406 = arith.addf %404, %405 : vector<8x128xf32>
    %407 = arith.negf %406 : vector<8x128xf32>
    %408 = math.exp %407 : vector<8x128xf32>
    %cst_72 = arith.constant 1.000000e+00 : f32
    %409 = vector.broadcast %cst_72 : f32 to vector<8x128xf32>
    %410 = arith.addf %409, %408 : vector<8x128xf32>
    %411 = arith.divf %409, %410 : vector<8x128xf32>
    %412 = vector.extract_strided_slice %304 {offsets = [0, 128], sizes = [8, 128], strides = [1, 1]} : vector<8x384xf32> to vector<8x128xf32>
    %413 = vector.extract_strided_slice %403 {offsets = [0, 128], sizes = [8, 128], strides = [1, 1]} : vector<8x384xf32> to vector<8x128xf32>
    %414 = arith.addf %412, %413 : vector<8x128xf32>
    %415 = arith.negf %414 : vector<8x128xf32>
    %416 = math.exp %415 : vector<8x128xf32>
    %cst_73 = arith.constant 1.000000e+00 : f32
    %417 = vector.broadcast %cst_73 : f32 to vector<8x128xf32>
    %418 = arith.addf %417, %416 : vector<8x128xf32>
    %419 = arith.divf %417, %418 : vector<8x128xf32>
    %420 = vector.extract_strided_slice %304 {offsets = [0, 256], sizes = [8, 128], strides = [1, 1]} : vector<8x384xf32> to vector<8x128xf32>
    %421 = vector.extract_strided_slice %403 {offsets = [0, 256], sizes = [8, 128], strides = [1, 1]} : vector<8x384xf32> to vector<8x128xf32>
    %422 = arith.addf %421, %289 : vector<8x128xf32>
    %423 = arith.mulf %411, %422 : vector<8x128xf32>
    %424 = arith.addf %420, %423 : vector<8x128xf32>
    %425 = math.tanh %424 : vector<8x128xf32>
    %cst_74 = arith.constant 1.000000e+00 : f32
    %426 = vector.broadcast %cst_74 : f32 to vector<8x128xf32>
    %427 = arith.subf %426, %419 : vector<8x128xf32>
    %428 = arith.mulf %427, %425 : vector<8x128xf32>
    %429 = arith.mulf %419, %402 : vector<8x128xf32>
    %430 = arith.addf %428, %429 : vector<8x128xf32>
    %cst_75 = arith.constant dense<0.000000e+00> : vector<8x384xf32>
    %431 = tpu.matmul %430, %285, %cst_75 {dimension_numbers = #tpu.dot_dimension_numbers<[1], [0], [0], [1], [0, 0, 1, 1], [], []>} : vector<8x128xf32>, vector<128x384xf32>, vector<8x384xf32> -> vector<8x384xf32>
    %432 = vector.extract_strided_slice %307 {offsets = [0, 0], sizes = [8, 128], strides = [1, 1]} : vector<8x384xf32> to vector<8x128xf32>
    %433 = vector.extract_strided_slice %431 {offsets = [0, 0], sizes = [8, 128], strides = [1, 1]} : vector<8x384xf32> to vector<8x128xf32>
    %434 = arith.addf %432, %433 : vector<8x128xf32>
    %435 = arith.negf %434 : vector<8x128xf32>
    %436 = math.exp %435 : vector<8x128xf32>
    %cst_76 = arith.constant 1.000000e+00 : f32
    %437 = vector.broadcast %cst_76 : f32 to vector<8x128xf32>
    %438 = arith.addf %437, %436 : vector<8x128xf32>
    %439 = arith.divf %437, %438 : vector<8x128xf32>
    %440 = vector.extract_strided_slice %307 {offsets = [0, 128], sizes = [8, 128], strides = [1, 1]} : vector<8x384xf32> to vector<8x128xf32>
    %441 = vector.extract_strided_slice %431 {offsets = [0, 128], sizes = [8, 128], strides = [1, 1]} : vector<8x384xf32> to vector<8x128xf32>
    %442 = arith.addf %440, %441 : vector<8x128xf32>
    %443 = arith.negf %442 : vector<8x128xf32>
    %444 = math.exp %443 : vector<8x128xf32>
    %cst_77 = arith.constant 1.000000e+00 : f32
    %445 = vector.broadcast %cst_77 : f32 to vector<8x128xf32>
    %446 = arith.addf %445, %444 : vector<8x128xf32>
    %447 = arith.divf %445, %446 : vector<8x128xf32>
    %448 = vector.extract_strided_slice %307 {offsets = [0, 256], sizes = [8, 128], strides = [1, 1]} : vector<8x384xf32> to vector<8x128xf32>
    %449 = vector.extract_strided_slice %431 {offsets = [0, 256], sizes = [8, 128], strides = [1, 1]} : vector<8x384xf32> to vector<8x128xf32>
    %450 = arith.addf %449, %289 : vector<8x128xf32>
    %451 = arith.mulf %439, %450 : vector<8x128xf32>
    %452 = arith.addf %448, %451 : vector<8x128xf32>
    %453 = math.tanh %452 : vector<8x128xf32>
    %cst_78 = arith.constant 1.000000e+00 : f32
    %454 = vector.broadcast %cst_78 : f32 to vector<8x128xf32>
    %455 = arith.subf %454, %447 : vector<8x128xf32>
    %456 = arith.mulf %455, %453 : vector<8x128xf32>
    %457 = arith.mulf %447, %430 : vector<8x128xf32>
    %458 = arith.addf %456, %457 : vector<8x128xf32>
    %cst_79 = arith.constant dense<0.000000e+00> : vector<8x384xf32>
    %459 = tpu.matmul %458, %285, %cst_79 {dimension_numbers = #tpu.dot_dimension_numbers<[1], [0], [0], [1], [0, 0, 1, 1], [], []>} : vector<8x128xf32>, vector<128x384xf32>, vector<8x384xf32> -> vector<8x384xf32>
    %460 = vector.extract_strided_slice %310 {offsets = [0, 0], sizes = [8, 128], strides = [1, 1]} : vector<8x384xf32> to vector<8x128xf32>
    %461 = vector.extract_strided_slice %459 {offsets = [0, 0], sizes = [8, 128], strides = [1, 1]} : vector<8x384xf32> to vector<8x128xf32>
    %462 = arith.addf %460, %461 : vector<8x128xf32>
    %463 = arith.negf %462 : vector<8x128xf32>
    %464 = math.exp %463 : vector<8x128xf32>
    %cst_80 = arith.constant 1.000000e+00 : f32
    %465 = vector.broadcast %cst_80 : f32 to vector<8x128xf32>
    %466 = arith.addf %465, %464 : vector<8x128xf32>
    %467 = arith.divf %465, %466 : vector<8x128xf32>
    %468 = vector.extract_strided_slice %310 {offsets = [0, 128], sizes = [8, 128], strides = [1, 1]} : vector<8x384xf32> to vector<8x128xf32>
    %469 = vector.extract_strided_slice %459 {offsets = [0, 128], sizes = [8, 128], strides = [1, 1]} : vector<8x384xf32> to vector<8x128xf32>
    %470 = arith.addf %468, %469 : vector<8x128xf32>
    %471 = arith.negf %470 : vector<8x128xf32>
    %472 = math.exp %471 : vector<8x128xf32>
    %cst_81 = arith.constant 1.000000e+00 : f32
    %473 = vector.broadcast %cst_81 : f32 to vector<8x128xf32>
    %474 = arith.addf %473, %472 : vector<8x128xf32>
    %475 = arith.divf %473, %474 : vector<8x128xf32>
    %476 = vector.extract_strided_slice %310 {offsets = [0, 256], sizes = [8, 128], strides = [1, 1]} : vector<8x384xf32> to vector<8x128xf32>
    %477 = vector.extract_strided_slice %459 {offsets = [0, 256], sizes = [8, 128], strides = [1, 1]} : vector<8x384xf32> to vector<8x128xf32>
    %478 = arith.addf %477, %289 : vector<8x128xf32>
    %479 = arith.mulf %467, %478 : vector<8x128xf32>
    %480 = arith.addf %476, %479 : vector<8x128xf32>
    %481 = math.tanh %480 : vector<8x128xf32>
    %cst_82 = arith.constant 1.000000e+00 : f32
    %482 = vector.broadcast %cst_82 : f32 to vector<8x128xf32>
    %483 = arith.subf %482, %475 : vector<8x128xf32>
    %484 = arith.mulf %483, %481 : vector<8x128xf32>
    %485 = arith.mulf %475, %458 : vector<8x128xf32>
    %486 = arith.addf %484, %485 : vector<8x128xf32>
    %cst_83 = arith.constant dense<0.000000e+00> : vector<8x384xf32>
    %487 = tpu.matmul %486, %285, %cst_83 {dimension_numbers = #tpu.dot_dimension_numbers<[1], [0], [0], [1], [0, 0, 1, 1], [], []>} : vector<8x128xf32>, vector<128x384xf32>, vector<8x384xf32> -> vector<8x384xf32>
    %488 = vector.extract_strided_slice %313 {offsets = [0, 0], sizes = [8, 128], strides = [1, 1]} : vector<8x384xf32> to vector<8x128xf32>
    %489 = vector.extract_strided_slice %487 {offsets = [0, 0], sizes = [8, 128], strides = [1, 1]} : vector<8x384xf32> to vector<8x128xf32>
    %490 = arith.addf %488, %489 : vector<8x128xf32>
    %491 = arith.negf %490 : vector<8x128xf32>
    %492 = math.exp %491 : vector<8x128xf32>
    %cst_84 = arith.constant 1.000000e+00 : f32
    %493 = vector.broadcast %cst_84 : f32 to vector<8x128xf32>
    %494 = arith.addf %493, %492 : vector<8x128xf32>
    %495 = arith.divf %493, %494 : vector<8x128xf32>
    %496 = vector.extract_strided_slice %313 {offsets = [0, 128], sizes = [8, 128], strides = [1, 1]} : vector<8x384xf32> to vector<8x128xf32>
    %497 = vector.extract_strided_slice %487 {offsets = [0, 128], sizes = [8, 128], strides = [1, 1]} : vector<8x384xf32> to vector<8x128xf32>
    %498 = arith.addf %496, %497 : vector<8x128xf32>
    %499 = arith.negf %498 : vector<8x128xf32>
    %500 = math.exp %499 : vector<8x128xf32>
    %cst_85 = arith.constant 1.000000e+00 : f32
    %501 = vector.broadcast %cst_85 : f32 to vector<8x128xf32>
    %502 = arith.addf %501, %500 : vector<8x128xf32>
    %503 = arith.divf %501, %502 : vector<8x128xf32>
    %504 = vector.extract_strided_slice %313 {offsets = [0, 256], sizes = [8, 128], strides = [1, 1]} : vector<8x384xf32> to vector<8x128xf32>
    %505 = vector.extract_strided_slice %487 {offsets = [0, 256], sizes = [8, 128], strides = [1, 1]} : vector<8x384xf32> to vector<8x128xf32>
    %506 = arith.addf %505, %289 : vector<8x128xf32>
    %507 = arith.mulf %495, %506 : vector<8x128xf32>
    %508 = arith.addf %504, %507 : vector<8x128xf32>
    %509 = math.tanh %508 : vector<8x128xf32>
    %cst_86 = arith.constant 1.000000e+00 : f32
    %510 = vector.broadcast %cst_86 : f32 to vector<8x128xf32>
    %511 = arith.subf %510, %503 : vector<8x128xf32>
    %512 = arith.mulf %511, %509 : vector<8x128xf32>
    %513 = arith.mulf %503, %486 : vector<8x128xf32>
    %514 = arith.addf %512, %513 : vector<8x128xf32>
    %cst_87 = arith.constant dense<0.000000e+00> : vector<8x384xf32>
    %515 = tpu.matmul %514, %285, %cst_87 {dimension_numbers = #tpu.dot_dimension_numbers<[1], [0], [0], [1], [0, 0, 1, 1], [], []>} : vector<8x128xf32>, vector<128x384xf32>, vector<8x384xf32> -> vector<8x384xf32>
    %516 = vector.extract_strided_slice %316 {offsets = [0, 0], sizes = [8, 128], strides = [1, 1]} : vector<8x384xf32> to vector<8x128xf32>
    %517 = vector.extract_strided_slice %515 {offsets = [0, 0], sizes = [8, 128], strides = [1, 1]} : vector<8x384xf32> to vector<8x128xf32>
    %518 = arith.addf %516, %517 : vector<8x128xf32>
    %519 = arith.negf %518 : vector<8x128xf32>
    %520 = math.exp %519 : vector<8x128xf32>
    %cst_88 = arith.constant 1.000000e+00 : f32
    %521 = vector.broadcast %cst_88 : f32 to vector<8x128xf32>
    %522 = arith.addf %521, %520 : vector<8x128xf32>
    %523 = arith.divf %521, %522 : vector<8x128xf32>
    %524 = vector.extract_strided_slice %316 {offsets = [0, 128], sizes = [8, 128], strides = [1, 1]} : vector<8x384xf32> to vector<8x128xf32>
    %525 = vector.extract_strided_slice %515 {offsets = [0, 128], sizes = [8, 128], strides = [1, 1]} : vector<8x384xf32> to vector<8x128xf32>
    %526 = arith.addf %524, %525 : vector<8x128xf32>
    %527 = arith.negf %526 : vector<8x128xf32>
    %528 = math.exp %527 : vector<8x128xf32>
    %cst_89 = arith.constant 1.000000e+00 : f32
    %529 = vector.broadcast %cst_89 : f32 to vector<8x128xf32>
    %530 = arith.addf %529, %528 : vector<8x128xf32>
    %531 = arith.divf %529, %530 : vector<8x128xf32>
    %532 = vector.extract_strided_slice %316 {offsets = [0, 256], sizes = [8, 128], strides = [1, 1]} : vector<8x384xf32> to vector<8x128xf32>
    %533 = vector.extract_strided_slice %515 {offsets = [0, 256], sizes = [8, 128], strides = [1, 1]} : vector<8x384xf32> to vector<8x128xf32>
    %534 = arith.addf %533, %289 : vector<8x128xf32>
    %535 = arith.mulf %523, %534 : vector<8x128xf32>
    %536 = arith.addf %532, %535 : vector<8x128xf32>
    %537 = math.tanh %536 : vector<8x128xf32>
    %cst_90 = arith.constant 1.000000e+00 : f32
    %538 = vector.broadcast %cst_90 : f32 to vector<8x128xf32>
    %539 = arith.subf %538, %531 : vector<8x128xf32>
    %540 = arith.mulf %539, %537 : vector<8x128xf32>
    %541 = arith.mulf %531, %514 : vector<8x128xf32>
    %542 = arith.addf %540, %541 : vector<8x128xf32>
    %c1_91 = arith.constant 1 : index
    %c0_92 = arith.constant 0 : index
    %c0_93 = arith.constant 0 : index
    %543 = vector.load %arg5[%c1_91, %c0_92, %c0_93] : memref<2x8x128xf32, #tpu.memory_space<vmem>>, vector<1x8x128xf32>
    %544 = vector.shape_cast %543 : vector<1x8x128xf32> to vector<8x128xf32>
    %545 = vector.shape_cast %542 : vector<8x128xf32> to vector<1x8x128xf32>
    tpu.vector_store %arg5[%c1_91, %c0_92, %c0_93], %545 {strides = array<i32>} : memref<2x8x128xf32, #tpu.memory_space<vmem>>, vector<1x8x128xf32>,
    %546 = arith.select %2, %346, %542 : vector<8x128xi1>, vector<8x128xf32>
    %547 = arith.select %2, %374, %514 : vector<8x128xi1>, vector<8x128xf32>
    %548 = arith.select %2, %402, %486 : vector<8x128xi1>, vector<8x128xf32>
    %549 = arith.select %2, %430, %458 : vector<8x128xi1>, vector<8x128xf32>
    %550 = arith.select %2, %458, %430 : vector<8x128xi1>, vector<8x128xf32>
    %551 = arith.select %2, %486, %402 : vector<8x128xi1>, vector<8x128xf32>
    %552 = arith.select %2, %514, %374 : vector<8x128xi1>, vector<8x128xf32>
    %553 = arith.select %2, %542, %346 : vector<8x128xi1>, vector<8x128xf32>
    %554 = tpu.concatenate %546, %547, %548, %549, %550, %551, %552, %553 in 0 : vector<8x128xf32>, vector<8x128xf32>, vector<8x128xf32>, vector<8x128xf32>, vector<8x128xf32>, vector<8x128xf32>, vector<8x128xf32>, vector<8x128xf32> -> vector<64x128xf32>
    %c0_94 = arith.constant 0 : index
    %c0_95 = arith.constant 0 : index
    %555 = vector.load %arg4[%c0_94, %c0_95] : memref<64x128xf32, #tpu.memory_space<vmem>>, vector<64x128xf32>
    tpu.vector_store %arg4[%c0_94, %c0_95], %554 {strides = array<i32>} : memref<64x128xf32, #tpu.memory_space<vmem>>, vector<64x128xf32>,
    return
  }
}

</mosaic_0001>

<bundles_post_ra>
// kernel: tpu_custom_call.1
= control target key start
LH: loop header
LB: loop body
LE: loop exit
PB: predicated region body
PF: predicated region fallthrough
CT: control target
= control target key end

     0   :  { %11 = vsyncpa [#allocation3], 0  ;;  %s7271_s0 = inlined_call_operand.hbm [shape: f32[64,128], index: 0, kind: input, shape index: {}]   ;;  %s7272_s1 = inlined_call_operand.hbm [shape: f32[2,8,128], index: 1, kind: input, shape index: {}]   ;;  %s7273_s2 = inlined_call_operand.hbm [shape: f32[4,128,384], index: 2, kind: input, shape index: {}]   ;;  %s7274_s3 = inlined_call_operand.hbm [shape: f32[2,8,512], index: 3, kind: input, shape index: {}]   ;;  %s7275_s4 = inlined_call_operand.hbm [shape: f32[64,128], index: 4, kind: output, shape index: {0}]   ;;  %s7276_s5 = inlined_call_operand.hbm [shape: f32[2,8,128], index: 5, kind: output, shape index: {1}]  }
   0x1   :  { %12 = vsyncpa [#allocation6], 0 }
   0x2   :  { %13 = vsyncpa [#allocation9], 0 }
   0x3   :  { %14 = vsyncpa [#allocation4], 0 }
   0x4   :  { %15 = vsyncpa [#allocation12], 0  ;;  %s5822_s18 = smov [#allocation5]   ;;  %s5823_s20 = smov [#allocation2]  }
   0x5   :  { %s33_s19 = sshll.u32 %s5822_s18, 4  ;;  %s21_s21 = sshll.u32 %s5823_s20, 4  ;;  %s34_s19 = int_to_ptr.vmem [resolvable:$true] %s33_s19  ;;  %s5867_s21 = int_to_ptr.vmem [resolvable:$true] %s21_s21 }
   0x6   :  { %s5680_s24 = scalar_lea.hbm %s7272_s1, 256 }
   0x7   :  { %p5681_p0 = scmp.ne.s32.totalorder %s7272_s1, %s5680_s24  ;;  %p5684_p1 = scmp.lt.u32.totalorder %s5680_s24, %s7272_s1 }
   0x9   :  { %p5686_p2 = pnand %p5684_p1, %p5681_p0 }
   0xb   :  { %5689 = shalt.err (!%p5686_p2)
}
   0xc   :  { %s5690_s29 = scalar_lea.vmem %s34_s19, 256  ;;  %p5695_p4 = scmp.lt.s32.totalorder %s34_s19, %s34_s19 }
   0xd   :  { %p5691_p3 = scmp.ne.s32.totalorder %s34_s19, %s5690_s29  ;;  %p5696_p5 = scmp.lt.s32.totalorder %s5690_s29, %s5690_s29 }
   0xf   :  { %p5697_p6 = por %p5696_p5, %p5695_p4 }
  0x11   :  { %p5698_p7 = pnand %p5697_p6, %p5691_p3 }
  0x13   :  { %5701 = shalt.err (!%p5698_p7)
}
  0x14   :  { %s5824_s30 = smov 128   ;;  %s5825_s6 = smov 8  }
  0x15   :  { %39 = dma.hbm_to_vmem [thread:$0]  %s7272_s1, 256, %s34_s19, [#allocation6], %s5824_s30, %s5824_s30, %s5825_s6  }
  0x16   :  { %s5702_s11 = scalar_lea.hbm %s7271_s0, 1024 }
  0x17   :  { %p5703_p8 = scmp.ne.s32.totalorder %s7271_s0, %s5702_s11  ;;  %p5706_p9 = scmp.lt.u32.totalorder %s5702_s11, %s7271_s0 }
  0x19   :  { %p5708_p10 = pnand %p5706_p9, %p5703_p8 }
  0x1b   :  { %5711 = shalt.err (!%p5708_p10)
}
  0x1c   :  { %s5712_s16 = scalar_lea.vmem %s5867_s21, 1024  ;;  %p5717_p12 = scmp.lt.s32.totalorder %s5867_s21, %s5867_s21 }
  0x1d   :  { %p5713_p11 = scmp.ne.s32.totalorder %s5867_s21, %s5712_s16  ;;  %p5718_p13 = scmp.lt.s32.totalorder %s5712_s16, %s5712_s16 }
  0x1f   :  { %p5719_p0 = por %p5718_p13, %p5717_p12 }
  0x21   :  { %p5720_p1 = pnand %p5719_p0, %p5713_p11 }
  0x23   :  { %5723 = shalt.err (!%p5720_p1)
}
  0x24   :  { %27 = dma.hbm_to_vmem [thread:$0]  %s7271_s0, 1024, %s5867_s21, [#allocation3], %s5824_s30, %s5824_s30, %s5825_s6  }
  0x25   :  { %s5826_s18 = smov [#allocation7]   ;;  %s5724_s23 = scalar_lea.hbm %s7273_s2, 24576 }
  0x26   :  { %s45_s19 = sshll.u32 %s5826_s18, 4  ;;  %p5725_p2 = scmp.ne.s32.totalorder %s7273_s2, %s5724_s23  ;;  %s46_s19 = int_to_ptr.vmem [resolvable:$true] %s45_s19 }
  0x27   :  { %p5728_p3 = scmp.lt.u32.totalorder %s5724_s23, %s7273_s2 }
  0x29   :  { %p5730_p4 = pnand %p5728_p3, %p5725_p2 }
  0x2b   :  { %5733 = shalt.err (!%p5730_p4)
}
  0x2c   :  { %s5734_s28 = scalar_lea.vmem %s46_s19, 24576  ;;  %p5739_p6 = scmp.lt.s32.totalorder %s46_s19, %s46_s19 }
  0x2d   :  { %p5735_p5 = scmp.ne.s32.totalorder %s46_s19, %s5734_s28  ;;  %p5740_p7 = scmp.lt.s32.totalorder %s5734_s28, %s5734_s28 }
  0x2f   :  { %p5741_p8 = por %p5740_p7, %p5739_p6 }
  0x31   :  { %p5742_p9 = pnand %p5741_p8, %p5735_p5 }
  0x33   :  { %5745 = shalt.err (!%p5742_p9)
}
  0x34   :  { %s5827_s0 = smov 384   ;;  %s5828_s21 = smov 24  }
  0x35   :  { %51 = dma.hbm_to_vmem [thread:$0]  %s7273_s2, 24576, %s46_s19, [#allocation6], %s5827_s0, %s5827_s0, %s5828_s21  }
  0x36   :  { %s5829_s8 = smov [#allocation8]   ;;  %s5746_s12 = scalar_lea.hbm %s7274_s3, 1024 }
  0x37   :  { %s57_s9 = sshll.u32 %s5829_s8, 4  ;;  %p5747_p10 = scmp.ne.s32.totalorder %s7274_s3, %s5746_s12  ;;  %s58_s9 = int_to_ptr.vmem [resolvable:$true] %s57_s9 }
  0x38   :  { %p5750_p11 = scmp.lt.u32.totalorder %s5746_s12, %s7274_s3 }
  0x3a   :  { %p5752_p12 = pnand %p5750_p11, %p5747_p10 }
  0x3c   :  { %5755 = shalt.err (!%p5752_p12)
}
  0x3d   :  { %s5756_s1 = scalar_lea.vmem %s58_s9, 1024  ;;  %p5761_p0 = scmp.lt.s32.totalorder %s58_s9, %s58_s9 }
  0x3e   :  { %p5757_p13 = scmp.ne.s32.totalorder %s58_s9, %s5756_s1  ;;  %p5762_p1 = scmp.lt.s32.totalorder %s5756_s1, %s5756_s1 }
  0x40   :  { %p5763_p2 = por %p5762_p1, %p5761_p0 }
  0x42   :  { %p5764_p3 = pnand %p5763_p2, %p5757_p13 }
  0x44   :  { %5767 = shalt.err (!%p5764_p3)
}
  0x45   :  { %s5830_s2 = smov 512   ;;  %s5831_s17 = smov 32  }
  0x46   :  { %63 = dma.hbm_to_vmem [thread:$0]  %s7274_s3, 1024, %s58_s9, [#allocation9], %s5830_s2, %s5830_s2, %s5831_s17  }
  0x47   :  { %5812 = dma.done.wait [#allocation3], 1024  }
  0x48   :  { %5813 = vsyncadd [#allocation3], 4294966272 }
  0x49   :  { %5814 = dma.done.wait [#allocation6], 24832  }
  0x4a   :  { %5815 = vsyncadd [#allocation6], 4294942464 }
  0x4b   :  { %5816 = dma.done.wait [#allocation9], 1024  }
  0x4c   :  { %5817 = vsyncadd [#allocation9], 4294966272  ;;  %v7277_v0 = vmov 0.0   ;;  %v96_v1 = vld [vmem:[#allocation7 + $0x8] sm:$0xff]  ;;  %v99_v2 = vld [vmem:[#allocation7 + $0x20] sm:$0xff]  ;;  %vm5834_vm0 = vmmov 0  }
  0x4d   :  { %272 = vmatprep.mubr.f32.mxu0 %v7277_v0  ;;  %v95_v3 = vld [vmem:[#allocation7] sm:$0xff]  ;;  %v4480_v4 = vpack.c.bf16 %v99_v2, %v96_v1  ;;  %v98_v5 = vld [vmem:[#allocation7 + $0x18] sm:$0xff]  ;;  %v105_v7 = vld [vmem:[#allocation7 + $0x50] sm:$0xff]  ;;  %s5835_s3 = smov [#allocation11]   ;;  %s5836_s22 = smov [#allocation10]  }
  0x4e   :  { %v102_v6 = vld [vmem:[#allocation7 + $0x38] sm:$0xff]  ;;  %v4482_v8 = vpack.c.bf16 %v98_v5, %v95_v3  ;;  %v101_v10 = vld [vmem:[#allocation7 + $0x30] sm:$0xff]  ;;  %v104_v11 = vld [vmem:[#allocation7 + $0x48] sm:$0xff]  ;;  %s3462_s20 = sshll.u32 %s5835_s3, 4  ;;  %s3450_s23 = sshll.u32 %s5836_s22, 4  ;;  %s3463_s20 = int_to_ptr.vmem [resolvable:$true] %s3462_s20  ;;  %s7228_s23 = int_to_ptr.vmem [resolvable:$true] %s3450_s23 }
  0x4f   :  { %v4484_v9 = vpack.c.bf16 %v105_v7, %v102_v6  ;;  %v108_v12 = vld [vmem:[#allocation7 + $0x68] sm:$0xff]  ;;  %4481 = vmatprep.subr.bf16.mxu0 %v4480_v4  ;;  %v111_v13 = vld [vmem:[#allocation7 + $0x80] sm:$0xff]  ;;  %v4486_v14 = vpack.c.bf16 %v104_v11, %v101_v10  ;;  %v110_v17 = vld [vmem:[#allocation7 + $0x78] sm:$0xff]  ;;  %s5768_s24 = scalar_lea.vmem %s3463_s20, 256  ;;  %p5773_p5 = scmp.lt.s32.totalorder %s3463_s20, %s3463_s20 }
  0x50   :  { %4483 = vmatpush1.bf16.msra.mxu0 %v4482_v8  ;;  %v107_v15 = vld [vmem:[#allocation7 + $0x60] sm:$0xff]  ;;  %v4488_v16 = vpack.c.bf16 %v111_v13, %v108_v12  ;;  %v97_v18 = vld [vmem:[#allocation7 + $0x10] sm:$0xff]  ;;  %v100_v19 = vld [vmem:[#allocation7 + $0x28] sm:$0xff]  ;;  %p5769_p4 = scmp.ne.s32.totalorder %s3463_s20, %s5768_s24  ;;  %p5774_p6 = scmp.lt.s32.totalorder %s5768_s24, %s5768_s24 }
  0x51   :  { %4485 = vmatprep.subr.bf16.mxu0 %v4484_v9  ;;  %v114_v20 = vld [vmem:[#allocation7 + $0x98] sm:$0xff]  ;;  %v117_v21 = vld [vmem:[#allocation7 + $0xb0] sm:$0xff]  ;;  %v4512_v22 = vpack.c.bf16 %v100_v19, %v97_v18  ;;  %v103_v23 = vld [vmem:[#allocation7 + $0x40] sm:$0xff]  ;;  %v4490_v25 = vpack.c.bf16 %v110_v17, %v107_v15 }
  0x52   :  { %v106_v24 = vld [vmem:[#allocation7 + $0x58] sm:$0xff]  ;;  %v113_v26 = vld [vmem:[#allocation7 + $0x90] sm:$0xff]  ;;  %v4492_v28 = vpack.c.bf16 %v117_v21, %v114_v20  ;;  %v116_v29 = vld [vmem:[#allocation7 + $0xa8] sm:$0xff]  ;;  %p5775_p7 = por %p5774_p6, %p5773_p5 }
  0x53   :  { %4513 = vmatprep.subr.bf16.mxu1 %v4512_v22  ;;  %v4516_v27 = vpack.c.bf16 %v106_v24, %v103_v23  ;;  %v109_v30 = vld [vmem:[#allocation7 + $0x70] sm:$0xff]  ;;  %v112_v31 = vld [vmem:[#allocation7 + $0x88] sm:$0xff]  ;;  %v123_v33 = vld [vmem:[#allocation7 + $0xe0] sm:$0xff]  ;;  %v4494_v37 = vpack.c.bf16 %v116_v29, %v113_v26 }
  0x54   :  { %4487 = vmatpush1.bf16.msra.mxu0 %v4486_v14  ;;  %4515 = vmatpush3.bf16.msra.mxu1 %v4512_v22  ;;  %v120_v32 = vld [vmem:[#allocation7 + $0xc8] sm:$0xff]  ;;  %v4520_v34 = vpack.c.bf16 %v112_v31, %v109_v30  ;;  %v115_v35 = vld [vmem:[#allocation7 + $0xa0] sm:$0xff]  ;;  %v118_v36 = vld [vmem:[#allocation7 + $0xb8] sm:$0xff]  ;;  %p5776_p8 = pnand %p5775_p7, %p5769_p4 }
  0x55   :  { %4489 = vmatprep.subr.bf16.mxu0 %v4488_v16  ;;  %4517 = vmatprep.subr.bf16.mxu1 %v4516_v27  ;;  %v4496_v38 = vpack.c.bf16 %v123_v33, %v120_v32  ;;  %v119_v39 = vld [vmem:[#allocation7 + $0xc0] sm:$0xff]  ;;  %v122_v40 = vld [vmem:[#allocation7 + $0xd8] sm:$0xff]  ;;  %v129_v42 = vld [vmem:[#allocation7 + $0x110] sm:$0xff]  ;;  %v4524_v43 = vpack.c.bf16 %v118_v36, %v115_v35  ;;  %v7279_v33 = vmov 0.0|0.0  }
  0x56   :  { %v126_v41 = vld [vmem:[#allocation7 + $0xf8] sm:$0xff]  ;;  %v5929_v44 = vld [vmem:[#allocation2] sm:$0xff]  ;;  %v124_v46 = vld [vmem:[#allocation7 + $0xe8] sm:$0xff]  ;;  %v4498_v47 = vpack.c.bf16 %v122_v40, %v119_v39 }
  0x57   :  { %v121_v45 = vld [vmem:[#allocation7 + $0xd0] sm:$0xff]  ;;  %3864 = vmatprep.mubr.f32.mxu1 %v5929_v44  ;;  %v4500_v48 = vpack.c.bf16 %v129_v42, %v126_v41  ;;  %v128_v50 = vld [vmem:[#allocation7 + $0x108] sm:$0xff]  ;;  %v135_v52 = vld [vmem:[#allocation7 + $0x140] sm:$0xff] }
  0x58   :  { %4491 = vmatpush1.bf16.msra.mxu0 %v4490_v25  ;;  %4519 = vmatpush3.bf16.msra.mxu1 %v4516_v27  ;;  %v125_v49 = vld [vmem:[#allocation7 + $0xf0] sm:$0xff]  ;;  %v132_v51 = vld [vmem:[#allocation7 + $0x128] sm:$0xff]  ;;  %v4528_v53 = vpack.c.bf16 %v124_v46, %v121_v45  ;;  %v127_v54 = vld [vmem:[#allocation7 + $0x100] sm:$0xff] }
  0x59   :  { %4493 = vmatprep.subr.bf16.mxu0 %v4492_v28  ;;  %4521 = vmatprep.subr.bf16.mxu1 %v4520_v34  ;;  %v130_v55 = vld [vmem:[#allocation7 + $0x118] sm:$0xff]  ;;  %v4502_v56 = vpack.c.bf16 %v128_v50, %v125_v49  ;;  %v4504_v57 = vpack.c.bf16 %v135_v52, %v132_v51  ;;  %v131_v58 = vld [vmem:[#allocation7 + $0x120] sm:$0xff]  ;;  %v141_v61 = vld [vmem:[#allocation7 + $0x170] sm:$0xff] }
  0x5a   :  { %v134_v59 = vld [vmem:[#allocation7 + $0x138] sm:$0xff]  ;;  %v4532_v62 = vpack.c.bf16 %v130_v55, %v127_v54  ;;  %v133_v63 = vld [vmem:[#allocation7 + $0x130] sm:$0xff]  ;;  %v136_v1 = vld [vmem:[#allocation7 + $0x148] sm:$0xff] }
  0x5b   :  { %v138_v60 = vld [vmem:[#allocation7 + $0x158] sm:$0xff]  ;;  %v4506_v2 = vpack.c.bf16 %v134_v59, %v131_v58  ;;  %v137_v4 = vld [vmem:[#allocation7 + $0x150] sm:$0xff]  ;;  %v140_v5 = vld [vmem:[#allocation7 + $0x168] sm:$0xff]  ;;  %v4536_v8 = vpack.c.bf16 %v136_v1, %v133_v63 }
  0x5c   :  { %4495 = vmatpush1.bf16.msra.mxu0 %v4494_v37  ;;  %4523 = vmatpush3.bf16.msra.mxu1 %v4520_v34  ;;  %v4508_v3 = vpack.c.bf16 %v141_v61, %v138_v60  ;;  %v145_v6 = vld [vmem:[#allocation7 + $0x188] sm:$0xff]  ;;  %v148_v7 = vld [vmem:[#allocation7 + $0x1a0] sm:$0xff]  ;;  %v142_v10 = vld [vmem:[#allocation7 + $0x178] sm:$0xff]  ;;  %v4510_v11 = vpack.c.bf16 %v140_v5, %v137_v4 }
  0x5d   :  { %4497 = vmatprep.subr.bf16.mxu0 %v4496_v38  ;;  %4525 = vmatprep.subr.bf16.mxu1 %v4524_v43  ;;  %v139_v9 = vld [vmem:[#allocation7 + $0x160] sm:$0xff]  ;;  %v5932_v12 = vpack.c.bf16 %v148_v7, %v145_v6  ;;  %v147_v14 = vld [vmem:[#allocation7 + $0x198] sm:$0xff]  ;;  %v154_v16 = vld [vmem:[#allocation7 + $0x1d0] sm:$0xff] }
  0x5e   :  { %v144_v13 = vld [vmem:[#allocation7 + $0x180] sm:$0xff]  ;;  %v151_v15 = vld [vmem:[#allocation7 + $0x1b8] sm:$0xff]  ;;  %v4540_v17 = vpack.c.bf16 %v142_v10, %v139_v9  ;;  %v150_v20 = vld [vmem:[#allocation7 + $0x1b0] sm:$0xff] }
  0x5f   :  { %v5934_v18 = vpack.c.bf16 %v147_v14, %v144_v13  ;;  %v5937_v19 = vpack.c.bf16 %v154_v16, %v151_v15  ;;  %v153_v21 = vld [vmem:[#allocation7 + $0x1c8] sm:$0xff]  ;;  %v160_v23 = vld [vmem:[#allocation7 + $0x200] sm:$0xff]  ;;  %v146_v24 = vld [vmem:[#allocation7 + $0x190] sm:$0xff] }
  0x60   :  { %4499 = vmatpush1.bf16.msra.mxu0 %v4498_v47  ;;  %4527 = vmatpush3.bf16.msra.mxu1 %v4524_v43  ;;  %v157_v22 = vld [vmem:[#allocation7 + $0x1e8] sm:$0xff]  ;;  %v88_v26 = vld [vmem:[#allocation2 + $0x8] sm:$0xff]  ;;  %v5942_v27 = vpack.c.bf16 %v153_v21, %v150_v20  ;;  %v156_v29 = vld [vmem:[#allocation7 + $0x1e0] sm:$0xff] }
  0x61   :  { %4501 = vmatprep.subr.bf16.mxu0 %v4500_v48  ;;  %4529 = vmatprep.subr.bf16.mxu1 %v4528_v53  ;;  %v149_v25 = vld [vmem:[#allocation7 + $0x1a8] sm:$0xff]  ;;  %v5945_v28 = vpack.c.bf16 %v160_v23, %v157_v22  ;;  %v159_v30 = vld [vmem:[#allocation7 + $0x1f8] sm:$0xff]  ;;  %v166_v32 = vld [vmem:[#allocation7 + $0x230] sm:$0xff] }
  0x62   :  { %v163_v31 = vld [vmem:[#allocation7 + $0x218] sm:$0xff]  ;;  %v5948_v34 = vpack.c.bf16 %v149_v25, %v146_v24  ;;  %v152_v35 = vld [vmem:[#allocation7 + $0x1c0] sm:$0xff]  ;;  %v5952_v38 = vpack.c.bf16 %v159_v30, %v156_v29  ;;  %v162_v40 = vld [vmem:[#allocation7 + $0x210] sm:$0xff] }
  0x63   :  { %v155_v36 = vld [vmem:[#allocation7 + $0x1d8] sm:$0xff]  ;;  %v89_v37 = vld [vmem:[#allocation2 + $0x10] sm:$0xff]  ;;  %v5955_v39 = vpack.c.bf16 %v166_v32, %v163_v31  ;;  %v165_v41 = vld [vmem:[#allocation7 + $0x228] sm:$0xff] }
  0x64   :  { %4503 = vmatpush1.bf16.msra.mxu0 %v4502_v56  ;;  %4531 = vmatpush3.bf16.msra.mxu1 %v4528_v53  ;;  %v169_v42 = vld [vmem:[#allocation7 + $0x248] sm:$0xff]  ;;  %v172_v43 = vld [vmem:[#allocation7 + $0x260] sm:$0xff]  ;;  %v158_v45 = vld [vmem:[#allocation7 + $0x1f0] sm:$0xff]  ;;  %v5963_v48 = vpack.c.bf16 %v165_v41, %v162_v40 }
  0x65   :  { %4505 = vmatprep.subr.bf16.mxu0 %v4504_v57  ;;  %4533 = vmatprep.subr.bf16.mxu1 %v4532_v62  ;;  %v161_v46 = vld [vmem:[#allocation7 + $0x208] sm:$0xff]  ;;  %v91_v49 = vld [vmem:[#allocation2 + $0x20] sm:$0xff]  ;;  %v5966_v50 = vpack.c.bf16 %v172_v43, %v169_v42  ;;  %v168_v51 = vld [vmem:[#allocation7 + $0x240] sm:$0xff] }
  0x66   :  { %v90_v47 = vld [vmem:[#allocation2 + $0x18] sm:$0xff]  ;;  %v171_v52 = vld [vmem:[#allocation7 + $0x258] sm:$0xff]  ;;  %v178_v54 = vld [vmem:[#allocation7 + $0x290] sm:$0xff]  ;;  %v5969_v55 = vpack.c.bf16 %v161_v46, %v158_v45 }
  0x67   :  { %v175_v53 = vld [vmem:[#allocation7 + $0x278] sm:$0xff]  ;;  %v93_v56 = vld [vmem:[#allocation2 + $0x30] sm:$0xff]  ;;  %v5974_v59 = vpack.c.bf16 %v171_v52, %v168_v51  ;;  %v177_v63 = vld [vmem:[#allocation7 + $0x288] sm:$0xff] }
  0x68   :  { %4507 = vmatpush1.bf16.msra.mxu0 %v4506_v2  ;;  %4535 = vmatpush3.bf16.msra.mxu1 %v4532_v62  ;;  %v164_v57 = vld [vmem:[#allocation7 + $0x220] sm:$0xff]  ;;  %v167_v58 = vld [vmem:[#allocation7 + $0x238] sm:$0xff]  ;;  %v5977_v61 = vpack.c.bf16 %v178_v54, %v175_v53  ;;  %v174_v62 = vld [vmem:[#allocation7 + $0x270] sm:$0xff] }
  0x69   :  { %4509 = vmatprep.subr.bf16.mxu0 %v4508_v3  ;;  %4537 = vmatprep.subr.bf16.mxu1 %v4536_v8  ;;  %v92_v60 = vld [vmem:[#allocation2 + $0x28] sm:$0xff]  ;;  %v181_v1 = vld [vmem:[#allocation7 + $0x2a8] sm:$0xff]  ;;  %v184_v2 = vld [vmem:[#allocation7 + $0x2c0] sm:$0xff]  ;;  %v5980_v4 = vpack.c.bf16 %v167_v58, %v164_v57  ;;  %v5985_v7 = vpack.c.bf16 %v177_v63, %v174_v62 }
  0x6a   :  { %v94_v3 = vld [vmem:[#allocation2 + $0x38] sm:$0xff]  ;;  %v170_v5 = vld [vmem:[#allocation7 + $0x250] sm:$0xff]  ;;  %v180_v9 = vld [vmem:[#allocation7 + $0x2a0] sm:$0xff] }
  0x6b   :  { %v173_v6 = vld [vmem:[#allocation7 + $0x268] sm:$0xff]  ;;  %v183_v10 = vld [vmem:[#allocation7 + $0x2b8] sm:$0xff]  ;;  %v190_v13 = vld [vmem:[#allocation7 + $0x2f0] sm:$0xff] }
  0x6c   :  { %4511 = vmatpush1.bf16.msra.mxu0 %v4510_v11  ;;  %4539 = vmatpush3.bf16.msra.mxu1 %v4536_v8  ;;  %v5988_v8 = vpack.c.bf16 %v184_v2, %v181_v1  ;;  %v187_v11 = vld [vmem:[#allocation7 + $0x2d8] sm:$0xff]  ;;  %v5991_v14 = vpack.c.bf16 %v173_v6, %v170_v5  ;;  %v176_v15 = vld [vmem:[#allocation7 + $0x280] sm:$0xff]  ;;  %v186_v21 = vld [vmem:[#allocation7 + $0x2d0] sm:$0xff] }
  0x6d   :  { %4545 = vmatprep.subr.bf16.mxu0 %v5932_v12  ;;  %4541 = vmatprep.subr.bf16.mxu1 %v4540_v17  ;;  %v179_v16 = vld [vmem:[#allocation7 + $0x298] sm:$0xff]  ;;  %v6001_v20 = vpack.c.bf16 %v190_v13, %v187_v11  ;;  %v189_v22 = vld [vmem:[#allocation7 + $0x2e8] sm:$0xff]  ;;  %v182_v24 = vld [vmem:[#allocation7 + $0x2b0] sm:$0xff] }
  0x6e   :  { %v6004_v23 = vpack.c.bf16 %v179_v16, %v176_v15  ;;  %v185_v25 = vld [vmem:[#allocation7 + $0x2c8] sm:$0xff]  ;;  %v188_v30 = vld [vmem:[#allocation7 + $0x2e0] sm:$0xff]  ;;  %v191_v31 = vld [vmem:[#allocation7 + $0x2f8] sm:$0xff] }
  0x6f   :  { %273 = vmatmul.mubr.f32.vlgmr.msra.gmra.mrb[0].mxu0 %v5929_v44  ;;  %v5958_v44 = vpack.c.bf16 %v155_v36, %v152_v35  ;;  %v6013_v29 = vpack.c.bf16 %v185_v25, %v182_v24  ;;  %v6018_v32 = vld [vmem:[#allocation5] sm:$0xff]  ;;  %v6022_v35 = vpack.c.bf16 %v191_v31, %v188_v30  ;;  %v76_v36 = vlaneseq  ;;  %v192_v41 = vld [vmem:[#allocation8] sm:$0xff]  ;;  %v193_v45 = vld [vmem:[#allocation8 + $0x8] sm:$0xff] }
  0x70   :  { %4547 = vmatpush1.bf16.msra.mxu0 %v5934_v18  ;;  %278 = vmatprep.mubr.f32.mxu0 %v7277_v0  ;;  %v194_v43 = vld [vmem:[#allocation8 + $0x10] sm:$0xff] }
  0x71   :  { %4549 = vmatprep.subr.bf16.mxu0 %v5937_v19  ;;  %4543 = vmatpush3.bf16.msra.mxu1 %v4540_v17  ;;  %v5998_v17 = vpack.c.bf16 %v183_v10, %v180_v9  ;;  %v6077_v53 = vand.u32 127, %v76_v36 }
  0x72   :  { %4576 = vmatprep.subr.bf16.mxu1 %v7279_v33 }
  0x73   :  { %279 = vmatmul.mubr.f32.gmra.mrb[2].mxu0 %v88_v26  ;;  %7293 = vst [vmem:[#allocation19_spill] sm:$0xff] %v6077_v53  ;;  %v79_v1 = vadd.s32 128, %v6077_v53  ;;  %v80_v2 = vadd.s32 256, %v6077_v53  ;;  %vm78_vm1 = vcmp.lt.s32.totalorder %v6077_v53, 32 }
  0x74   :  { %4551 = vmatpush1.bf16.msra.mxu0 %v5942_v27  ;;  %284 = vmatprep.mubr.f32.mxu0 %v7277_v0 }
  0x75   :  { %4553 = vmatprep.subr.bf16.mxu0 %v5945_v28  ;;  %3865 = vmatmul.mubr.f32.vlgmr.msra.gmra.mrb[0].mxu1 %v88_v26  ;;  %v6009_v26 = vpack.c.bf16 %v189_v22, %v186_v21  ;;  %v82_v16 = vand.u32 127, %v79_v1  ;;  %v83_v21 = vand.u32 127, %v80_v2 }
  0x76   :  { %3867 = vmatprep.mubr.f32.mxu1 %v89_v37  ;;  %4578 = vmatpush3.bf16.msra.mxu1 %v5948_v34 }
  0x77   :  { %285 = vmatmul.mubr.f32.gmra.mrb[4].mxu0 %v89_v37  ;;  %4579 = vmatprep.subr.bf16.mxu1 %v7279_v33  ;;  %v197_v37 = vshrl.u32 %v76_v36, 7  ;;  %vm6104_vm2 = vcmp.lt.s32.totalorder %v82_v16, 32  ;;  %vm6108_vm3 = vcmp.lt.s32.totalorder %v83_v21, 32 }
  0x78   :  { %4555 = vmatpush1.bf16.msra.mxu0 %v5952_v38  ;;  %290 = vmatprep.mubr.f32.mxu0 %v7277_v0 }
  0x79   :  { %4557 = vmatprep.subr.bf16.mxu0 %v5955_v39  ;;  %3868 = vmatmul.mubr.f32.gmra.mrb[2].mxu1 %v90_v47  ;;  %v6064_v40 = vsub.s32 0, %v197_v37 }
  0x7a   :  { %3870 = vmatprep.mubr.f32.mxu1 %v91_v49  ;;  %4581 = vmatpush3.bf16.msra.mxu1 %v5958_v44 }
  0x7b   :  { %291 = vmatmul.mubr.f32.gmra.mrb[6].mxu0 %v90_v47  ;;  %4582 = vmatprep.subr.bf16.mxu1 %v7279_v33  ;;  %7292 = vst [vmem:[#allocation18_spill] sm:$0xff] %v6064_v40  ;;  %v6071_v47 = vrot.slane %v192_v41, %v6064_v40  ;;  %v6075_v51 = vrot.slane %v193_v45, %v6064_v40 }
  0x7c   :  { %4559 = vmatpush1.bf16.msra.mxu0 %v5963_v48  ;;  %296 = vmatprep.mubr.f32.mxu0 %v7277_v0 }
  0x7d   :  { %4561 = vmatprep.subr.bf16.mxu0 %v5966_v50  ;;  %3871 = vmatmul.mubr.f32.gmra.mrb[4].mxu1 %v92_v60 }
  0x7e   :  { %3873 = vmatprep.mubr.f32.mxu1 %v93_v56  ;;  %4584 = vmatpush3.bf16.msra.mxu1 %v5969_v55 }
  0x7f   :  { %297 = vmatmul.mubr.f32.gmra.mrb[8].mxu0 %v91_v49  ;;  %4585 = vmatprep.subr.bf16.mxu1 %v7279_v33  ;;  %v207_v49 = vrot.slane %v194_v43, %v6064_v40 }
  0x80   :  { %4563 = vmatpush1.bf16.msra.mxu0 %v5974_v59  ;;  %302 = vmatprep.mubr.f32.mxu0 %v7277_v0 }
  0x81   :  { %4565 = vmatprep.subr.bf16.mxu0 %v5977_v61  ;;  %3874 = vmatmul.mubr.f32.gmra.mrb[6].mxu1 %v94_v3 }
  0x82   :  { %4587 = vmatpush3.bf16.msra.mxu1 %v5980_v4  ;;  %3908 = vmatprep.mubr.msk.f32.mxu1 %vm5834_vm0, %v7277_v0 }
  0x83   :  { %303 = vmatmul.mubr.f32.gmra.mrb[10].mxu0 %v92_v60  ;;  %4588 = vmatprep.subr.bf16.mxu1 %v7279_v33 }
  0x84   :  { %4567 = vmatpush1.bf16.msra.mxu0 %v5985_v7  ;;  %308 = vmatprep.mubr.f32.mxu0 %v7277_v0 }
  0x85   :  { %4569 = vmatprep.subr.bf16.mxu0 %v5988_v8 }
  0x86   :  { %4590 = vmatpush3.bf16.msra.mxu1 %v5991_v14 }
  0x87   :  { %309 = vmatmul.mubr.f32.gmra.mrb[12].mxu0 %v93_v56  ;;  %4591 = vmatprep.subr.bf16.mxu1 %v7279_v33 }
  0x88   :  { %4571 = vmatpush1.bf16.msra.mxu0 %v5998_v17  ;;  %314 = vmatprep.mubr.f32.mxu0 %v7277_v0 }
  0x89   :  { %4573 = vmatprep.subr.bf16.mxu0 %v6001_v20 }
  0x8a   :  { %4593 = vmatpush3.bf16.msra.mxu1 %v6004_v23 }
  0x8b   :  { %315 = vmatmul.mubr.f32.gmra.mrb[14].mxu0 %v94_v3  ;;  %4594 = vmatprep.subr.bf16.mxu1 %v7279_v33 }
  0x8c   :  { %4575 = vmatpush1.bf16.msra.mxu0 %v6009_v26  ;;  %515 = vmatprep.mubr.f32.mxu0 %v7277_v0 }
  0x8d   :  { %4601 = vmatprep.subr.bf16.mxu0 %v5932_v12 }
  0x8e   :  { %4596 = vmatpush3.bf16.msra.mxu1 %v6013_v29 }
  0x8f   :  { %516 = vmatmul.mubr.f32.vlgmr.msra.gmra.mrb[16].mxu0 %v6018_v32  ;;  %4597 = vmatprep.subr.bf16.mxu1 %v7279_v33 }
  0x90   :  { %4603 = vmatpush1.bf16.msra.mxu0 %v5934_v18  ;;  %678 = vmatprep.mubr.f32.mxu0 %v7277_v0 }
  0x91   :  { %4605 = vmatprep.subr.bf16.mxu0 %v5937_v19 }
  0x92   :  { %4599 = vmatpush3.bf16.msra.mxu1 %v6022_v35 }
  0x93   :  { %4632 = vmatprep.subr.bf16.mxu1 %v7279_v33 }
  0x94   :  { %4607 = vmatpush1.bf16.msra.mxu0 %v5942_v27 }
  0x95   :  { %3909 = vmatmul.mubr.f32.vlgmr.msra.gmra.mrb[8].mxu1 %v6018_v32  ;;  %4609 = vmatprep.subr.bf16.mxu0 %v5945_v28 }
  0x96   :  { %4634 = vmatpush3.bf16.msra.mxu1 %v5948_v34  ;;  %3943 = vmatprep.mubr.msk.f32.mxu1 %vm5834_vm0, %v7277_v0 }
  0x97   :  { %4635 = vmatprep.subr.bf16.mxu1 %v7279_v33 }
  0x98   :  { %4611 = vmatpush1.bf16.msra.mxu0 %v5952_v38 }
  0x99   :  { %4613 = vmatprep.subr.bf16.mxu0 %v5955_v39 }
  0x9a   :  { %4637 = vmatpush3.bf16.msra.mxu1 %v5958_v44 }
  0x9b   :  { %4638 = vmatprep.subr.bf16.mxu1 %v7279_v33 }
  0x9c   :  { %4615 = vmatpush1.bf16.msra.mxu0 %v5963_v48 }
  0x9d   :  { %4617 = vmatprep.subr.bf16.mxu0 %v5966_v50 }
  0x9e   :  { %4640 = vmatpush3.bf16.msra.mxu1 %v5969_v55 }
  0x9f   :  { %4641 = vmatprep.subr.bf16.mxu1 %v7279_v33 }
  0xa0   :  { %4619 = vmatpush1.bf16.msra.mxu0 %v5974_v59 }
  0xa1   :  { %4621 = vmatprep.subr.bf16.mxu0 %v5977_v61 }
  0xa2   :  { %4643 = vmatpush3.bf16.msra.mxu1 %v5980_v4 }
  0xa3   :  { %4644 = vmatprep.subr.bf16.mxu1 %v7279_v33 }
  0xa4   :  { %4623 = vmatpush1.bf16.msra.mxu0 %v5985_v7 }
  0xa5   :  { %4625 = vmatprep.subr.bf16.mxu0 %v5988_v8 }
  0xa6   :  { %4646 = vmatpush3.bf16.msra.mxu1 %v5991_v14 }
  0xa7   :  { %4647 = vmatprep.subr.bf16.mxu1 %v7279_v33 }
  0xa8   :  { %4627 = vmatpush1.bf16.msra.mxu0 %v5998_v17 }
  0xa9   :  { %4629 = vmatprep.subr.bf16.mxu0 %v6001_v20 }
  0xaa   :  { %4649 = vmatpush3.bf16.msra.mxu1 %v6004_v23 }
  0xab   :  { %4650 = vmatprep.subr.bf16.mxu1 %v7279_v33 }
  0xac   :  { %4631 = vmatpush1.bf16.msra.mxu0 %v6009_v26 }
  0xad   :  { %4657 = vmatprep.subr.bf16.mxu0 %v5932_v12 }
  0xae   :  { %4652 = vmatpush3.bf16.msra.mxu1 %v6013_v29 }
  0xaf   :  { %4653 = vmatprep.subr.bf16.mxu1 %v7279_v33 }
  0xb2   :  { %4655 = vmatpush3.bf16.msra.mxu1 %v6022_v35 }
  0xb3   :  { %4688 = vmatprep.subr.bf16.mxu1 %v7279_v33 }
 0x142   :  { %v6066_v42 = vpop.f32.mrb[0].mxu0 }
 0x143   :  { %v6068_v46 = vpop.f32.mrb[1].mxu0 }
 0x146   :  { %v280_v52 = vpop.f32.mrb[2].mxu0 }
 0x147   :  { %v6080_v54 = vadd.f32 %v280_v52, %v6071_v47  ;;  %v282_v56 = vpop.f32.mrb[3].mxu0 }
 0x148   :  { %v6083_v57 = vadd.f32 %v282_v56, %v6075_v51  ;;  %v3866_v58 = vpop.f32.mrb[0].mxu1 }
 0x149   :  { %v6085_v60 = vadd.f32 %v3866_v58, %v207_v49  ;;  %v387_v62 = vpop.f32.mrb[1].mxu1 }
 0x14a   :  { %v286_v63 = vpop.f32.mrb[4].mxu0  ;;  %v6115_v58 = vadd.f32 %v387_v62, %v207_v49 }
 0x14b   :  { %v287_v3 = vadd.f32 %v286_v63, %v6071_v47  ;;  %v288_v5 = vpop.f32.mrb[5].mxu0 }
 0x14c   :  { %v6091_v6 = vadd.f32 %v288_v5, %v6075_v51  ;;  %v3869_v9 = vpop.f32.mrb[2].mxu1  ;;  %7298 = vst [vmem:[#allocation20_spill] sm:$0xff] %v6115_v58 }
 0x14d   :  { %v6093_v10 = vadd.f32 %v3869_v9, %v207_v49  ;;  %v397_v11 = vpop.f32.mrb[3].mxu1 }
 0x14e   :  { %v292_v13 = vpop.f32.mrb[6].mxu0  ;;  %v6095_v15 = vadd.f32 %v397_v11, %v207_v49 }
 0x14f   :  { %v293_v22 = vadd.f32 %v292_v13, %v6071_v47  ;;  %v294_v24 = vpop.f32.mrb[7].mxu0 }
 0x150   :  { %v6099_v25 = vadd.f32 %v294_v24, %v6075_v51  ;;  %v3872_v30 = vpop.f32.mrb[4].mxu1 }
 0x151   :  { %v6101_v31 = vadd.f32 %v3872_v30, %v207_v49  ;;  %v407_v36 = vpop.f32.mrb[5].mxu1 }
 0x152   :  { %v298_v37 = vpop.f32.mrb[8].mxu0  ;;  %v6112_v45 = vadd.f32 %v407_v36, %v207_v49 }
 0x153   :  { %v299_v52 = vadd.f32 %v298_v37, %v6071_v47  ;;  %v300_v56 = vpop.f32.mrb[9].mxu0  ;;  %v275_v37 = vadd.f32 %v6066_v42, %v6071_v47 }
 0x154   :  { %v6126_v2 = vadd.f32 %v300_v56, %v6075_v51  ;;  %v3875_v9 = vpop.f32.mrb[6].mxu1 }
 0x155   :  { %v6136_v11 = vadd.f32 %v3875_v9, %v207_v49  ;;  %v417_v13 = vpop.f32.mrb[7].mxu1  ;;  %v6140_v16 = vsel %vm78_vm1, %v293_v22, %v299_v52  ;;  %v6144_v21 = vsel %vm78_vm1, %v299_v52, %v293_v22 }
 0x156   :  { %v304_v24 = vpop.f32.mrb[10].mxu0  ;;  %v6146_v30 = vadd.f32 %v417_v13, %v207_v49 }
 0x157   :  { %7299 = vst [vmem:[#allocation21_spill] sm:$0xff] %v6136_v11  ;;  %v305_v56 = vadd.f32 %v304_v24, %v6071_v47  ;;  %v306_v9 = vpop.f32.mrb[11].mxu0  ;;  %v428_v22 = vsel %vm6108_vm3, %v6115_v58, %v6136_v11  ;;  %v6238_v11 = vld [vmem:[#allocation8 + $0x18] sm:$0xff] }
 0x158   :  { %v6166_v52 = vadd.f32 %v306_v9, %v6075_v51 }
 0x159   :  { %v6178_v1 = vsel %vm78_vm1, %v287_v3, %v305_v56  ;;  %v6182_v49 = vsel %vm78_vm1, %v305_v56, %v287_v3 }
 0x15a   :  { %7300 = vst [vmem:[#allocation22_spill] sm:$0xff] %v6182_v49  ;;  %v310_v9 = vpop.f32.mrb[12].mxu0 }
 0x15b   :  { %v311_v24 = vadd.f32 %v310_v9, %v6071_v47  ;;  %v312_v5 = vpop.f32.mrb[13].mxu0 }
 0x15c   :  { %v6194_v36 = vadd.f32 %v312_v5, %v6075_v51 }
 0x15d   :  { %v6199_v3 = vsel %vm78_vm1, %v6080_v54, %v311_v24  ;;  %v6204_v56 = vsel %vm78_vm1, %v311_v24, %v6080_v54  ;;  %v6219_v54 = vadd.f32 %v6068_v46, %v6075_v51 }
 0x15e   :  { %7301 = vst [vmem:[#allocation23_spill] sm:$0xff] %v6204_v56  ;;  %v316_v63 = vpop.f32.mrb[14].mxu0 }
 0x15f   :  { %v317_v62 = vadd.f32 %v316_v63, %v6071_v47  ;;  %v318_v13 = vpop.f32.mrb[15].mxu0 }
 0x160   :  { %v6222_v24 = vadd.f32 %v318_v13, %v6075_v51 }
 0x161   :  { %v426_v9 = vsel %vm78_vm1, %v275_v37, %v317_v62  ;;  %v6228_v0 = vsel %vm78_vm1, %v317_v62, %v275_v37 }
 0x162   :  { %7302 = vst [vmem:[#allocation24_spill] sm:$0xff] %v6228_v0  ;;  %v517_v5 = vpop.f32.mrb[16].mxu0  ;;  %v427_v42 = vsel %vm6104_vm2, %v6219_v54, %v6222_v24  ;;  %v448_v46 = vsel %vm6104_vm2, %v6222_v24, %v6219_v54 }
 0x163   :  { %v592_v47 = vadd.f32 %v517_v5, %v426_v9  ;;  %v519_v51 = vpop.f32.mrb[17].mxu0 }
 0x164   :  { %v599_v63 = vadd.f32 %v519_v51, %v427_v42 }
 0x165   :  { %v3480_v13 = vmul.f32 -1.442695, %v592_v47 }
 0x166   :  { %v3481_v62 = vmul.f32 -1.442695, %v599_v63 }
 0x167   :  { %5519 = vpow2.f32 %v3480_v13 }
 0x168   :  { %v588_v33 = vpop.f32.mrb[8].mxu1  ;;  %5521 = vpow2.f32 %v3481_v62 }
 0x169   :  { %v3910_v40 = vpop.f32.mrb[9].mxu1  ;;  %v606_v56 = vadd.f32 %v588_v33, %v6238_v11  ;;  %v7304_v33 = vmov 0.0  }
 0x171   :  { %v5520_v37 = vpop.eup %5519 }
 0x172   :  { %v596_v53 = vadd.f32 1.0, %v5520_v37  ;;  %v5522_v58 = vpop.eup %5521 }
 0x173   :  { %v603_v0 = vadd.f32 1.0, %v5522_v58 }
 0x174   :  { %5523 = vrcp.f32 %v596_v53 }
 0x175   :  { %5525 = vrcp.f32 %v603_v0  ;;  %v7303_v0 = vmov 0.0|0.0  }
 0x17e   :  { %v5524_v49 = vpop.eup %5523 }
 0x17f   :  { %v607_v9 = vmul.f32 %v5524_v49, %v606_v56  ;;  %v5526_v42 = vpop.eup %5525  ;;  %v7305_v56 = vsel %vm6104_vm2, %v6083_v57, %v6194_v36 }
 0x180   :  { %v610_v47 = vsub.f32 1.0, %v5526_v42  ;;  %v612_v63 = vmul.f32 %v5526_v42, %v6018_v32 }
 0x181   :  { %v608_v5 = vadd.f32 %v607_v9, %v428_v22 }
 0x183   :  { %5527 = vtanh.f32 %v608_v5 }
 0x18d   :  { %v5528_v51 = vpop.eup %5527 }
 0x18e   :  { %v611_v40 = vmul.f32 %v5528_v51, %v610_v47 }
 0x190   :  { %v6242_v13 = vadd.f32 %v612_v63, %v611_v40 }
 0x192   :  { %679 = vmatmul.mubr.f32.vlgmr.msra.gmra.mrb[18].mxu0 %v6242_v13  ;;  %3944 = vmatmul.mubr.f32.vlgmr.msra.gmra.mrb[10].mxu1 %v6242_v13 }
 0x193   :  { %4659 = vmatpush1.bf16.msra.mxu0 %v5934_v18  ;;  %4690 = vmatpush3.bf16.msra.mxu1 %v5948_v34 }
 0x194   :  { %4661 = vmatprep.subr.bf16.mxu0 %v5937_v19  ;;  %4691 = vmatprep.subr.bf16.mxu1 %v7303_v0 }
 0x195   :  { %841 = vmatprep.mubr.f32.mxu0 %v7304_v33  ;;  %3978 = vmatprep.mubr.msk.f32.mxu1 %vm5834_vm0, %v7304_v33 }
 0x197   :  { %4663 = vmatpush1.bf16.msra.mxu0 %v5942_v27  ;;  %4693 = vmatpush3.bf16.msra.mxu1 %v5958_v44 }
 0x198   :  { %4665 = vmatprep.subr.bf16.mxu0 %v5945_v28  ;;  %4694 = vmatprep.subr.bf16.mxu1 %v7303_v0 }
 0x19b   :  { %4667 = vmatpush1.bf16.msra.mxu0 %v5952_v38  ;;  %4696 = vmatpush3.bf16.msra.mxu1 %v5969_v55 }
 0x19c   :  { %4669 = vmatprep.subr.bf16.mxu0 %v5955_v39  ;;  %4697 = vmatprep.subr.bf16.mxu1 %v7303_v0 }
 0x19f   :  { %4671 = vmatpush1.bf16.msra.mxu0 %v5963_v48  ;;  %4699 = vmatpush3.bf16.msra.mxu1 %v5980_v4 }
 0x1a0   :  { %4673 = vmatprep.subr.bf16.mxu0 %v5966_v50  ;;  %4700 = vmatprep.subr.bf16.mxu1 %v7303_v0 }
 0x1a3   :  { %4675 = vmatpush1.bf16.msra.mxu0 %v5974_v59  ;;  %4702 = vmatpush3.bf16.msra.mxu1 %v5991_v14 }
 0x1a4   :  { %4677 = vmatprep.subr.bf16.mxu0 %v5977_v61  ;;  %4703 = vmatprep.subr.bf16.mxu1 %v7303_v0 }
 0x1a7   :  { %4679 = vmatpush1.bf16.msra.mxu0 %v5985_v7  ;;  %4705 = vmatpush3.bf16.msra.mxu1 %v6004_v23 }
 0x1a8   :  { %4681 = vmatprep.subr.bf16.mxu0 %v5988_v8  ;;  %4706 = vmatprep.subr.bf16.mxu1 %v7303_v0 }
 0x1ab   :  { %4683 = vmatpush1.bf16.msra.mxu0 %v5998_v17  ;;  %4708 = vmatpush3.bf16.msra.mxu1 %v6013_v29 }
 0x1ac   :  { %4685 = vmatprep.subr.bf16.mxu0 %v6001_v20  ;;  %4709 = vmatprep.subr.bf16.mxu1 %v7303_v0 }
 0x1af   :  { %4687 = vmatpush1.bf16.msra.mxu0 %v6009_v26  ;;  %4711 = vmatpush3.bf16.msra.mxu1 %v6022_v35 }
 0x1b0   :  { %4713 = vmatprep.subr.bf16.mxu0 %v5932_v12  ;;  %4744 = vmatprep.subr.bf16.mxu1 %v7303_v0 }
 0x265   :  { %v680_v32 = vpop.f32.mrb[18].mxu0  ;;  %v751_v53 = vpop.f32.mrb[10].mxu1 }
 0x266   :  { %v755_v58 = vadd.f32 %v680_v32, %v6199_v3  ;;  %v682_v22 = vpop.f32.mrb[19].mxu0  ;;  %v3945_v49 = vpop.f32.mrb[11].mxu1  ;;  %v769_v40 = vadd.f32 %v751_v53, %v6238_v11  ;;  %v7306_v32 = vsel %vm6108_vm3, %v6085_v60, %v6146_v30 }
 0x267   :  { %v762_v62 = vadd.f32 %v682_v22, %v7305_v56 }
 0x268   :  { %v3482_v37 = vmul.f32 -1.442695, %v755_v58 }
 0x269   :  { %v3483_v9 = vmul.f32 -1.442695, %v762_v62 }
 0x26a   :  { %5529 = vpow2.f32 %v3482_v37 }
 0x26b   :  { %5531 = vpow2.f32 %v3483_v9 }
 0x274   :  { %v5530_v5 = vpop.eup %5529 }
 0x275   :  { %v759_v42 = vadd.f32 1.0, %v5530_v5  ;;  %v5532_v47 = vpop.eup %5531 }
 0x276   :  { %v766_v51 = vadd.f32 1.0, %v5532_v47 }
 0x277   :  { %5533 = vrcp.f32 %v759_v42 }
 0x278   :  { %5535 = vrcp.f32 %v766_v51 }
 0x281   :  { %v5534_v3 = vpop.eup %5533 }
 0x282   :  { %v770_v63 = vmul.f32 %v5534_v3, %v769_v40  ;;  %v5536_v58 = vpop.eup %5535  ;;  %v7307_v40 = vsel %vm6104_vm2, %v6091_v6, %v6166_v52 }
 0x283   :  { %v773_v49 = vsub.f32 1.0, %v5536_v58  ;;  %v775_v37 = vmul.f32 %v5536_v58, %v6242_v13 }
 0x284   :  { %v771_v22 = vadd.f32 %v770_v63, %v7306_v32 }
 0x286   :  { %5537 = vtanh.f32 %v771_v22 }
 0x290   :  { %v5538_v56 = vpop.eup %5537 }
 0x291   :  { %v774_v62 = vmul.f32 %v5538_v56, %v773_v49 }
 0x293   :  { %v6294_v9 = vadd.f32 %v775_v37, %v774_v62 }
 0x295   :  { %842 = vmatmul.mubr.f32.vlgmr.msra.gmra.mrb[20].mxu0 %v6294_v9  ;;  %3979 = vmatmul.mubr.f32.vlgmr.msra.gmra.mrb[12].mxu1 %v6294_v9 }
 0x296   :  { %4715 = vmatpush1.bf16.msra.mxu0 %v5934_v18  ;;  %4746 = vmatpush3.bf16.msra.mxu1 %v5948_v34 }
 0x297   :  { %4717 = vmatprep.subr.bf16.mxu0 %v5937_v19  ;;  %4747 = vmatprep.subr.bf16.mxu1 %v7303_v0 }
 0x298   :  { %1004 = vmatprep.mubr.f32.mxu0 %v7304_v33  ;;  %4013 = vmatprep.mubr.msk.f32.mxu1 %vm5834_vm0, %v7304_v33 }
 0x29a   :  { %4719 = vmatpush1.bf16.msra.mxu0 %v5942_v27  ;;  %4749 = vmatpush3.bf16.msra.mxu1 %v5958_v44 }
 0x29b   :  { %4721 = vmatprep.subr.bf16.mxu0 %v5945_v28  ;;  %4750 = vmatprep.subr.bf16.mxu1 %v7303_v0 }
 0x29e   :  { %4723 = vmatpush1.bf16.msra.mxu0 %v5952_v38  ;;  %4752 = vmatpush3.bf16.msra.mxu1 %v5969_v55 }
 0x29f   :  { %4725 = vmatprep.subr.bf16.mxu0 %v5955_v39  ;;  %4753 = vmatprep.subr.bf16.mxu1 %v7303_v0 }
 0x2a2   :  { %4727 = vmatpush1.bf16.msra.mxu0 %v5963_v48  ;;  %4755 = vmatpush3.bf16.msra.mxu1 %v5980_v4 }
 0x2a3   :  { %4729 = vmatprep.subr.bf16.mxu0 %v5966_v50  ;;  %4756 = vmatprep.subr.bf16.mxu1 %v7303_v0 }
 0x2a6   :  { %4731 = vmatpush1.bf16.msra.mxu0 %v5974_v59  ;;  %4758 = vmatpush3.bf16.msra.mxu1 %v5991_v14 }
 0x2a7   :  { %4733 = vmatprep.subr.bf16.mxu0 %v5977_v61  ;;  %4759 = vmatprep.subr.bf16.mxu1 %v7303_v0 }
 0x2aa   :  { %4735 = vmatpush1.bf16.msra.mxu0 %v5985_v7  ;;  %4761 = vmatpush3.bf16.msra.mxu1 %v6004_v23 }
 0x2ab   :  { %4737 = vmatprep.subr.bf16.mxu0 %v5988_v8  ;;  %4762 = vmatprep.subr.bf16.mxu1 %v7303_v0 }
 0x2ae   :  { %4739 = vmatpush1.bf16.msra.mxu0 %v5998_v17  ;;  %4764 = vmatpush3.bf16.msra.mxu1 %v6013_v29 }
 0x2af   :  { %4741 = vmatprep.subr.bf16.mxu0 %v6001_v20  ;;  %4765 = vmatprep.subr.bf16.mxu1 %v7303_v0 }
 0x2b2   :  { %4743 = vmatpush1.bf16.msra.mxu0 %v6009_v26  ;;  %4767 = vmatpush3.bf16.msra.mxu1 %v6022_v35 }
 0x2b3   :  { %4769 = vmatprep.subr.bf16.mxu0 %v5932_v12  ;;  %4800 = vmatprep.subr.bf16.mxu1 %v7303_v0 }
 0x368   :  { %v843_v53 = vpop.f32.mrb[20].mxu0  ;;  %v914_v5 = vpop.f32.mrb[12].mxu1 }
 0x369   :  { %v918_v42 = vadd.f32 %v843_v53, %v6178_v1  ;;  %v845_v47 = vpop.f32.mrb[21].mxu0  ;;  %v3980_v51 = vpop.f32.mrb[13].mxu1  ;;  %v932_v62 = vadd.f32 %v914_v5, %v6238_v11  ;;  %v7308_v53 = vsel %vm6108_vm3, %v6095_v15, %v6101_v31 }
 0x36a   :  { %v925_v3 = vadd.f32 %v845_v47, %v7307_v40 }
 0x36b   :  { %v3484_v63 = vmul.f32 -1.442695, %v918_v42 }
 0x36c   :  { %v3485_v32 = vmul.f32 -1.442695, %v925_v3 }
 0x36d   :  { %5539 = vpow2.f32 %v3484_v63 }
 0x36e   :  { %5541 = vpow2.f32 %v3485_v32 }
 0x377   :  { %v5540_v22 = vpop.eup %5539 }
 0x378   :  { %v922_v58 = vadd.f32 1.0, %v5540_v22  ;;  %v5542_v49 = vpop.eup %5541 }
 0x379   :  { %v929_v56 = vadd.f32 1.0, %v5542_v49 }
 0x37a   :  { %5543 = vrcp.f32 %v922_v58 }
 0x37b   :  { %5545 = vrcp.f32 %v929_v56 }
 0x384   :  { %v5544_v1 = vpop.eup %5543 }
 0x385   :  { %v933_v37 = vmul.f32 %v5544_v1, %v932_v62  ;;  %v5546_v42 = vpop.eup %5545  ;;  %v7309_v62 = vsel %vm6104_vm2, %v6099_v25, %v6126_v2 }
 0x386   :  { %v936_v51 = vsub.f32 1.0, %v5546_v42  ;;  %v938_v63 = vmul.f32 %v5546_v42, %v6294_v9 }
 0x387   :  { %v934_v47 = vadd.f32 %v933_v37, %v7308_v53 }
 0x389   :  { %5547 = vtanh.f32 %v934_v47 }
 0x393   :  { %v5548_v40 = vpop.eup %5547 }
 0x394   :  { %v937_v3 = vmul.f32 %v5548_v40, %v936_v51 }
 0x396   :  { %v6346_v32 = vadd.f32 %v938_v63, %v937_v3 }
 0x398   :  { %1005 = vmatmul.mubr.f32.vlgmr.msra.gmra.mrb[22].mxu0 %v6346_v32  ;;  %4014 = vmatmul.mubr.f32.vlgmr.msra.gmra.mrb[14].mxu1 %v6346_v32 }
 0x399   :  { %4771 = vmatpush1.bf16.msra.mxu0 %v5934_v18  ;;  %4802 = vmatpush3.bf16.msra.mxu1 %v5948_v34 }
 0x39a   :  { %4773 = vmatprep.subr.bf16.mxu0 %v5937_v19  ;;  %4803 = vmatprep.subr.bf16.mxu1 %v7303_v0 }
 0x39b   :  { %1167 = vmatprep.mubr.f32.mxu0 %v7304_v33  ;;  %4048 = vmatprep.mubr.msk.f32.mxu1 %vm5834_vm0, %v7304_v33 }
 0x39d   :  { %4775 = vmatpush1.bf16.msra.mxu0 %v5942_v27  ;;  %4805 = vmatpush3.bf16.msra.mxu1 %v5958_v44 }
 0x39e   :  { %4777 = vmatprep.subr.bf16.mxu0 %v5945_v28  ;;  %4806 = vmatprep.subr.bf16.mxu1 %v7303_v0 }
 0x3a1   :  { %4779 = vmatpush1.bf16.msra.mxu0 %v5952_v38  ;;  %4808 = vmatpush3.bf16.msra.mxu1 %v5969_v55 }
 0x3a2   :  { %4781 = vmatprep.subr.bf16.mxu0 %v5955_v39  ;;  %4809 = vmatprep.subr.bf16.mxu1 %v7303_v0 }
 0x3a5   :  { %4783 = vmatpush1.bf16.msra.mxu0 %v5963_v48  ;;  %4811 = vmatpush3.bf16.msra.mxu1 %v5980_v4 }
 0x3a6   :  { %4785 = vmatprep.subr.bf16.mxu0 %v5966_v50  ;;  %4812 = vmatprep.subr.bf16.mxu1 %v7303_v0 }
 0x3a9   :  { %4787 = vmatpush1.bf16.msra.mxu0 %v5974_v59  ;;  %4814 = vmatpush3.bf16.msra.mxu1 %v5991_v14 }
 0x3aa   :  { %4789 = vmatprep.subr.bf16.mxu0 %v5977_v61  ;;  %4815 = vmatprep.subr.bf16.mxu1 %v7303_v0 }
 0x3ad   :  { %4791 = vmatpush1.bf16.msra.mxu0 %v5985_v7  ;;  %4817 = vmatpush3.bf16.msra.mxu1 %v6004_v23 }
 0x3ae   :  { %4793 = vmatprep.subr.bf16.mxu0 %v5988_v8  ;;  %4818 = vmatprep.subr.bf16.mxu1 %v7303_v0 }
 0x3b1   :  { %4795 = vmatpush1.bf16.msra.mxu0 %v5998_v17  ;;  %4820 = vmatpush3.bf16.msra.mxu1 %v6013_v29 }
 0x3b2   :  { %4797 = vmatprep.subr.bf16.mxu0 %v6001_v20  ;;  %4821 = vmatprep.subr.bf16.mxu1 %v7303_v0 }
 0x3b5   :  { %4799 = vmatpush1.bf16.msra.mxu0 %v6009_v26  ;;  %4823 = vmatpush3.bf16.msra.mxu1 %v6022_v35 }
 0x3b6   :  { %4825 = vmatprep.subr.bf16.mxu0 %v5932_v12  ;;  %4856 = vmatprep.subr.bf16.mxu1 %v7303_v0 }
 0x46b   :  { %v1006_v5 = vpop.f32.mrb[22].mxu0  ;;  %v1077_v22 = vpop.f32.mrb[14].mxu1 }
 0x46c   :  { %v1081_v58 = vadd.f32 %v1006_v5, %v6140_v16  ;;  %v1008_v49 = vpop.f32.mrb[23].mxu0  ;;  %v4015_v56 = vpop.f32.mrb[15].mxu1  ;;  %v1095_v3 = vadd.f32 %v1077_v22, %v6238_v11  ;;  %v7310_v5 = vsel %vm6108_vm3, %v6093_v10, %v6112_v45 }
 0x46d   :  { %v1088_v1 = vadd.f32 %v1008_v49, %v7309_v62 }
 0x46e   :  { %v3486_v37 = vmul.f32 -1.442695, %v1081_v58 }
 0x46f   :  { %v3487_v53 = vmul.f32 -1.442695, %v1088_v1 }
 0x470   :  { %5549 = vpow2.f32 %v3486_v37 }
 0x471   :  { %5551 = vpow2.f32 %v3487_v53 }
 0x47a   :  { %v5550_v47 = vpop.eup %5549 }
 0x47b   :  { %v1085_v42 = vadd.f32 1.0, %v5550_v47  ;;  %v5552_v51 = vpop.eup %5551 }
 0x47c   :  { %v1092_v40 = vadd.f32 1.0, %v5552_v51 }
 0x47d   :  { %5553 = vrcp.f32 %v1085_v42 }
 0x47e   :  { %5555 = vrcp.f32 %v1092_v40 }
 0x487   :  { %v5554_v16 = vpop.eup %5553 }
 0x488   :  { %v1096_v63 = vmul.f32 %v5554_v16, %v1095_v3  ;;  %v5556_v58 = vpop.eup %5555  ;;  %v7311_v3 = vsel %vm6104_vm2, %v6126_v2, %v6099_v25  ;;  %v7312_v25 = vsel %vm6108_vm3, %v6112_v45, %v6093_v10 }
 0x489   :  { %v1099_v56 = vsub.f32 1.0, %v5556_v58  ;;  %v1101_v37 = vmul.f32 %v5556_v58, %v6346_v32 }
 0x48a   :  { %v1097_v49 = vadd.f32 %v1096_v63, %v7310_v5 }
 0x48c   :  { %5557 = vtanh.f32 %v1097_v49 }
 0x496   :  { %v5558_v62 = vpop.eup %5557 }
 0x497   :  { %v1100_v1 = vmul.f32 %v5558_v62, %v1099_v56 }
 0x499   :  { %v6398_v53 = vadd.f32 %v1101_v37, %v1100_v1 }
 0x49b   :  { %1168 = vmatmul.mubr.f32.vlgmr.msra.gmra.mrb[24].mxu0 %v6398_v53  ;;  %4049 = vmatmul.mubr.f32.vlgmr.msra.gmra.mrb[16].mxu1 %v6398_v53 }
 0x49c   :  { %4827 = vmatpush1.bf16.msra.mxu0 %v5934_v18  ;;  %4858 = vmatpush3.bf16.msra.mxu1 %v5948_v34 }
 0x49d   :  { %4829 = vmatprep.subr.bf16.mxu0 %v5937_v19  ;;  %4859 = vmatprep.subr.bf16.mxu1 %v7303_v0 }
 0x49e   :  { %1330 = vmatprep.mubr.f32.mxu0 %v7304_v33  ;;  %4083 = vmatprep.mubr.msk.f32.mxu1 %vm5834_vm0, %v7304_v33 }
 0x4a0   :  { %4831 = vmatpush1.bf16.msra.mxu0 %v5942_v27  ;;  %4861 = vmatpush3.bf16.msra.mxu1 %v5958_v44 }
 0x4a1   :  { %4833 = vmatprep.subr.bf16.mxu0 %v5945_v28  ;;  %4862 = vmatprep.subr.bf16.mxu1 %v7303_v0 }
 0x4a4   :  { %4835 = vmatpush1.bf16.msra.mxu0 %v5952_v38  ;;  %4864 = vmatpush3.bf16.msra.mxu1 %v5969_v55 }
 0x4a5   :  { %4837 = vmatprep.subr.bf16.mxu0 %v5955_v39  ;;  %4865 = vmatprep.subr.bf16.mxu1 %v7303_v0 }
 0x4a8   :  { %4839 = vmatpush1.bf16.msra.mxu0 %v5963_v48  ;;  %4867 = vmatpush3.bf16.msra.mxu1 %v5980_v4 }
 0x4a9   :  { %4841 = vmatprep.subr.bf16.mxu0 %v5966_v50  ;;  %4868 = vmatprep.subr.bf16.mxu1 %v7303_v0 }
 0x4ac   :  { %4843 = vmatpush1.bf16.msra.mxu0 %v5974_v59  ;;  %4870 = vmatpush3.bf16.msra.mxu1 %v5991_v14 }
 0x4ad   :  { %4845 = vmatprep.subr.bf16.mxu0 %v5977_v61  ;;  %4871 = vmatprep.subr.bf16.mxu1 %v7303_v0 }
 0x4b0   :  { %4847 = vmatpush1.bf16.msra.mxu0 %v5985_v7  ;;  %4873 = vmatpush3.bf16.msra.mxu1 %v6004_v23 }
 0x4b1   :  { %4849 = vmatprep.subr.bf16.mxu0 %v5988_v8  ;;  %4874 = vmatprep.subr.bf16.mxu1 %v7303_v0 }
 0x4b4   :  { %4851 = vmatpush1.bf16.msra.mxu0 %v5998_v17  ;;  %4876 = vmatpush3.bf16.msra.mxu1 %v6013_v29 }
 0x4b5   :  { %4853 = vmatprep.subr.bf16.mxu0 %v6001_v20  ;;  %4877 = vmatprep.subr.bf16.mxu1 %v7303_v0 }
 0x4b8   :  { %4855 = vmatpush1.bf16.msra.mxu0 %v6009_v26  ;;  %4879 = vmatpush3.bf16.msra.mxu1 %v6022_v35 }
 0x4b9   :  { %4881 = vmatprep.subr.bf16.mxu0 %v5932_v12  ;;  %4912 = vmatprep.subr.bf16.mxu1 %v7303_v0 }
 0x56e   :  { %v1169_v22 = vpop.f32.mrb[24].mxu0  ;;  %v1240_v47 = vpop.f32.mrb[16].mxu1 }
 0x56f   :  { %v1244_v42 = vadd.f32 %v1169_v22, %v6144_v21  ;;  %v1171_v51 = vpop.f32.mrb[25].mxu0  ;;  %v4050_v40 = vpop.f32.mrb[17].mxu1  ;;  %v1258_v1 = vadd.f32 %v1240_v47, %v6238_v11  ;;  %v7313_v47 = vld [vmem:[#allocation22_spill] sm:$0xff] }
 0x570   :  { %v1251_v16 = vadd.f32 %v1171_v51, %v7311_v3 }
 0x571   :  { %v3488_v63 = vmul.f32 -1.442695, %v1244_v42 }
 0x572   :  { %v3489_v5 = vmul.f32 -1.442695, %v1251_v16 }
 0x573   :  { %5559 = vpow2.f32 %v3488_v63 }
 0x574   :  { %5561 = vpow2.f32 %v3489_v5 }
 0x57d   :  { %v5560_v49 = vpop.eup %5559 }
 0x57e   :  { %v1248_v58 = vadd.f32 1.0, %v5560_v49  ;;  %v5562_v56 = vpop.eup %5561 }
 0x57f   :  { %v1255_v62 = vadd.f32 1.0, %v5562_v56 }
 0x580   :  { %5563 = vrcp.f32 %v1248_v58  ;;  %v7314_v58 = vsel %vm6104_vm2, %v6166_v52, %v6091_v6  ;;  %v7315_v6 = vsel %vm6108_vm3, %v6101_v31, %v6095_v15  ;;  %v1766_v31 = vld [vmem:[#allocation7 + $0x308] sm:$0xff] }
 0x581   :  { %5565 = vrcp.f32 %v1255_v62 }
 0x58a   :  { %v5564_v21 = vpop.eup %5563 }
 0x58b   :  { %v1259_v37 = vmul.f32 %v5564_v21, %v1258_v1  ;;  %v5566_v22 = vpop.eup %5565 }
 0x58c   :  { %v1262_v42 = vsub.f32 1.0, %v5566_v22  ;;  %v1264_v3 = vmul.f32 %v5566_v22, %v6398_v53 }
 0x58d   :  { %v1260_v2 = vadd.f32 %v1259_v37, %v7312_v25 }
 0x58f   :  { %5567 = vtanh.f32 %v1260_v2 }
 0x599   :  { %v5568_v51 = vpop.eup %5567 }
 0x59a   :  { %v1263_v40 = vmul.f32 %v5568_v51, %v1262_v42 }
 0x59c   :  { %v6450_v16 = vadd.f32 %v1264_v3, %v1263_v40 }
 0x59e   :  { %1331 = vmatmul.mubr.f32.vlgmr.msra.gmra.mrb[26].mxu0 %v6450_v16  ;;  %4084 = vmatmul.mubr.f32.vlgmr.msra.gmra.mrb[18].mxu1 %v6450_v16 }
 0x59f   :  { %4883 = vmatpush1.bf16.msra.mxu0 %v5934_v18  ;;  %4914 = vmatpush3.bf16.msra.mxu1 %v5948_v34 }
 0x5a0   :  { %4885 = vmatprep.subr.bf16.mxu0 %v5937_v19  ;;  %4915 = vmatprep.subr.bf16.mxu1 %v7303_v0 }
 0x5a1   :  { %1493 = vmatprep.mubr.f32.mxu0 %v7304_v33  ;;  %4118 = vmatprep.mubr.msk.f32.mxu1 %vm5834_vm0, %v7304_v33 }
 0x5a3   :  { %4887 = vmatpush1.bf16.msra.mxu0 %v5942_v27  ;;  %4917 = vmatpush3.bf16.msra.mxu1 %v5958_v44 }
 0x5a4   :  { %4889 = vmatprep.subr.bf16.mxu0 %v5945_v28  ;;  %4918 = vmatprep.subr.bf16.mxu1 %v7303_v0 }
 0x5a7   :  { %4891 = vmatpush1.bf16.msra.mxu0 %v5952_v38  ;;  %4920 = vmatpush3.bf16.msra.mxu1 %v5969_v55 }
 0x5a8   :  { %4893 = vmatprep.subr.bf16.mxu0 %v5955_v39  ;;  %4921 = vmatprep.subr.bf16.mxu1 %v7303_v0 }
 0x5ab   :  { %4895 = vmatpush1.bf16.msra.mxu0 %v5963_v48  ;;  %4923 = vmatpush3.bf16.msra.mxu1 %v5980_v4 }
 0x5ac   :  { %4897 = vmatprep.subr.bf16.mxu0 %v5966_v50  ;;  %4924 = vmatprep.subr.bf16.mxu1 %v7303_v0 }
 0x5af   :  { %4899 = vmatpush1.bf16.msra.mxu0 %v5974_v59  ;;  %4926 = vmatpush3.bf16.msra.mxu1 %v5991_v14 }
 0x5b0   :  { %4901 = vmatprep.subr.bf16.mxu0 %v5977_v61  ;;  %4927 = vmatprep.subr.bf16.mxu1 %v7303_v0 }
 0x5b3   :  { %4903 = vmatpush1.bf16.msra.mxu0 %v5985_v7  ;;  %4929 = vmatpush3.bf16.msra.mxu1 %v6004_v23 }
 0x5b4   :  { %4905 = vmatprep.subr.bf16.mxu0 %v5988_v8  ;;  %4930 = vmatprep.subr.bf16.mxu1 %v7303_v0 }
 0x5b7   :  { %4907 = vmatpush1.bf16.msra.mxu0 %v5998_v17  ;;  %4932 = vmatpush3.bf16.msra.mxu1 %v6013_v29 }
 0x5b8   :  { %4909 = vmatprep.subr.bf16.mxu0 %v6001_v20  ;;  %4933 = vmatprep.subr.bf16.mxu1 %v7303_v0 }
 0x5bb   :  { %4911 = vmatpush1.bf16.msra.mxu0 %v6009_v26  ;;  %4935 = vmatpush3.bf16.msra.mxu1 %v6022_v35 }
 0x5bc   :  { %4937 = vmatprep.subr.bf16.mxu0 %v5932_v12  ;;  %4968 = vmatprep.subr.bf16.mxu1 %v7303_v0 }
 0x671   :  { %v1332_v10 = vpop.f32.mrb[26].mxu0  ;;  %v1403_v45 = vpop.f32.mrb[18].mxu1 }
 0x672   :  { %v1407_v63 = vadd.f32 %v1332_v10, %v7313_v47  ;;  %v1334_v5 = vpop.f32.mrb[27].mxu0  ;;  %v4085_v49 = vpop.f32.mrb[19].mxu1  ;;  %v1421_v2 = vadd.f32 %v1403_v45, %v6238_v11  ;;  %v1767_v45 = vld [vmem:[#allocation7 + $0x310] sm:$0xff] }
 0x673   :  { %v1414_v56 = vadd.f32 %v1334_v5, %v7314_v58  ;;  %v1770_v49 = vld [vmem:[#allocation7 + $0x328] sm:$0xff] }
 0x674   :  { %v3490_v62 = vmul.f32 -1.442695, %v1407_v63  ;;  %v5024_v58 = vpack.c.bf16 %v1770_v49, %v1767_v45  ;;  %v1805_v45 = vld [vmem:[#allocation7 + $0x440] sm:$0xff] }
 0x675   :  { %v3491_v1 = vmul.f32 -1.442695, %v1414_v56  ;;  %v1772_v56 = vld [vmem:[#allocation7 + $0x338] sm:$0xff] }
 0x676   :  { %5569 = vpow2.f32 %v3490_v62  ;;  %v1775_v62 = vld [vmem:[#allocation7 + $0x350] sm:$0xff] }
 0x677   :  { %5571 = vpow2.f32 %v3491_v1  ;;  %v4996_v1 = vpack.c.bf16 %v1775_v62, %v1772_v56  ;;  %v1803_v56 = vld [vmem:[#allocation7 + $0x430] sm:$0xff]  ;;  %v1806_v62 = vld [vmem:[#allocation7 + $0x448] sm:$0xff] }
 0x680   :  { %v5570_v21 = vpop.eup %5569 }
 0x681   :  { %v1411_v12 = vadd.f32 1.0, %v5570_v21  ;;  %v5572_v37 = vpop.eup %5571  ;;  %v1771_v21 = vld [vmem:[#allocation7 + $0x330] sm:$0xff] }
 0x682   :  { %v1418_v25 = vadd.f32 1.0, %v5572_v37  ;;  %v1773_v37 = vld [vmem:[#allocation7 + $0x340] sm:$0xff] }
 0x683   :  { %5573 = vrcp.f32 %v1411_v12  ;;  %v1774_v12 = vld [vmem:[#allocation7 + $0x348] sm:$0xff] }
 0x684   :  { %5575 = vrcp.f32 %v1418_v25  ;;  %v4998_v25 = vpack.c.bf16 %v1774_v12, %v1771_v21  ;;  %v1808_v21 = vld [vmem:[#allocation7 + $0x458] sm:$0xff]  ;;  %v1811_v12 = vld [vmem:[#allocation7 + $0x470] sm:$0xff] }
 0x68d   :  { %v5574_v22 = vpop.eup %5573 }
 0x68e   :  { %v1422_v42 = vmul.f32 %v5574_v22, %v1421_v2  ;;  %v5576_v51 = vpop.eup %5575  ;;  %v1776_v2 = vld [vmem:[#allocation7 + $0x358] sm:$0xff] }
 0x68f   :  { %v1425_v40 = vsub.f32 1.0, %v5576_v51  ;;  %v1427_v47 = vmul.f32 %v5576_v51, %v6450_v16  ;;  %v5028_v22 = vpack.c.bf16 %v1776_v2, %v1773_v37  ;;  %v1777_v51 = vld [vmem:[#allocation7 + $0x360] sm:$0xff]  ;;  %v1812_v2 = vld [vmem:[#allocation7 + $0x478] sm:$0xff] }
 0x690   :  { %v1423_v52 = vadd.f32 %v1422_v42, %v7315_v6  ;;  %v1778_v42 = vld [vmem:[#allocation7 + $0x368] sm:$0xff]  ;;  %v1781_v6 = vld [vmem:[#allocation7 + $0x380] sm:$0xff] }
 0x692   :  { %5577 = vtanh.f32 %v1423_v52  ;;  %v5000_v52 = vpack.c.bf16 %v1781_v6, %v1778_v42  ;;  %v1807_v42 = vld [vmem:[#allocation7 + $0x450] sm:$0xff]  ;;  %v1810_v6 = vld [vmem:[#allocation7 + $0x468] sm:$0xff] }
 0x69c   :  { %v5578_v3 = vpop.eup %5577 }
 0x69d   :  { %v1426_v10 = vmul.f32 %v5578_v3, %v1425_v40  ;;  %v1780_v40 = vld [vmem:[#allocation7 + $0x378] sm:$0xff]  ;;  %v1779_v3 = vld [vmem:[#allocation7 + $0x370] sm:$0xff] }
 0x69f   :  { %v6502_v63 = vadd.f32 %v1427_v47, %v1426_v10  ;;  %v5002_v10 = vpack.c.bf16 %v1780_v40, %v1777_v51  ;;  %v1782_v47 = vld [vmem:[#allocation7 + $0x388] sm:$0xff]  ;;  %v5022_v51 = vpack.c.bf16 %v1810_v6, %v1807_v42  ;;  %v1826_v6 = vld [vmem:[#allocation7 + $0x4e0] sm:$0xff] }
 0x6a0   :  { %v1815_v40 = vld [vmem:[#allocation7 + $0x488] sm:$0xff] }
 0x6a1   :  { %1494 = vmatmul.mubr.f32.vlgmr.msra.gmra.mrb[28].mxu0 %v6502_v63  ;;  %4119 = vmatmul.mubr.f32.vlgmr.msra.gmra.mrb[20].mxu1 %v6502_v63 }
 0x6a2   :  { %4939 = vmatpush1.bf16.msra.mxu0 %v5934_v18  ;;  %4970 = vmatpush3.bf16.msra.mxu1 %v5948_v34 }
 0x6a3   :  { %4941 = vmatprep.subr.bf16.mxu0 %v5937_v19  ;;  %4971 = vmatprep.subr.bf16.mxu1 %v7303_v0 }
 0x6a4   :  { %1656 = vmatprep.mubr.f32.mxu0 %v7304_v33  ;;  %4153 = vmatprep.mubr.msk.f32.mxu1 %vm5834_vm0, %v7304_v33 }
 0x6a6   :  { %4943 = vmatpush1.bf16.msra.mxu0 %v5942_v27  ;;  %4973 = vmatpush3.bf16.msra.mxu1 %v5958_v44  ;;  %v7316_v27 = vld [vmem:[#allocation23_spill] sm:$0xff] }
 0x6a7   :  { %4945 = vmatprep.subr.bf16.mxu0 %v5945_v28  ;;  %4974 = vmatprep.subr.bf16.mxu1 %v7303_v0 }
 0x6aa   :  { %4947 = vmatpush1.bf16.msra.mxu0 %v5952_v38  ;;  %4976 = vmatpush3.bf16.msra.mxu1 %v5969_v55 }
 0x6ab   :  { %4949 = vmatprep.subr.bf16.mxu0 %v5955_v39  ;;  %4977 = vmatprep.subr.bf16.mxu1 %v7303_v0  ;;  %v7317_v39 = vsel %vm6104_vm2, %v6194_v36, %v6083_v57 }
 0x6ae   :  { %4951 = vmatpush1.bf16.msra.mxu0 %v5963_v48  ;;  %4979 = vmatpush3.bf16.msra.mxu1 %v5980_v4 }
 0x6af   :  { %4953 = vmatprep.subr.bf16.mxu0 %v5966_v50  ;;  %4980 = vmatprep.subr.bf16.mxu1 %v7303_v0 }
 0x6b2   :  { %4955 = vmatpush1.bf16.msra.mxu0 %v5974_v59  ;;  %4982 = vmatpush3.bf16.msra.mxu1 %v5991_v14 }
 0x6b3   :  { %4957 = vmatprep.subr.bf16.mxu0 %v5977_v61  ;;  %4983 = vmatprep.subr.bf16.mxu1 %v7303_v0 }
 0x6b6   :  { %4959 = vmatpush1.bf16.msra.mxu0 %v5985_v7  ;;  %4985 = vmatpush3.bf16.msra.mxu1 %v6004_v23 }
 0x6b7   :  { %4961 = vmatprep.subr.bf16.mxu0 %v5988_v8  ;;  %4986 = vmatprep.subr.bf16.mxu1 %v7303_v0 }
 0x6ba   :  { %4963 = vmatpush1.bf16.msra.mxu0 %v5998_v17  ;;  %4988 = vmatpush3.bf16.msra.mxu1 %v6013_v29  ;;  %v7318_v17 = vsel %vm6108_vm3, %v6146_v30, %v6085_v60  ;;  %v1765_v60 = vld [vmem:[#allocation7 + $0x300] sm:$0xff]  ;;  %v1768_v30 = vld [vmem:[#allocation7 + $0x318] sm:$0xff] }
 0x6bb   :  { %4965 = vmatprep.subr.bf16.mxu0 %v6001_v20  ;;  %4989 = vmatprep.subr.bf16.mxu1 %v7303_v0  ;;  %v4994_v5 = vpack.c.bf16 %v1768_v30, %v1765_v60  ;;  %v1802_v30 = vld [vmem:[#allocation7 + $0x428] sm:$0xff] }
 0x6bc   :  { %v5016_v49 = vpack.c.bf16 %v1805_v45, %v1802_v30 }
 0x6be   :  { %4967 = vmatpush1.bf16.msra.mxu0 %v6009_v26  ;;  %4991 = vmatpush3.bf16.msra.mxu1 %v6022_v35 }
 0x6bf   :  { %5025 = vmatprep.subr.bf16.mxu1 %v5024_v58 }
 0x774   :  { %v1495_v18 = vpop.f32.mrb[28].mxu0  ;;  %v1566_v19 = vpop.f32.mrb[20].mxu1 }
 0x775   :  { %v1570_v28 = vadd.f32 %v1495_v18, %v7316_v27  ;;  %v1497_v34 = vpop.f32.mrb[29].mxu0  ;;  %v4120_v38 = vpop.f32.mrb[21].mxu1  ;;  %v1584_v7 = vadd.f32 %v1566_v19, %v6238_v11  ;;  %v1769_v11 = vld [vmem:[#allocation7 + $0x320] sm:$0xff]  ;;  %v5032_v18 = vpack.c.bf16 %v1782_v47, %v1779_v3  ;;  %v1784_v19 = vld [vmem:[#allocation7 + $0x398] sm:$0xff]  ;;  %v1787_v27 = vld [vmem:[#allocation7 + $0x3b0] sm:$0xff] }
 0x776   :  { %v1577_v44 = vadd.f32 %v1497_v34, %v7317_v39  ;;  %v4992_v36 = vpack.c.bf16 %v1769_v11, %v1766_v31  ;;  %v1783_v34 = vld [vmem:[#allocation7 + $0x390] sm:$0xff]  ;;  %v1786_v38 = vld [vmem:[#allocation7 + $0x3a8] sm:$0xff]  ;;  %v1785_v39 = vld [vmem:[#allocation7 + $0x3a0] sm:$0xff] }
 0x777   :  { %v3492_v48 = vmul.f32 -1.442695, %v1570_v28  ;;  %v5004_v28 = vpack.c.bf16 %v1787_v27, %v1784_v19  ;;  %v1797_v31 = vld [vmem:[#allocation7 + $0x400] sm:$0xff]  ;;  %v1800_v11 = vld [vmem:[#allocation7 + $0x418] sm:$0xff] }
 0x778   :  { %v3493_v50 = vmul.f32 -1.442695, %v1577_v44  ;;  %4993 = vmatprep.subr.bf16.mxu0 %v4992_v36  ;;  %v5006_v44 = vpack.c.bf16 %v1786_v38, %v1783_v34  ;;  %v5044_v60 = vpack.c.bf16 %v1800_v11, %v1797_v31  ;;  %v1818_v3 = vld [vmem:[#allocation7 + $0x4a0] sm:$0xff]  ;;  %v1821_v31 = vld [vmem:[#allocation7 + $0x4b8] sm:$0xff]  ;;  %v1824_v11 = vld [vmem:[#allocation7 + $0x4d0] sm:$0xff] }
 0x779   :  { %5579 = vpow2.f32 %v3492_v48  ;;  %v1788_v48 = vld [vmem:[#allocation7 + $0x3b8] sm:$0xff]  ;;  %v7319_v19 = vld [vmem:[#allocation24_spill] sm:$0xff] }
 0x77a   :  { %5581 = vpow2.f32 %v3493_v50  ;;  %v5036_v50 = vpack.c.bf16 %v1788_v48, %v1785_v39 }
 0x783   :  { %v5580_v55 = vpop.eup %5579 }
 0x784   :  { %v1574_v59 = vadd.f32 1.0, %v5580_v55  ;;  %v5582_v61 = vpop.eup %5581  ;;  %v1790_v55 = vld [vmem:[#allocation7 + $0x3c8] sm:$0xff] }
 0x785   :  { %v1581_v4 = vadd.f32 1.0, %v5582_v61 }
 0x786   :  { %5583 = vrcp.f32 %v1574_v59  ;;  %v1793_v59 = vld [vmem:[#allocation7 + $0x3e0] sm:$0xff] }
 0x787   :  { %5585 = vrcp.f32 %v1581_v4  ;;  %v5008_v61 = vpack.c.bf16 %v1793_v59, %v1790_v55  ;;  %v1789_v4 = vld [vmem:[#allocation7 + $0x3c0] sm:$0xff] }
 0x790   :  { %v5584_v8 = vpop.eup %5583 }
 0x791   :  { %v1585_v14 = vmul.f32 %v5584_v8, %v1584_v7  ;;  %v5586_v23 = vpop.eup %5585  ;;  %v1792_v7 = vld [vmem:[#allocation7 + $0x3d8] sm:$0xff]  ;;  %v1791_v8 = vld [vmem:[#allocation7 + $0x3d0] sm:$0xff] }
 0x792   :  { %v1588_v26 = vsub.f32 1.0, %v5586_v23  ;;  %v1590_v57 = vmul.f32 %v5586_v23, %v6502_v63  ;;  %v1796_v23 = vld [vmem:[#allocation7 + $0x3f8] sm:$0xff] }
 0x793   :  { %v1586_v20 = vadd.f32 %v1585_v14, %v7318_v17  ;;  %v5010_v14 = vpack.c.bf16 %v1792_v7, %v1789_v4  ;;  %v1794_v17 = vld [vmem:[#allocation7 + $0x3e8] sm:$0xff] }
 0x795   :  { %5587 = vtanh.f32 %v1586_v20  ;;  %v5040_v20 = vpack.c.bf16 %v1794_v17, %v1791_v8  ;;  %v7321_v17 = vld [vmem:[#allocation20_spill] sm:$0xff] }
 0x79f   :  { %v5588_v29 = vpop.eup %5587 }
 0x7a0   :  { %v1589_v35 = vmul.f32 %v5588_v29, %v1588_v26  ;;  %v1799_v26 = vld [vmem:[#allocation7 + $0x410] sm:$0xff] }
 0x7a1   :  { %v1795_v29 = vld [vmem:[#allocation7 + $0x3f0] sm:$0xff] }
 0x7a2   :  { %v6552_v15 = vadd.f32 %v1590_v57, %v1589_v35  ;;  %v5012_v35 = vpack.c.bf16 %v1799_v26, %v1796_v23  ;;  %v1798_v57 = vld [vmem:[#allocation7 + $0x408] sm:$0xff]  ;;  %v1814_v26 = vld [vmem:[#allocation7 + $0x480] sm:$0xff] }
 0x7a3   :  { %v5014_v36 = vpack.c.bf16 %v1798_v57, %v1795_v29  ;;  %v1817_v29 = vld [vmem:[#allocation7 + $0x498] sm:$0xff] }
 0x7a4   :  { %1657 = vmatmul.mubr.f32.vlgmr.msra.gmra.mrb[30].mxu0 %v6552_v15  ;;  %4154 = vmatmul.mubr.f32.vlgmr.msra.gmra.mrb[22].mxu1 %v6552_v15  ;;  %v6575_v45 = vpack.c.bf16 %v1817_v29, %v1814_v26  ;;  %v1851_v26 = vld [vmem:[#allocation7 + $0x5a8] sm:$0xff]  ;;  %v1854_v29 = vld [vmem:[#allocation7 + $0x5c0] sm:$0xff] }
 0x7a5   :  { %1943 = vmatprep.mubr.f32.mxu0 %v7304_v33  ;;  %4995 = vmatpush1.bf16.msra.mxu0 %v4994_v5  ;;  %v1801_v5 = vld [vmem:[#allocation7 + $0x420] sm:$0xff] }
 0x7a6   :  { %5027 = vmatpush3.bf16.msra.mxu1 %v5024_v58  ;;  %4997 = vmatprep.subr.bf16.mxu0 %v4996_v1  ;;  %v1804_v58 = vld [vmem:[#allocation7 + $0x438] sm:$0xff]  ;;  %v5048_v1 = vpack.c.bf16 %v1806_v62, %v1803_v56  ;;  %v6582_v62 = vpack.c.bf16 %v1824_v11, %v1821_v31  ;;  %v6665_v11 = vpack.c.bf16 %v1854_v29, %v1851_v26 }
 0x7a7   :  { %5029 = vmatprep.subr.bf16.mxu1 %v5028_v22  ;;  %v5018_v37 = vpack.c.bf16 %v1804_v58, %v1801_v5  ;;  %v1820_v5 = vld [vmem:[#allocation7 + $0x4b0] sm:$0xff] }
 0x7a9   :  { %4999 = vmatpush1.bf16.msra.mxu0 %v4998_v25  ;;  %v1809_v25 = vld [vmem:[#allocation7 + $0x460] sm:$0xff] }
 0x7aa   :  { %5031 = vmatpush3.bf16.msra.mxu1 %v5028_v22  ;;  %5001 = vmatprep.subr.bf16.mxu0 %v5000_v52  ;;  %v5020_v22 = vpack.c.bf16 %v1811_v12, %v1808_v21  ;;  %v5052_v52 = vpack.c.bf16 %v1812_v2, %v1809_v25  ;;  %v1757_v12 = vsel %vm78_vm1, %v6294_v9, %v6552_v15  ;;  %v1822_v25 = vld [vmem:[#allocation7 + $0x4c0] sm:$0xff]  ;;  %v1825_v2 = vld [vmem:[#allocation7 + $0x4d8] sm:$0xff] }
 0x7ab   :  { %5033 = vmatprep.subr.bf16.mxu1 %v5032_v18 }
 0x7ad   :  { %5003 = vmatpush1.bf16.msra.mxu0 %v5002_v10  ;;  %v6557_v10 = vpack.c.bf16 %v1818_v3, %v1815_v40  ;;  %v1833_v40 = vld [vmem:[#allocation7 + $0x518] sm:$0xff]  ;;  %v6602_v3 = vpack.c.bf16 %v1825_v2, %v1822_v25  ;;  %v1856_v25 = vld [vmem:[#allocation7 + $0x5d0] sm:$0xff]  ;;  %v1859_v2 = vld [vmem:[#allocation7 + $0x5e8] sm:$0xff] }
 0x7ae   :  { %5035 = vmatpush3.bf16.msra.mxu1 %v5032_v18  ;;  %5005 = vmatprep.subr.bf16.mxu0 %v5004_v28 }
 0x7af   :  { %5037 = vmatprep.subr.bf16.mxu1 %v5036_v50 }
 0x7b1   :  { %5007 = vmatpush1.bf16.msra.mxu0 %v5006_v44 }
 0x7b2   :  { %5039 = vmatpush3.bf16.msra.mxu1 %v5036_v50  ;;  %5009 = vmatprep.subr.bf16.mxu0 %v5008_v61  ;;  %v5679_v61 = vld [vmem:[#allocation8 + $0x18] sm:$0xff] }
 0x7b3   :  { %5041 = vmatprep.subr.bf16.mxu1 %v5040_v20 }
 0x7b5   :  { %5011 = vmatpush1.bf16.msra.mxu0 %v5010_v14  ;;  %v7320_v14 = vld [vmem:[#allocation21_spill] sm:$0xff] }
 0x7b6   :  { %5043 = vmatpush3.bf16.msra.mxu1 %v5040_v20  ;;  %5013 = vmatprep.subr.bf16.mxu0 %v5012_v35  ;;  %v7322_v54 = vsel %vm6108_vm3, %v7320_v14, %v7321_v17  ;;  %v1848_v14 = vld [vmem:[#allocation7 + $0x590] sm:$0xff] }
 0x7b7   :  { %5045 = vmatprep.subr.bf16.mxu1 %v5044_v60 }
 0x7b9   :  { %5015 = vmatpush1.bf16.msra.mxu0 %v5014_v36  ;;  %v1816_v36 = vld [vmem:[#allocation7 + $0x490] sm:$0xff] }
 0x7ba   :  { %5017 = vmatprep.subr.bf16.mxu0 %v5016_v49  ;;  %5047 = vmatpush3.bf16.msra.mxu1 %v5044_v60  ;;  %v1819_v60 = vld [vmem:[#allocation7 + $0x4a8] sm:$0xff] }
 0x7bb   :  { %5049 = vmatprep.subr.bf16.mxu1 %v5048_v1  ;;  %v1823_v49 = vld [vmem:[#allocation7 + $0x4c8] sm:$0xff]  ;;  %v6584_v21 = vpack.c.bf16 %v1819_v60, %v1816_v36  ;;  %v1850_v36 = vld [vmem:[#allocation7 + $0x5a0] sm:$0xff]  ;;  %v1853_v60 = vld [vmem:[#allocation7 + $0x5b8] sm:$0xff] }
 0x7bc   :  { %v6595_v42 = vpack.c.bf16 %v1823_v49, %v1820_v5  ;;  %v1860_v5 = vld [vmem:[#allocation7 + $0x5f0] sm:$0xff] }
 0x7bd   :  { %5019 = vmatpush1.bf16.msra.mxu0 %v5018_v37  ;;  %v1830_v37 = vld [vmem:[#allocation7 + $0x500] sm:$0xff] }
 0x7be   :  { %5021 = vmatprep.subr.bf16.mxu0 %v5020_v22  ;;  %5051 = vmatpush3.bf16.msra.mxu1 %v5048_v1  ;;  %v1827_v1 = vld [vmem:[#allocation7 + $0x4e8] sm:$0xff]  ;;  %v1758_v22 = vsel %vm78_vm1, %v6346_v32, %v6502_v63 }
 0x7bf   :  { %5053 = vmatprep.subr.bf16.mxu1 %v5052_v52 }
 0x7c1   :  { %5023 = vmatpush1.bf16.msra.mxu0 %v5022_v51  ;;  %v6599_v51 = vpack.c.bf16 %v1830_v37, %v1827_v1  ;;  %v1855_v1 = vld [vmem:[#allocation7 + $0x5c8] sm:$0xff] }
 0x7c2   :  { %5055 = vmatpush3.bf16.msra.mxu1 %v5052_v52  ;;  %5057 = vmatprep.subr.bf16.mxu0 %v6557_v10  ;;  %v1829_v52 = vld [vmem:[#allocation7 + $0x4f8] sm:$0xff] }
 0x7c3   :  { %5088 = vmatprep.subr.bf16.mxu1 %v7303_v0 }
 0x877   :  { %v1658_v47 = vpop.f32.mrb[30].mxu0  ;;  %v1729_v18 = vpop.f32.mrb[22].mxu1 }
 0x878   :  { %v1733_v27 = vadd.f32 %v1658_v47, %v7319_v19  ;;  %v1660_v28 = vpop.f32.mrb[31].mxu0  ;;  %v4155_v34 = vpop.f32.mrb[23].mxu1  ;;  %v1747_v4 = vadd.f32 %v5679_v61, %v1729_v18  ;;  %v1759_v47 = vsel %vm78_vm1, %v6398_v53, %v6450_v16  ;;  %v1836_v18 = vld [vmem:[#allocation7 + $0x530] sm:$0xff]  ;;  %v1762_v61 = vsel %vm78_vm1, %v6552_v15, %v6294_v9 }
 0x879   :  { %v1740_v38 = vadd.f32 %v1660_v28, %v448_v46  ;;  %v1828_v19 = vld [vmem:[#allocation7 + $0x4f0] sm:$0xff]  ;;  %v1760_v28 = vsel %vm78_vm1, %v6450_v16, %v6398_v53  ;;  %v6614_v34 = vpack.c.bf16 %v1829_v52, %v1826_v6  ;;  %v1761_v53 = vsel %vm78_vm1, %v6502_v63, %v6346_v32  ;;  %v1834_v16 = vld [vmem:[#allocation7 + $0x520] sm:$0xff]  ;;  %v1841_v63 = vld [vmem:[#allocation7 + $0x558] sm:$0xff] }
 0x87a   :  { %v3494_v39 = vmul.f32 -1.442695, %v1733_v27  ;;  %v1831_v27 = vld [vmem:[#allocation7 + $0x508] sm:$0xff]  ;;  %v1838_v32 = vld [vmem:[#allocation7 + $0x540] sm:$0xff]  ;;  %v1861_v52 = vld [vmem:[#allocation7 + $0x5f8] sm:$0xff] }
 0x87b   :  { %v3495_v44 = vmul.f32 -1.442695, %v1740_v38  ;;  %v1832_v38 = vld [vmem:[#allocation7 + $0x510] sm:$0xff]  ;;  %v1858_v6 = vld [vmem:[#allocation7 + $0x5e0] sm:$0xff] }
 0x87c   :  { %5589 = vpow2.f32 %v3494_v39  ;;  %v1835_v39 = vld [vmem:[#allocation7 + $0x528] sm:$0xff] }
 0x87d   :  { %5591 = vpow2.f32 %v3495_v44  ;;  %v6618_v44 = vpack.c.bf16 %v1836_v18, %v1833_v40  ;;  %v6684_v40 = vpack.c.bf16 %v1859_v2, %v1856_v25  ;;  %v6693_v18 = vld [vmem:[#allocation5 + $0x8] sm:$0xff] }
 0x886   :  { %v5590_v48 = vpop.eup %5589 }
 0x887   :  { %v1737_v50 = vadd.f32 1.0, %v5590_v48  ;;  %v5592_v55 = vpop.eup %5591  ;;  %v1839_v48 = vld [vmem:[#allocation7 + $0x548] sm:$0xff] }
 0x888   :  { %v1744_v59 = vadd.f32 1.0, %v5592_v55  ;;  %v6621_v55 = vpack.c.bf16 %v1831_v27, %v1828_v19  ;;  %v1865_v19 = vld [vmem:[#allocation8 + $0x30] sm:$0xff] }
 0x889   :  { %5593 = vrcp.f32 %v1737_v50  ;;  %v1842_v50 = vld [vmem:[#allocation7 + $0x560] sm:$0xff]  ;;  %v7324_v27 = vld [vmem:[#allocation18_spill] sm:$0xff] }
 0x88a   :  { %5595 = vrcp.f32 %v1744_v59  ;;  %v1837_v59 = vld [vmem:[#allocation7 + $0x538] sm:$0xff] }
 0x88b   :  { %v6640_v17 = vpack.c.bf16 %v1837_v59, %v1834_v16 }
 0x893   :  { %v5594_v7 = vpop.eup %5593 }
 0x894   :  { %v1748_v8 = vmul.f32 %v5594_v7, %v1747_v4  ;;  %v5596_v46 = vpop.eup %5595  ;;  %v6633_v4 = vpack.c.bf16 %v1835_v39, %v1832_v38  ;;  %v6636_v7 = vpack.c.bf16 %v1842_v50, %v1839_v48  ;;  %v1863_v38 = vld [vmem:[#allocation8 + $0x20] sm:$0xff]  ;;  %v1864_v48 = vld [vmem:[#allocation8 + $0x28] sm:$0xff] }
 0x895   :  { %v1751_v20 = vsub.f32 1.0, %v5596_v46  ;;  %v1753_v57 = vmul.f32 %v5596_v46, %v6552_v15  ;;  %v1840_v15 = vld [vmem:[#allocation7 + $0x550] sm:$0xff] }
 0x896   :  { %v1749_v24 = vadd.f32 %v1748_v8, %v7322_v54  ;;  %v1845_v8 = vld [vmem:[#allocation7 + $0x578] sm:$0xff]  ;;  %v1843_v54 = vld [vmem:[#allocation7 + $0x568] sm:$0xff] }
 0x897   :  { %v6652_v46 = vpack.c.bf16 %v1848_v14, %v1845_v8 }
 0x898   :  { %5597 = vtanh.f32 %v1749_v24  ;;  %v6648_v24 = vpack.c.bf16 %v1841_v63, %v1838_v32  ;;  %v6744_v32 = vrot.slane %v1864_v48, %v7324_v27 }
 0x8a2   :  { %v5598_v23 = vpop.eup %5597 }
 0x8a3   :  { %v1752_v35 = vmul.f32 %v5598_v23, %v1751_v20  ;;  %v1844_v20 = vld [vmem:[#allocation7 + $0x570] sm:$0xff]  ;;  %v1847_v23 = vld [vmem:[#allocation7 + $0x588] sm:$0xff] }
 0x8a4   :  { %v6662_v31 = vpack.c.bf16 %v1847_v23, %v1844_v20 }
 0x8a5   :  { %v6573_v30 = vadd.f32 %v1753_v57, %v1752_v35  ;;  %v1846_v35 = vld [vmem:[#allocation7 + $0x580] sm:$0xff]  ;;  %v1849_v57 = vld [vmem:[#allocation7 + $0x598] sm:$0xff] }
 0x8a6   :  { %v6668_v49 = vpack.c.bf16 %v1849_v57, %v1846_v35 }
 0x8a7   :  { %v1756_v56 = vsel %vm78_vm1, %v6242_v13, %v6573_v30  ;;  %1755 = vst [vmem:[#allocation11] sm:$0xff] %v6573_v30  ;;  %v1763_v9 = vsel %vm78_vm1, %v6573_v30, %v6242_v13  ;;  %v6655_v13 = vpack.c.bf16 %v1843_v54, %v1840_v15  ;;  %v1857_v30 = vld [vmem:[#allocation7 + $0x5d8] sm:$0xff] }
 0x8a8   :  { %1944 = vmatmul.mubr.f32.vlgmr.msra.gmra.mrb[32].mxu0 %v1756_v56  ;;  %4188 = vmatprep.mubr.f32.mxu1 %v1756_v56  ;;  %v1852_v56 = vld [vmem:[#allocation7 + $0x5b0] sm:$0xff]  ;;  %v6676_v37 = vpack.c.bf16 %v1860_v5, %v1857_v30 }
 0x8a9   :  { %4189 = vmatmul.mubr.f32.vlgmr.msra.gmra.mrb[24].mxu1 %v1757_v12  ;;  %5059 = vmatpush1.bf16.msra.mxu0 %v6575_v45 }
 0x8aa   :  { %4191 = vmatprep.mubr.f32.mxu1 %v1758_v22  ;;  %1949 = vmatprep.mubr.f32.mxu0 %v7304_v33 }
 0x8ab   :  { %5061 = vmatprep.subr.bf16.mxu0 %v6582_v62  ;;  %5090 = vmatpush3.bf16.msra.mxu1 %v6584_v21 }
 0x8ac   :  { %1950 = vmatmul.mubr.f32.gmra.mrb[34].mxu0 %v1757_v12  ;;  %5091 = vmatprep.subr.bf16.mxu1 %v7303_v0  ;;  %v6673_v12 = vpack.c.bf16 %v1853_v60, %v1850_v36 }
 0x8ad   :  { %4192 = vmatmul.mubr.f32.gmra.mrb[26].mxu1 %v1759_v47  ;;  %5063 = vmatpush1.bf16.msra.mxu0 %v6595_v42 }
 0x8ae   :  { %4194 = vmatprep.mubr.f32.mxu1 %v1760_v28  ;;  %1955 = vmatprep.mubr.f32.mxu0 %v7304_v33 }
 0x8af   :  { %5065 = vmatprep.subr.bf16.mxu0 %v6599_v51  ;;  %5093 = vmatpush3.bf16.msra.mxu1 %v6602_v3 }
 0x8b0   :  { %1956 = vmatmul.mubr.f32.gmra.mrb[36].mxu0 %v1758_v22  ;;  %5094 = vmatprep.subr.bf16.mxu1 %v7303_v0  ;;  %v6679_v22 = vpack.c.bf16 %v1855_v1, %v1852_v56 }
 0x8b1   :  { %4195 = vmatmul.mubr.f32.gmra.mrb[28].mxu1 %v1761_v53  ;;  %5067 = vmatpush1.bf16.msra.mxu0 %v6614_v34 }
 0x8b2   :  { %4197 = vmatprep.mubr.f32.mxu1 %v1762_v61  ;;  %1961 = vmatprep.mubr.f32.mxu0 %v7304_v33 }
 0x8b3   :  { %5069 = vmatprep.subr.bf16.mxu0 %v6618_v44  ;;  %5096 = vmatpush3.bf16.msra.mxu1 %v6621_v55 }
 0x8b4   :  { %1962 = vmatmul.mubr.f32.gmra.mrb[38].mxu0 %v1759_v47  ;;  %5097 = vmatprep.subr.bf16.mxu1 %v7303_v0  ;;  %v6688_v47 = vpack.c.bf16 %v1861_v52, %v1858_v6 }
 0x8b5   :  { %4198 = vmatmul.mubr.f32.gmra.mrb[30].mxu1 %v1763_v9  ;;  %5071 = vmatpush1.bf16.msra.mxu0 %v6633_v4 }
 0x8b6   :  { %1967 = vmatprep.mubr.f32.mxu0 %v7304_v33  ;;  %5073 = vmatprep.subr.bf16.mxu0 %v6636_v7 }
 0x8b7   :  { %5099 = vmatpush3.bf16.msra.mxu1 %v6640_v17  ;;  %4232 = vmatprep.mubr.msk.f32.mxu1 %vm5834_vm0, %v7304_v33 }
 0x8b8   :  { %1968 = vmatmul.mubr.f32.gmra.mrb[40].mxu0 %v1760_v28  ;;  %5100 = vmatprep.subr.bf16.mxu1 %v7303_v0  ;;  %v1878_v28 = vrot.slane %v1865_v19, %v7324_v27 }
 0x8b9   :  { %5075 = vmatpush1.bf16.msra.mxu0 %v6648_v24  ;;  %1973 = vmatprep.mubr.f32.mxu0 %v7304_v33 }
 0x8ba   :  { %5077 = vmatprep.subr.bf16.mxu0 %v6652_v46 }
 0x8bb   :  { %5102 = vmatpush3.bf16.msra.mxu1 %v6655_v13 }
 0x8bc   :  { %1974 = vmatmul.mubr.f32.gmra.mrb[42].mxu0 %v1761_v53  ;;  %5103 = vmatprep.subr.bf16.mxu1 %v7303_v0 }
 0x8bd   :  { %5079 = vmatpush1.bf16.msra.mxu0 %v6662_v31  ;;  %1979 = vmatprep.mubr.f32.mxu0 %v7304_v33 }
 0x8be   :  { %5081 = vmatprep.subr.bf16.mxu0 %v6665_v11 }
 0x8bf   :  { %5105 = vmatpush3.bf16.msra.mxu1 %v6668_v49 }
 0x8c0   :  { %1980 = vmatmul.mubr.f32.gmra.mrb[44].mxu0 %v1762_v61  ;;  %5106 = vmatprep.subr.bf16.mxu1 %v7303_v0  ;;  %v1870_v61 = vrot.slane %v1863_v38, %v7324_v27 }
 0x8c1   :  { %5083 = vmatpush1.bf16.msra.mxu0 %v6673_v12  ;;  %1985 = vmatprep.mubr.f32.mxu0 %v7304_v33 }
 0x8c2   :  { %5085 = vmatprep.subr.bf16.mxu0 %v6676_v37 }
 0x8c3   :  { %5108 = vmatpush3.bf16.msra.mxu1 %v6679_v22 }
 0x8c4   :  { %1986 = vmatmul.mubr.f32.gmra.mrb[46].mxu0 %v1763_v9  ;;  %5109 = vmatprep.subr.bf16.mxu1 %v7303_v0 }
 0x8c5   :  { %5087 = vmatpush1.bf16.msra.mxu0 %v6684_v40  ;;  %2187 = vmatprep.mubr.f32.mxu0 %v7304_v33 }
 0x8c6   :  { %5113 = vmatprep.subr.bf16.mxu0 %v6557_v10 }
 0x8c7   :  { %5111 = vmatpush3.bf16.msra.mxu1 %v6688_v47 }
 0x8c8   :  { %2188 = vmatmul.mubr.f32.vlgmr.msra.gmra.mrb[48].mxu0 %v6693_v18  ;;  %5144 = vmatprep.subr.bf16.mxu1 %v7303_v0 }
 0x8c9   :  { %5115 = vmatpush1.bf16.msra.mxu0 %v6575_v45  ;;  %2350 = vmatprep.mubr.f32.mxu0 %v7304_v33 }
 0x8ca   :  { %4233 = vmatmul.mubr.f32.vlgmr.msra.gmra.mrb[32].mxu1 %v6693_v18  ;;  %5117 = vmatprep.subr.bf16.mxu0 %v6582_v62 }
 0x8cb   :  { %5146 = vmatpush3.bf16.msra.mxu1 %v6584_v21  ;;  %4267 = vmatprep.mubr.msk.f32.mxu1 %vm5834_vm0, %v7304_v33 }
 0x8cc   :  { %5147 = vmatprep.subr.bf16.mxu1 %v7303_v0 }
 0x8cd   :  { %5119 = vmatpush1.bf16.msra.mxu0 %v6595_v42 }
 0x8ce   :  { %5121 = vmatprep.subr.bf16.mxu0 %v6599_v51 }
 0x8cf   :  { %5149 = vmatpush3.bf16.msra.mxu1 %v6602_v3 }
 0x8d0   :  { %5150 = vmatprep.subr.bf16.mxu1 %v7303_v0 }
 0x8d1   :  { %5123 = vmatpush1.bf16.msra.mxu0 %v6614_v34 }
 0x8d2   :  { %5125 = vmatprep.subr.bf16.mxu0 %v6618_v44 }
 0x8d3   :  { %5152 = vmatpush3.bf16.msra.mxu1 %v6621_v55 }
 0x8d4   :  { %5153 = vmatprep.subr.bf16.mxu1 %v7303_v0 }
 0x8d5   :  { %5127 = vmatpush1.bf16.msra.mxu0 %v6633_v4 }
 0x8d6   :  { %5129 = vmatprep.subr.bf16.mxu0 %v6636_v7 }
 0x8d7   :  { %5155 = vmatpush3.bf16.msra.mxu1 %v6640_v17 }
 0x8d8   :  { %5156 = vmatprep.subr.bf16.mxu1 %v7303_v0 }
 0x8d9   :  { %5131 = vmatpush1.bf16.msra.mxu0 %v6648_v24 }
 0x8da   :  { %5133 = vmatprep.subr.bf16.mxu0 %v6652_v46 }
 0x8db   :  { %5158 = vmatpush3.bf16.msra.mxu1 %v6655_v13 }
 0x8dc   :  { %5159 = vmatprep.subr.bf16.mxu1 %v7303_v0 }
 0x8dd   :  { %5135 = vmatpush1.bf16.msra.mxu0 %v6662_v31 }
 0x8de   :  { %5137 = vmatprep.subr.bf16.mxu0 %v6665_v11 }
 0x8df   :  { %5161 = vmatpush3.bf16.msra.mxu1 %v6668_v49 }
 0x8e0   :  { %5162 = vmatprep.subr.bf16.mxu1 %v7303_v0 }
 0x8e1   :  { %5139 = vmatpush1.bf16.msra.mxu0 %v6673_v12 }
 0x8e2   :  { %5141 = vmatprep.subr.bf16.mxu0 %v6676_v37 }
 0x8e3   :  { %5164 = vmatpush3.bf16.msra.mxu1 %v6679_v22 }
 0x8e4   :  { %5165 = vmatprep.subr.bf16.mxu1 %v7303_v0 }
 0x8e5   :  { %5143 = vmatpush1.bf16.msra.mxu0 %v6684_v40 }
 0x8e6   :  { %5169 = vmatprep.subr.bf16.mxu0 %v6557_v10 }
 0x8e7   :  { %5167 = vmatpush3.bf16.msra.mxu1 %v6688_v47 }
 0x8e8   :  { %5200 = vmatprep.subr.bf16.mxu1 %v7303_v0 }
 0x97b   :  { %v6736_v39 = vpop.f32.mrb[32].mxu0 }
 0x97c   :  { %v6738_v50 = vpop.f32.mrb[33].mxu0  ;;  %v4190_v53 = vpop.f32.mrb[24].mxu1 }
 0x97d   :  { %v6740_v16 = vadd.f32 %v4190_v53, %v1878_v28  ;;  %v2058_v59 = vpop.f32.mrb[25].mxu1 }
 0x97e   :  { %v6776_v38 = vadd.f32 %v2058_v59, %v1878_v28 }
 0x97f   :  { %v1951_v63 = vpop.f32.mrb[34].mxu0 }
 0x980   :  { %v1952_v8 = vadd.f32 %v1951_v63, %v1870_v61  ;;  %v1953_v14 = vpop.f32.mrb[35].mxu0  ;;  %v4193_v9 = vpop.f32.mrb[26].mxu1  ;;  %7326 = vst [vmem:[#allocation23_spill] sm:$0xff] %v6776_v38 }
 0x981   :  { %v6747_v15 = vadd.f32 %v1953_v14, %v6744_v32  ;;  %v6749_v54 = vadd.f32 %v4193_v9, %v1878_v28  ;;  %v2068_v20 = vpop.f32.mrb[27].mxu1 }
 0x982   :  { %v6751_v23 = vadd.f32 %v2068_v20, %v1878_v28 }
 0x983   :  { %v1957_v26 = vpop.f32.mrb[36].mxu0 }
 0x984   :  { %v1958_v29 = vadd.f32 %v1957_v26, %v1870_v61  ;;  %v1959_v35 = vpop.f32.mrb[37].mxu0  ;;  %v4196_v57 = vpop.f32.mrb[28].mxu1  ;;  %v6861_v26 = vadd.f32 %v6738_v50, %v6744_v32 }
 0x985   :  { %v6754_v36 = vadd.f32 %v1959_v35, %v6744_v32  ;;  %v6756_v60 = vadd.f32 %v4196_v57, %v1878_v28  ;;  %v2078_v30 = vpop.f32.mrb[29].mxu1 }
 0x986   :  { %v6758_v5 = vadd.f32 %v2078_v30, %v1878_v28 }
 0x987   :  { %v1963_v25 = vpop.f32.mrb[38].mxu0 }
 0x988   :  { %7325 = vst [vmem:[#allocation22_spill] sm:$0xff] %v6758_v5  ;;  %v1964_v52 = vadd.f32 %v1963_v25, %v1870_v61  ;;  %v1965_v19 = vpop.f32.mrb[39].mxu0  ;;  %v4199_v27 = vpop.f32.mrb[30].mxu1 }
 0x989   :  { %v6779_v48 = vadd.f32 %v1965_v19, %v6744_v32  ;;  %v6781_v53 = vadd.f32 %v4199_v27, %v1878_v28  ;;  %v2088_v63 = vpop.f32.mrb[31].mxu1 }
 0x98a   :  { %v6783_v14 = vadd.f32 %v2088_v63, %v1878_v28 }
 0x98b   :  { %7327 = vst [vmem:[#allocation24_spill] sm:$0xff] %v6781_v53  ;;  %v2099_v9 = vsel %vm6108_vm3, %v6776_v38, %v6781_v53  ;;  %v1969_v59 = vpop.f32.mrb[40].mxu0 }
 0x98c   :  { %v1970_v35 = vadd.f32 %v1969_v59, %v1870_v61  ;;  %v1971_v57 = vpop.f32.mrb[41].mxu0 }
 0x98d   :  { %v6802_v30 = vadd.f32 %v1971_v57, %v6744_v32 }
 0x98e   :  { %v6806_v25 = vsel %vm78_vm1, %v1964_v52, %v1970_v35  ;;  %v6810_v19 = vsel %vm78_vm1, %v1970_v35, %v1964_v52 }
 0x98f   :  { %7328 = vst [vmem:[#allocation21_spill] sm:$0xff] %v6810_v19  ;;  %v1975_v27 = vpop.f32.mrb[42].mxu0 }
 0x990   :  { %v1976_v57 = vadd.f32 %v1975_v27, %v1870_v61  ;;  %v1977_v20 = vpop.f32.mrb[43].mxu0 }
 0x991   :  { %v6821_v28 = vadd.f32 %v1977_v20, %v6744_v32 }
 0x992   :  { %v6825_v52 = vsel %vm78_vm1, %v1958_v29, %v1976_v57  ;;  %v6829_v35 = vsel %vm78_vm1, %v1976_v57, %v1958_v29  ;;  %v7350_v41 = vld [vmem:[#allocation24_spill] sm:$0xff] }
 0x993   :  { %7329 = vst [vmem:[#allocation20_spill] sm:$0xff] %v6829_v35  ;;  %v1981_v1 = vpop.f32.mrb[44].mxu0  ;;  %v6880_v35 = vld [vmem:[#allocation8 + $0x38] sm:$0xff] }
 0x994   :  { %v1982_v27 = vadd.f32 %v1981_v1, %v1870_v61  ;;  %v1983_v59 = vpop.f32.mrb[45].mxu0 }
 0x995   :  { %v6840_v2 = vadd.f32 %v1983_v59, %v6744_v32  ;;  %v1946_v59 = vadd.f32 %v6736_v39, %v1870_v61 }
 0x996   :  { %v6844_v29 = vsel %vm78_vm1, %v1952_v8, %v1982_v27  ;;  %v6848_v57 = vsel %vm78_vm1, %v1982_v27, %v1952_v8 }
 0x997   :  { %7330 = vst [vmem:[#allocation18_spill] sm:$0xff] %v6848_v57  ;;  %v1987_v63 = vpop.f32.mrb[46].mxu0 }
 0x998   :  { %v1988_v20 = vadd.f32 %v1987_v63, %v1870_v61  ;;  %v1989_v6 = vpop.f32.mrb[47].mxu0 }
 0x999   :  { %v6864_v8 = vadd.f32 %v1989_v6, %v6744_v32 }
 0x99a   :  { %v2097_v27 = vsel %vm78_vm1, %v1946_v59, %v1988_v20  ;;  %v6870_v56 = vsel %vm78_vm1, %v1988_v20, %v1946_v59 }
 0x99b   :  { %7331 = vst [vmem:[#allocation25_spill] sm:$0xff] %v6870_v56  ;;  %v2189_v38 = vpop.f32.mrb[48].mxu0  ;;  %v2098_v39 = vsel %vm6104_vm2, %v6861_v26, %v6864_v8  ;;  %v2119_v50 = vsel %vm6104_vm2, %v6864_v8, %v6861_v26 }
 0x99c   :  { %v2264_v61 = vadd.f32 %v2189_v38, %v2097_v27  ;;  %v2191_v32 = vpop.f32.mrb[49].mxu0 }
 0x99d   :  { %v2271_v6 = vadd.f32 %v2191_v32, %v2098_v39  ;;  %v2260_v63 = vpop.f32.mrb[32].mxu1 }
 0x99e   :  { %v3496_v1 = vmul.f32 -1.442695, %v2264_v61  ;;  %v4234_v53 = vpop.f32.mrb[33].mxu1  ;;  %v2278_v19 = vadd.f32 %v2260_v63, %v6880_v35 }
 0x99f   :  { %v3497_v20 = vmul.f32 -1.442695, %v2271_v6 }
 0x9a0   :  { %5599 = vpow2.f32 %v3496_v1 }
 0x9a1   :  { %5601 = vpow2.f32 %v3497_v20 }
 0x9aa   :  { %v5600_v59 = vpop.eup %5599 }
 0x9ab   :  { %v2268_v56 = vadd.f32 1.0, %v5600_v59  ;;  %v5602_v57 = vpop.eup %5601 }
 0x9ac   :  { %v2275_v58 = vadd.f32 1.0, %v5602_v57 }
 0x9ad   :  { %5603 = vrcp.f32 %v2268_v56 }
 0x9ae   :  { %5605 = vrcp.f32 %v2275_v58 }
 0x9b7   :  { %v5604_v5 = vpop.eup %5603 }
 0x9b8   :  { %v2279_v38 = vmul.f32 %v5604_v5, %v2278_v19  ;;  %v5606_v39 = vpop.eup %5605  ;;  %v7332_v19 = vsel %vm6104_vm2, %v6747_v15, %v6840_v2 }
 0x9b9   :  { %v2282_v61 = vsub.f32 1.0, %v5606_v39  ;;  %v2284_v32 = vmul.f32 %v5606_v39, %v6693_v18 }
 0x9ba   :  { %v2280_v27 = vadd.f32 %v2279_v38, %v2099_v9 }
 0x9bc   :  { %5607 = vtanh.f32 %v2280_v27 }
 0x9c6   :  { %v5608_v53 = vpop.eup %5607 }
 0x9c7   :  { %v2283_v1 = vmul.f32 %v5608_v53, %v2282_v61 }
 0x9c9   :  { %v6884_v6 = vadd.f32 %v2284_v32, %v2283_v1  ;;  %v7333_v1 = vsel %vm6108_vm3, %v6740_v16, %v6783_v14 }
 0x9cb   :  { %2351 = vmatmul.mubr.f32.vlgmr.msra.gmra.mrb[50].mxu0 %v6884_v6  ;;  %4268 = vmatmul.mubr.f32.vlgmr.msra.gmra.mrb[34].mxu1 %v6884_v6 }
 0x9cc   :  { %5171 = vmatpush1.bf16.msra.mxu0 %v6575_v45  ;;  %5202 = vmatpush3.bf16.msra.mxu1 %v6584_v21 }
 0x9cd   :  { %5173 = vmatprep.subr.bf16.mxu0 %v6582_v62  ;;  %5203 = vmatprep.subr.bf16.mxu1 %v7303_v0 }
 0x9ce   :  { %2513 = vmatprep.mubr.f32.mxu0 %v7304_v33  ;;  %4302 = vmatprep.mubr.msk.f32.mxu1 %vm5834_vm0, %v7304_v33 }
 0x9d0   :  { %5175 = vmatpush1.bf16.msra.mxu0 %v6595_v42  ;;  %5205 = vmatpush3.bf16.msra.mxu1 %v6602_v3 }
 0x9d1   :  { %5177 = vmatprep.subr.bf16.mxu0 %v6599_v51  ;;  %5206 = vmatprep.subr.bf16.mxu1 %v7303_v0 }
 0x9d4   :  { %5179 = vmatpush1.bf16.msra.mxu0 %v6614_v34  ;;  %5208 = vmatpush3.bf16.msra.mxu1 %v6621_v55 }
 0x9d5   :  { %5181 = vmatprep.subr.bf16.mxu0 %v6618_v44  ;;  %5209 = vmatprep.subr.bf16.mxu1 %v7303_v0 }
 0x9d8   :  { %5183 = vmatpush1.bf16.msra.mxu0 %v6633_v4  ;;  %5211 = vmatpush3.bf16.msra.mxu1 %v6640_v17 }
 0x9d9   :  { %5185 = vmatprep.subr.bf16.mxu0 %v6636_v7  ;;  %5212 = vmatprep.subr.bf16.mxu1 %v7303_v0 }
 0x9dc   :  { %5187 = vmatpush1.bf16.msra.mxu0 %v6648_v24  ;;  %5214 = vmatpush3.bf16.msra.mxu1 %v6655_v13 }
 0x9dd   :  { %5189 = vmatprep.subr.bf16.mxu0 %v6652_v46  ;;  %5215 = vmatprep.subr.bf16.mxu1 %v7303_v0 }
 0x9e0   :  { %5191 = vmatpush1.bf16.msra.mxu0 %v6662_v31  ;;  %5217 = vmatpush3.bf16.msra.mxu1 %v6668_v49 }
 0x9e1   :  { %5193 = vmatprep.subr.bf16.mxu0 %v6665_v11  ;;  %5218 = vmatprep.subr.bf16.mxu1 %v7303_v0 }
 0x9e4   :  { %5195 = vmatpush1.bf16.msra.mxu0 %v6673_v12  ;;  %5220 = vmatpush3.bf16.msra.mxu1 %v6679_v22 }
 0x9e5   :  { %5197 = vmatprep.subr.bf16.mxu0 %v6676_v37  ;;  %5221 = vmatprep.subr.bf16.mxu1 %v7303_v0 }
 0x9e8   :  { %5199 = vmatpush1.bf16.msra.mxu0 %v6684_v40  ;;  %5223 = vmatpush3.bf16.msra.mxu1 %v6688_v47 }
 0x9e9   :  { %5225 = vmatprep.subr.bf16.mxu0 %v6557_v10  ;;  %5256 = vmatprep.subr.bf16.mxu1 %v7303_v0 }
 0xa9e   :  { %v2352_v58 = vpop.f32.mrb[50].mxu0  ;;  %v2423_v18 = vpop.f32.mrb[34].mxu1 }
 0xa9f   :  { %v2427_v5 = vadd.f32 %v2352_v58, %v6844_v29  ;;  %v2354_v56 = vpop.f32.mrb[51].mxu0  ;;  %v4269_v9 = vpop.f32.mrb[35].mxu1  ;;  %v2441_v61 = vadd.f32 %v2423_v18, %v6880_v35 }
 0xaa0   :  { %v2434_v57 = vadd.f32 %v2354_v56, %v7332_v19 }
 0xaa1   :  { %v3498_v63 = vmul.f32 -1.442695, %v2427_v5 }
 0xaa2   :  { %v3499_v20 = vmul.f32 -1.442695, %v2434_v57 }
 0xaa3   :  { %5609 = vpow2.f32 %v3498_v63 }
 0xaa4   :  { %5611 = vpow2.f32 %v3499_v20 }
 0xaad   :  { %v5610_v59 = vpop.eup %5609 }
 0xaae   :  { %v2431_v38 = vadd.f32 1.0, %v5610_v59  ;;  %v5612_v27 = vpop.eup %5611 }
 0xaaf   :  { %v2438_v39 = vadd.f32 1.0, %v5612_v27  ;;  %v7334_v27 = vsel %vm6104_vm2, %v6754_v36, %v6821_v28 }
 0xab0   :  { %5613 = vrcp.f32 %v2431_v38 }
 0xab1   :  { %5615 = vrcp.f32 %v2438_v39 }
 0xaba   :  { %v5614_v29 = vpop.eup %5613 }
 0xabb   :  { %v2442_v53 = vmul.f32 %v5614_v29, %v2441_v61  ;;  %v5616_v58 = vpop.eup %5615 }
 0xabc   :  { %v2445_v5 = vsub.f32 1.0, %v5616_v58  ;;  %v2447_v19 = vmul.f32 %v5616_v58, %v6884_v6 }
 0xabd   :  { %v2443_v32 = vadd.f32 %v2442_v53, %v7333_v1 }
 0xabf   :  { %5617 = vtanh.f32 %v2443_v32 }
 0xac9   :  { %v5618_v56 = vpop.eup %5617 }
 0xaca   :  { %v2446_v9 = vmul.f32 %v5618_v56, %v2445_v5 }
 0xacc   :  { %v6936_v57 = vadd.f32 %v2447_v19, %v2446_v9  ;;  %v7335_v9 = vsel %vm6108_vm3, %v6751_v23, %v6756_v60 }
 0xace   :  { %2514 = vmatmul.mubr.f32.vlgmr.msra.gmra.mrb[52].mxu0 %v6936_v57  ;;  %4303 = vmatmul.mubr.f32.vlgmr.msra.gmra.mrb[36].mxu1 %v6936_v57 }
 0xacf   :  { %5227 = vmatpush1.bf16.msra.mxu0 %v6575_v45  ;;  %5258 = vmatpush3.bf16.msra.mxu1 %v6584_v21 }
 0xad0   :  { %5229 = vmatprep.subr.bf16.mxu0 %v6582_v62  ;;  %5259 = vmatprep.subr.bf16.mxu1 %v7303_v0 }
 0xad1   :  { %2676 = vmatprep.mubr.f32.mxu0 %v7304_v33  ;;  %4337 = vmatprep.mubr.msk.f32.mxu1 %vm5834_vm0, %v7304_v33 }
 0xad3   :  { %5231 = vmatpush1.bf16.msra.mxu0 %v6595_v42  ;;  %5261 = vmatpush3.bf16.msra.mxu1 %v6602_v3 }
 0xad4   :  { %5233 = vmatprep.subr.bf16.mxu0 %v6599_v51  ;;  %5262 = vmatprep.subr.bf16.mxu1 %v7303_v0 }
 0xad7   :  { %5235 = vmatpush1.bf16.msra.mxu0 %v6614_v34  ;;  %5264 = vmatpush3.bf16.msra.mxu1 %v6621_v55 }
 0xad8   :  { %5237 = vmatprep.subr.bf16.mxu0 %v6618_v44  ;;  %5265 = vmatprep.subr.bf16.mxu1 %v7303_v0 }
 0xadb   :  { %5239 = vmatpush1.bf16.msra.mxu0 %v6633_v4  ;;  %5267 = vmatpush3.bf16.msra.mxu1 %v6640_v17 }
 0xadc   :  { %5241 = vmatprep.subr.bf16.mxu0 %v6636_v7  ;;  %5268 = vmatprep.subr.bf16.mxu1 %v7303_v0 }
 0xadf   :  { %5243 = vmatpush1.bf16.msra.mxu0 %v6648_v24  ;;  %5270 = vmatpush3.bf16.msra.mxu1 %v6655_v13 }
 0xae0   :  { %5245 = vmatprep.subr.bf16.mxu0 %v6652_v46  ;;  %5271 = vmatprep.subr.bf16.mxu1 %v7303_v0 }
 0xae3   :  { %5247 = vmatpush1.bf16.msra.mxu0 %v6662_v31  ;;  %5273 = vmatpush3.bf16.msra.mxu1 %v6668_v49 }
 0xae4   :  { %5249 = vmatprep.subr.bf16.mxu0 %v6665_v11  ;;  %5274 = vmatprep.subr.bf16.mxu1 %v7303_v0 }
 0xae7   :  { %5251 = vmatpush1.bf16.msra.mxu0 %v6673_v12  ;;  %5276 = vmatpush3.bf16.msra.mxu1 %v6679_v22 }
 0xae8   :  { %5253 = vmatprep.subr.bf16.mxu0 %v6676_v37  ;;  %5277 = vmatprep.subr.bf16.mxu1 %v7303_v0 }
 0xaeb   :  { %5255 = vmatpush1.bf16.msra.mxu0 %v6684_v40  ;;  %5279 = vmatpush3.bf16.msra.mxu1 %v6688_v47 }
 0xaec   :  { %5281 = vmatprep.subr.bf16.mxu0 %v6557_v10  ;;  %5312 = vmatprep.subr.bf16.mxu1 %v7303_v0 }
 0xba1   :  { %v2515_v18 = vpop.f32.mrb[52].mxu0  ;;  %v2586_v63 = vpop.f32.mrb[36].mxu1 }
 0xba2   :  { %v2590_v20 = vadd.f32 %v2515_v18, %v6825_v52  ;;  %v2517_v59 = vpop.f32.mrb[53].mxu0  ;;  %v4304_v38 = vpop.f32.mrb[37].mxu1  ;;  %v2604_v5 = vadd.f32 %v2586_v63, %v6880_v35 }
 0xba3   :  { %v2597_v39 = vadd.f32 %v2517_v59, %v7334_v27 }
 0xba4   :  { %v3500_v61 = vmul.f32 -1.442695, %v2590_v20 }
 0xba5   :  { %v3501_v29 = vmul.f32 -1.442695, %v2597_v39 }
 0xba6   :  { %5619 = vpow2.f32 %v3500_v61 }
 0xba7   :  { %5621 = vpow2.f32 %v3501_v29 }
 0xbb0   :  { %v5620_v53 = vpop.eup %5619 }
 0xbb1   :  { %v2594_v1 = vadd.f32 1.0, %v5620_v53  ;;  %v5622_v32 = vpop.eup %5621 }
 0xbb2   :  { %v2601_v58 = vadd.f32 1.0, %v5622_v32  ;;  %v7336_v32 = vsel %vm6104_vm2, %v6779_v48, %v6802_v30 }
 0xbb3   :  { %5623 = vrcp.f32 %v2594_v1 }
 0xbb4   :  { %5625 = vrcp.f32 %v2601_v58 }
 0xbbd   :  { %v5624_v52 = vpop.eup %5623 }
 0xbbe   :  { %v2605_v56 = vmul.f32 %v5624_v52, %v2604_v5  ;;  %v5626_v18 = vpop.eup %5625 }
 0xbbf   :  { %v2608_v20 = vsub.f32 1.0, %v5626_v18  ;;  %v2610_v27 = vmul.f32 %v5626_v18, %v6936_v57 }
 0xbc0   :  { %v2606_v19 = vadd.f32 %v2605_v56, %v7335_v9 }
 0xbc2   :  { %5627 = vtanh.f32 %v2606_v19 }
 0xbcc   :  { %v5628_v59 = vpop.eup %5627 }
 0xbcd   :  { %v2609_v38 = vmul.f32 %v5628_v59, %v2608_v20 }
 0xbcf   :  { %v6988_v39 = vadd.f32 %v2610_v27, %v2609_v38  ;;  %v7337_v38 = vld [vmem:[#allocation22_spill] sm:$0xff] }
 0xbd0   :  { %v7338_v27 = vsel %vm6108_vm3, %v6749_v54, %v7337_v38 }
 0xbd1   :  { %2677 = vmatmul.mubr.f32.vlgmr.msra.gmra.mrb[54].mxu0 %v6988_v39  ;;  %4338 = vmatmul.mubr.f32.vlgmr.msra.gmra.mrb[38].mxu1 %v6988_v39 }
 0xbd2   :  { %5283 = vmatpush1.bf16.msra.mxu0 %v6575_v45  ;;  %5314 = vmatpush3.bf16.msra.mxu1 %v6584_v21 }
 0xbd3   :  { %5285 = vmatprep.subr.bf16.mxu0 %v6582_v62  ;;  %5315 = vmatprep.subr.bf16.mxu1 %v7303_v0 }
 0xbd4   :  { %2839 = vmatprep.mubr.f32.mxu0 %v7304_v33  ;;  %4372 = vmatprep.mubr.msk.f32.mxu1 %vm5834_vm0, %v7304_v33 }
 0xbd6   :  { %5287 = vmatpush1.bf16.msra.mxu0 %v6595_v42  ;;  %5317 = vmatpush3.bf16.msra.mxu1 %v6602_v3 }
 0xbd7   :  { %5289 = vmatprep.subr.bf16.mxu0 %v6599_v51  ;;  %5318 = vmatprep.subr.bf16.mxu1 %v7303_v0 }
 0xbda   :  { %5291 = vmatpush1.bf16.msra.mxu0 %v6614_v34  ;;  %5320 = vmatpush3.bf16.msra.mxu1 %v6621_v55 }
 0xbdb   :  { %5293 = vmatprep.subr.bf16.mxu0 %v6618_v44  ;;  %5321 = vmatprep.subr.bf16.mxu1 %v7303_v0 }
 0xbde   :  { %5295 = vmatpush1.bf16.msra.mxu0 %v6633_v4  ;;  %5323 = vmatpush3.bf16.msra.mxu1 %v6640_v17 }
 0xbdf   :  { %5297 = vmatprep.subr.bf16.mxu0 %v6636_v7  ;;  %5324 = vmatprep.subr.bf16.mxu1 %v7303_v0 }
 0xbe2   :  { %5299 = vmatpush1.bf16.msra.mxu0 %v6648_v24  ;;  %5326 = vmatpush3.bf16.msra.mxu1 %v6655_v13 }
 0xbe3   :  { %5301 = vmatprep.subr.bf16.mxu0 %v6652_v46  ;;  %5327 = vmatprep.subr.bf16.mxu1 %v7303_v0 }
 0xbe6   :  { %5303 = vmatpush1.bf16.msra.mxu0 %v6662_v31  ;;  %5329 = vmatpush3.bf16.msra.mxu1 %v6668_v49 }
 0xbe7   :  { %5305 = vmatprep.subr.bf16.mxu0 %v6665_v11  ;;  %5330 = vmatprep.subr.bf16.mxu1 %v7303_v0 }
 0xbea   :  { %5307 = vmatpush1.bf16.msra.mxu0 %v6673_v12  ;;  %5332 = vmatpush3.bf16.msra.mxu1 %v6679_v22 }
 0xbeb   :  { %5309 = vmatprep.subr.bf16.mxu0 %v6676_v37  ;;  %5333 = vmatprep.subr.bf16.mxu1 %v7303_v0 }
 0xbee   :  { %5311 = vmatpush1.bf16.msra.mxu0 %v6684_v40  ;;  %5335 = vmatpush3.bf16.msra.mxu1 %v6688_v47 }
 0xbef   :  { %5337 = vmatprep.subr.bf16.mxu0 %v6557_v10  ;;  %5368 = vmatprep.subr.bf16.mxu1 %v7303_v0 }
 0xca4   :  { %v2678_v63 = vpop.f32.mrb[54].mxu0  ;;  %v2749_v61 = vpop.f32.mrb[38].mxu1 }
 0xca5   :  { %v2753_v29 = vadd.f32 %v2678_v63, %v6806_v25  ;;  %v2680_v53 = vpop.f32.mrb[55].mxu0  ;;  %v4339_v1 = vpop.f32.mrb[39].mxu1  ;;  %v2767_v20 = vadd.f32 %v2749_v61, %v6880_v35 }
 0xca6   :  { %v2760_v58 = vadd.f32 %v2680_v53, %v7336_v32 }
 0xca7   :  { %v3502_v5 = vmul.f32 -1.442695, %v2753_v29 }
 0xca8   :  { %v3503_v52 = vmul.f32 -1.442695, %v2760_v58 }
 0xca9   :  { %5629 = vpow2.f32 %v3502_v5 }
 0xcaa   :  { %5631 = vpow2.f32 %v3503_v52 }
 0xcb3   :  { %v5630_v56 = vpop.eup %5629 }
 0xcb4   :  { %v2757_v9 = vadd.f32 1.0, %v5630_v56  ;;  %v5632_v19 = vpop.eup %5631  ;;  %v7339_v56 = vld [vmem:[#allocation21_spill] sm:$0xff] }
 0xcb5   :  { %v2764_v18 = vadd.f32 1.0, %v5632_v19 }
 0xcb6   :  { %5633 = vrcp.f32 %v2757_v9 }
 0xcb7   :  { %5635 = vrcp.f32 %v2764_v18 }
 0xcc0   :  { %v5634_v25 = vpop.eup %5633 }
 0xcc1   :  { %v2768_v59 = vmul.f32 %v5634_v25, %v2767_v20  ;;  %v5636_v29 = vpop.eup %5635  ;;  %v7340_v20 = vsel %vm6104_vm2, %v6802_v30, %v6779_v48  ;;  %v7341_v48 = vsel %vm6108_vm3, %v7337_v38, %v6749_v54 }
 0xcc2   :  { %v2771_v53 = vsub.f32 1.0, %v5636_v29  ;;  %v2773_v58 = vmul.f32 %v5636_v29, %v6988_v39 }
 0xcc3   :  { %v2769_v63 = vadd.f32 %v2768_v59, %v7338_v27 }
 0xcc5   :  { %5637 = vtanh.f32 %v2769_v63 }
 0xccf   :  { %v5638_v1 = vpop.eup %5637 }
 0xcd0   :  { %v2772_v32 = vmul.f32 %v5638_v1, %v2771_v53 }
 0xcd2   :  { %v7040_v5 = vadd.f32 %v2773_v58, %v2772_v32 }
 0xcd4   :  { %2840 = vmatmul.mubr.f32.vlgmr.msra.gmra.mrb[56].mxu0 %v7040_v5  ;;  %4373 = vmatmul.mubr.f32.vlgmr.msra.gmra.mrb[40].mxu1 %v7040_v5 }
 0xcd5   :  { %5339 = vmatpush1.bf16.msra.mxu0 %v6575_v45  ;;  %5370 = vmatpush3.bf16.msra.mxu1 %v6584_v21 }
 0xcd6   :  { %5341 = vmatprep.subr.bf16.mxu0 %v6582_v62  ;;  %5371 = vmatprep.subr.bf16.mxu1 %v7303_v0 }
 0xcd7   :  { %3002 = vmatprep.mubr.f32.mxu0 %v7304_v33  ;;  %4407 = vmatprep.mubr.msk.f32.mxu1 %vm5834_vm0, %v7304_v33 }
 0xcd9   :  { %5343 = vmatpush1.bf16.msra.mxu0 %v6595_v42  ;;  %5373 = vmatpush3.bf16.msra.mxu1 %v6602_v3 }
 0xcda   :  { %5345 = vmatprep.subr.bf16.mxu0 %v6599_v51  ;;  %5374 = vmatprep.subr.bf16.mxu1 %v7303_v0 }
 0xcdd   :  { %5347 = vmatpush1.bf16.msra.mxu0 %v6614_v34  ;;  %5376 = vmatpush3.bf16.msra.mxu1 %v6621_v55 }
 0xcde   :  { %5349 = vmatprep.subr.bf16.mxu0 %v6618_v44  ;;  %5377 = vmatprep.subr.bf16.mxu1 %v7303_v0 }
 0xce1   :  { %5351 = vmatpush1.bf16.msra.mxu0 %v6633_v4  ;;  %5379 = vmatpush3.bf16.msra.mxu1 %v6640_v17 }
 0xce2   :  { %5353 = vmatprep.subr.bf16.mxu0 %v6636_v7  ;;  %5380 = vmatprep.subr.bf16.mxu1 %v7303_v0 }
 0xce5   :  { %5355 = vmatpush1.bf16.msra.mxu0 %v6648_v24  ;;  %5382 = vmatpush3.bf16.msra.mxu1 %v6655_v13 }
 0xce6   :  { %5357 = vmatprep.subr.bf16.mxu0 %v6652_v46  ;;  %5383 = vmatprep.subr.bf16.mxu1 %v7303_v0 }
 0xce9   :  { %5359 = vmatpush1.bf16.msra.mxu0 %v6662_v31  ;;  %5385 = vmatpush3.bf16.msra.mxu1 %v6668_v49 }
 0xcea   :  { %5361 = vmatprep.subr.bf16.mxu0 %v6665_v11  ;;  %5386 = vmatprep.subr.bf16.mxu1 %v7303_v0 }
 0xced   :  { %5363 = vmatpush1.bf16.msra.mxu0 %v6673_v12  ;;  %5388 = vmatpush3.bf16.msra.mxu1 %v6679_v22 }
 0xcee   :  { %5365 = vmatprep.subr.bf16.mxu0 %v6676_v37  ;;  %5389 = vmatprep.subr.bf16.mxu1 %v7303_v0 }
 0xcf1   :  { %5367 = vmatpush1.bf16.msra.mxu0 %v6684_v40  ;;  %5391 = vmatpush3.bf16.msra.mxu1 %v6688_v47 }
 0xcf2   :  { %5393 = vmatprep.subr.bf16.mxu0 %v6557_v10  ;;  %5424 = vmatprep.subr.bf16.mxu1 %v7303_v0 }
 0xda7   :  { %v2841_v61 = vpop.f32.mrb[56].mxu0  ;;  %v2912_v52 = vpop.f32.mrb[40].mxu1 }
 0xda8   :  { %v2916_v9 = vadd.f32 %v2841_v61, %v7339_v56  ;;  %v2843_v19 = vpop.f32.mrb[57].mxu0  ;;  %v4374_v18 = vpop.f32.mrb[41].mxu1  ;;  %v2930_v32 = vadd.f32 %v2912_v52, %v6880_v35 }
 0xda9   :  { %v2923_v25 = vadd.f32 %v2843_v19, %v7340_v20 }
 0xdaa   :  { %v3504_v59 = vmul.f32 -1.442695, %v2916_v9 }
 0xdab   :  { %v3505_v27 = vmul.f32 -1.442695, %v2923_v25 }
 0xdac   :  { %5639 = vpow2.f32 %v3504_v59 }
 0xdad   :  { %5641 = vpow2.f32 %v3505_v27  ;;  %v7343_v27 = vld [vmem:[#allocation20_spill] sm:$0xff] }
 0xdb6   :  { %v5640_v63 = vpop.eup %5639 }
 0xdb7   :  { %v2920_v29 = vadd.f32 1.0, %v5640_v63  ;;  %v5642_v53 = vpop.eup %5641 }
 0xdb8   :  { %v2927_v1 = vadd.f32 1.0, %v5642_v53 }
 0xdb9   :  { %5643 = vrcp.f32 %v2920_v29 }
 0xdba   :  { %5645 = vrcp.f32 %v2927_v1  ;;  %v7344_v1 = vsel %vm6104_vm2, %v6821_v28, %v6754_v36  ;;  %v7345_v36 = vsel %vm6108_vm3, %v6756_v60, %v6751_v23 }
 0xdc3   :  { %v5644_v58 = vpop.eup %5643 }
 0xdc4   :  { %v2931_v61 = vmul.f32 %v5644_v58, %v2930_v32  ;;  %v5646_v56 = vpop.eup %5645 }
 0xdc5   :  { %v2934_v9 = vsub.f32 1.0, %v5646_v56  ;;  %v2936_v20 = vmul.f32 %v5646_v56, %v7040_v5 }
 0xdc6   :  { %v2932_v30 = vadd.f32 %v2931_v61, %v7341_v48 }
 0xdc8   :  { %5647 = vtanh.f32 %v2932_v30 }
 0xdd2   :  { %v5648_v19 = vpop.eup %5647 }
 0xdd3   :  { %v2935_v18 = vmul.f32 %v5648_v19, %v2934_v9 }
 0xdd5   :  { %v7092_v25 = vadd.f32 %v2936_v20, %v2935_v18 }
 0xdd7   :  { %3003 = vmatmul.mubr.f32.vlgmr.msra.gmra.mrb[58].mxu0 %v7092_v25  ;;  %v3432_v59 = vsel %vm78_vm1, %v7040_v5, %v7092_v25  ;;  %v3433_v54 = vsel %vm78_vm1, %v7092_v25, %v7040_v5  ;;  %4408 = vmatmul.mubr.f32.vlgmr.msra.gmra.mrb[42].mxu1 %v7092_v25 }
 0xdd8   :  { %3440 = vst [vmem:[#allocation10 + $0x18] sm:$0xff] %v3432_v59  ;;  %3441 = vst [vmem:[#allocation10 + $0x20] sm:$0xff] %v3433_v54  ;;  %5395 = vmatpush1.bf16.msra.mxu0 %v6575_v45  ;;  %5426 = vmatpush3.bf16.msra.mxu1 %v6584_v21 }
 0xdd9   :  { %5397 = vmatprep.subr.bf16.mxu0 %v6582_v62  ;;  %5427 = vmatprep.subr.bf16.mxu1 %v7303_v0 }
 0xdda   :  { %3165 = vmatprep.mubr.f32.mxu0 %v7304_v33  ;;  %4442 = vmatprep.mubr.msk.f32.mxu1 %vm5834_vm0, %v7304_v33 }
 0xddc   :  { %5399 = vmatpush1.bf16.msra.mxu0 %v6595_v42  ;;  %5429 = vmatpush3.bf16.msra.mxu1 %v6602_v3 }
 0xddd   :  { %5401 = vmatprep.subr.bf16.mxu0 %v6599_v51  ;;  %5430 = vmatprep.subr.bf16.mxu1 %v7303_v0 }
 0xde0   :  { %5403 = vmatpush1.bf16.msra.mxu0 %v6614_v34  ;;  %5432 = vmatpush3.bf16.msra.mxu1 %v6621_v55 }
 0xde1   :  { %5405 = vmatprep.subr.bf16.mxu0 %v6618_v44  ;;  %5433 = vmatprep.subr.bf16.mxu1 %v7303_v0 }
 0xde4   :  { %5407 = vmatpush1.bf16.msra.mxu0 %v6633_v4  ;;  %5435 = vmatpush3.bf16.msra.mxu1 %v6640_v17 }
 0xde5   :  { %5409 = vmatprep.subr.bf16.mxu0 %v6636_v7  ;;  %5436 = vmatprep.subr.bf16.mxu1 %v7303_v0 }
 0xde8   :  { %5411 = vmatpush1.bf16.msra.mxu0 %v6648_v24  ;;  %5438 = vmatpush3.bf16.msra.mxu1 %v6655_v13 }
 0xde9   :  { %5413 = vmatprep.subr.bf16.mxu0 %v6652_v46  ;;  %5439 = vmatprep.subr.bf16.mxu1 %v7303_v0 }
 0xdec   :  { %5415 = vmatpush1.bf16.msra.mxu0 %v6662_v31  ;;  %5441 = vmatpush3.bf16.msra.mxu1 %v6668_v49 }
 0xded   :  { %5417 = vmatprep.subr.bf16.mxu0 %v6665_v11  ;;  %5442 = vmatprep.subr.bf16.mxu1 %v7303_v0 }
 0xdf0   :  { %5419 = vmatpush1.bf16.msra.mxu0 %v6673_v12  ;;  %5444 = vmatpush3.bf16.msra.mxu1 %v6679_v22 }
 0xdf1   :  { %5421 = vmatprep.subr.bf16.mxu0 %v6676_v37  ;;  %5445 = vmatprep.subr.bf16.mxu1 %v7303_v0 }
 0xdf4   :  { %5423 = vmatpush1.bf16.msra.mxu0 %v6684_v40  ;;  %5447 = vmatpush3.bf16.msra.mxu1 %v6688_v47 }
 0xdf5   :  { %5449 = vmatprep.subr.bf16.mxu0 %v6557_v10  ;;  %5480 = vmatprep.subr.bf16.mxu1 %v7303_v0 }
 0xeaa   :  { %v3004_v38 = vpop.f32.mrb[58].mxu0  ;;  %v3075_v5 = vpop.f32.mrb[42].mxu1 }
 0xeab   :  { %v3079_v63 = vadd.f32 %v3004_v38, %v7343_v27  ;;  %v3006_v29 = vpop.f32.mrb[59].mxu0  ;;  %v4409_v53 = vpop.f32.mrb[43].mxu1  ;;  %v3093_v9 = vadd.f32 %v3075_v5, %v6880_v35 }
 0xeac   :  { %v3086_v32 = vadd.f32 %v3006_v29, %v7344_v1 }
 0xead   :  { %v3506_v58 = vmul.f32 -1.442695, %v3079_v63 }
 0xeae   :  { %v3507_v61 = vmul.f32 -1.442695, %v3086_v32 }
 0xeaf   :  { %5649 = vpow2.f32 %v3506_v58 }
 0xeb0   :  { %5651 = vpow2.f32 %v3507_v61 }
 0xeb9   :  { %v5650_v48 = vpop.eup %5649 }
 0xeba   :  { %v3083_v10 = vadd.f32 1.0, %v5650_v48  ;;  %v5652_v30 = vpop.eup %5651 }
 0xebb   :  { %v3090_v56 = vadd.f32 1.0, %v5652_v30 }
 0xebc   :  { %5653 = vrcp.f32 %v3083_v10 }
 0xebd   :  { %5655 = vrcp.f32 %v3090_v56 }
 0xec6   :  { %v5654_v19 = vpop.eup %5653 }
 0xec7   :  { %v3094_v18 = vmul.f32 %v5654_v19, %v3093_v9  ;;  %v5656_v20 = vpop.eup %5655  ;;  %v7351_v9 = vld [vmem:[#allocation23_spill] sm:$0xff] }
 0xec8   :  { %v3097_v59 = vsub.f32 1.0, %v5656_v20  ;;  %v3099_v27 = vmul.f32 %v5656_v20, %v7092_v25  ;;  %v7352_v26 = vsel %vm6108_vm3, %v7350_v41, %v7351_v9 }
 0xec9   :  { %v3095_v28 = vadd.f32 %v3094_v18, %v7345_v36 }
 0xecb   :  { %5657 = vtanh.f32 %v3095_v28 }
 0xed5   :  { %v5658_v54 = vpop.eup %5657 }
 0xed6   :  { %v3098_v38 = vmul.f32 %v5658_v54, %v3097_v59 }
 0xed8   :  { %v7152_v63 = vadd.f32 %v3099_v27, %v3098_v38 }
 0xeda   :  { %3166 = vmatmul.mubr.f32.vlgmr.msra.gmra.mrb[60].mxu0 %v7152_v63  ;;  %v3431_v5 = vsel %vm78_vm1, %v6988_v39, %v7152_v63  ;;  %v3434_v23 = vsel %vm78_vm1, %v7152_v63, %v6988_v39  ;;  %4443 = vmatmul.mubr.f32.vlgmr.msra.gmra.mrb[44].mxu1 %v7152_v63 }
 0xedb   :  { %3439 = vst [vmem:[#allocation10 + $0x10] sm:$0xff] %v3431_v5  ;;  %3442 = vst [vmem:[#allocation10 + $0x28] sm:$0xff] %v3434_v23  ;;  %5451 = vmatpush1.bf16.msra.mxu0 %v6575_v45  ;;  %5482 = vmatpush3.bf16.msra.mxu1 %v6584_v21 }
 0xedc   :  { %5453 = vmatprep.subr.bf16.mxu0 %v6582_v62  ;;  %5483 = vmatprep.subr.bf16.mxu1 %v7303_v0  ;;  %v7346_v62 = vld [vmem:[#allocation18_spill] sm:$0xff] }
 0xedd   :  { %3328 = vmatprep.mubr.f32.mxu0 %v7304_v33  ;;  %4477 = vmatprep.mubr.msk.f32.mxu1 %vm5834_vm0, %v7304_v33 }
 0xedf   :  { %5455 = vmatpush1.bf16.msra.mxu0 %v6595_v42  ;;  %5485 = vmatpush3.bf16.msra.mxu1 %v6602_v3  ;;  %v7347_v3 = vsel %vm6104_vm2, %v6840_v2, %v6747_v15 }
 0xee0   :  { %5457 = vmatprep.subr.bf16.mxu0 %v6599_v51  ;;  %5486 = vmatprep.subr.bf16.mxu1 %v7303_v0 }
 0xee3   :  { %5459 = vmatpush1.bf16.msra.mxu0 %v6614_v34  ;;  %5488 = vmatpush3.bf16.msra.mxu1 %v6621_v55 }
 0xee4   :  { %5461 = vmatprep.subr.bf16.mxu0 %v6618_v44  ;;  %5489 = vmatprep.subr.bf16.mxu1 %v7303_v0 }
 0xee7   :  { %5463 = vmatpush1.bf16.msra.mxu0 %v6633_v4  ;;  %5491 = vmatpush3.bf16.msra.mxu1 %v6640_v17 }
 0xee8   :  { %5465 = vmatprep.subr.bf16.mxu0 %v6636_v7  ;;  %5492 = vmatprep.subr.bf16.mxu1 %v7303_v0 }
 0xeeb   :  { %5467 = vmatpush1.bf16.msra.mxu0 %v6648_v24  ;;  %5494 = vmatpush3.bf16.msra.mxu1 %v6655_v13 }
 0xeec   :  { %5469 = vmatprep.subr.bf16.mxu0 %v6652_v46  ;;  %5495 = vmatprep.subr.bf16.mxu1 %v7303_v0 }
 0xeef   :  { %5471 = vmatpush1.bf16.msra.mxu0 %v6662_v31  ;;  %5497 = vmatpush3.bf16.msra.mxu1 %v6668_v49  ;;  %v7348_v31 = vsel %vm6108_vm3, %v6783_v14, %v6740_v16  ;;  %v7349_v14 = vld [vmem:[#allocation25_spill] sm:$0xff] }
 0xef0   :  { %5473 = vmatprep.subr.bf16.mxu0 %v6665_v11  ;;  %5498 = vmatprep.subr.bf16.mxu1 %v7303_v0 }
 0xef3   :  { %5475 = vmatpush1.bf16.msra.mxu0 %v6673_v12  ;;  %5500 = vmatpush3.bf16.msra.mxu1 %v6679_v22 }
 0xef4   :  { %5477 = vmatprep.subr.bf16.mxu0 %v6676_v37  ;;  %5501 = vmatprep.subr.bf16.mxu1 %v7303_v0 }
 0xef7   :  { %5479 = vmatpush1.bf16.msra.mxu0 %v6684_v40  ;;  %5503 = vmatpush3.bf16.msra.mxu1 %v6688_v47 }
 0xfad   :  { %v3167_v33 = vpop.f32.mrb[60].mxu0  ;;  %v3238_v45 = vpop.f32.mrb[44].mxu1 }
 0xfae   :  { %v3242_v21 = vadd.f32 %v3167_v33, %v7346_v62  ;;  %v3169_v42 = vpop.f32.mrb[61].mxu0  ;;  %v4444_v51 = vpop.f32.mrb[45].mxu1  ;;  %v3256_v24 = vadd.f32 %v3238_v45, %v6880_v35 }
 0xfaf   :  { %v3249_v34 = vadd.f32 %v3169_v42, %v7347_v3 }
 0xfb0   :  { %v3508_v44 = vmul.f32 -1.442695, %v3242_v21 }
 0xfb1   :  { %v3509_v55 = vmul.f32 -1.442695, %v3249_v34 }
 0xfb2   :  { %5659 = vpow2.f32 %v3508_v44 }
 0xfb3   :  { %5661 = vpow2.f32 %v3509_v55 }
 0xfbc   :  { %v5660_v0 = vpop.eup %5659 }
 0xfbd   :  { %v3246_v4 = vadd.f32 1.0, %v5660_v0  ;;  %v5662_v7 = vpop.eup %5661 }
 0xfbe   :  { %v3253_v17 = vadd.f32 1.0, %v5662_v7 }
 0xfbf   :  { %5663 = vrcp.f32 %v3246_v4 }
 0xfc0   :  { %5665 = vrcp.f32 %v3253_v17 }
 0xfc9   :  { %v5664_v46 = vpop.eup %5663 }
 0xfca   :  { %v3257_v13 = vmul.f32 %v5664_v46, %v3256_v24  ;;  %v5666_v49 = vpop.eup %5665 }
 0xfcb   :  { %v3260_v12 = vsub.f32 1.0, %v5666_v49  ;;  %v3262_v40 = vmul.f32 %v5666_v49, %v7152_v63 }
 0xfcc   :  { %v3258_v11 = vadd.f32 %v3257_v13, %v7348_v31 }
 0xfce   :  { %5667 = vtanh.f32 %v3258_v11 }
 0xfd8   :  { %v5668_v37 = vpop.eup %5667 }
 0xfd9   :  { %v3261_v22 = vmul.f32 %v5668_v37, %v3260_v12 }
 0xfdb   :  { %v3263_v47 = vadd.f32 %v3262_v40, %v3261_v22 }
 0xfdd   :  { %3329 = vmatmul.mubr.f32.vlgmr.msra.gmra.mrb[62].mxu0 %v3263_v47  ;;  %v3430_v15 = vsel %vm78_vm1, %v6936_v57, %v3263_v47  ;;  %v3435_v60 = vsel %vm78_vm1, %v3263_v47, %v6936_v57  ;;  %4478 = vmatmul.mubr.f32.vlgmr.msra.gmra.mrb[46].mxu1 %v3263_v47 }
 0xfde   :  { %3438 = vst [vmem:[#allocation10 + $0x8] sm:$0xff] %v3430_v15  ;;  %3443 = vst [vmem:[#allocation10 + $0x30] sm:$0xff] %v3435_v60 }
0x10b0   :  { %v3330_v16 = vpop.f32.mrb[62].mxu0  ;;  %v3401_v2 = vpop.f32.mrb[46].mxu1 }
0x10b1   :  { %v3405_v39 = vadd.f32 %v3330_v16, %v7349_v14  ;;  %v3332_v25 = vpop.f32.mrb[63].mxu0  ;;  %v4479_v29 = vpop.f32.mrb[47].mxu1  ;;  %v3419_v10 = vadd.f32 %v3401_v2, %v6880_v35 }
0x10b2   :  { %v3412_v53 = vadd.f32 %v3332_v25, %v2119_v50 }
0x10b3   :  { %v3510_v1 = vmul.f32 -1.442695, %v3405_v39 }
0x10b4   :  { %v3511_v32 = vmul.f32 -1.442695, %v3412_v53 }
0x10b5   :  { %5669 = vpow2.f32 %v3510_v1 }
0x10b6   :  { %5671 = vpow2.f32 %v3511_v32 }
0x10bf   :  { %v5670_v57 = vpop.eup %5669 }
0x10c0   :  { %v3409_v58 = vadd.f32 1.0, %v5670_v57  ;;  %v5672_v61 = vpop.eup %5671 }
0x10c1   :  { %v3416_v48 = vadd.f32 1.0, %v5672_v61 }
0x10c2   :  { %5673 = vrcp.f32 %v3409_v58 }
0x10c3   :  { %5675 = vrcp.f32 %v3416_v48 }
0x10cc   :  { %v5674_v30 = vpop.eup %5673 }
0x10cd   :  { %v3420_v56 = vmul.f32 %v5674_v30, %v3419_v10  ;;  %v5676_v50 = vpop.eup %5675 }
0x10ce   :  { %v3423_v19 = vsub.f32 1.0, %v5676_v50  ;;  %v3425_v28 = vmul.f32 %v5676_v50, %v3263_v47 }
0x10cf   :  { %v3421_v8 = vadd.f32 %v3420_v56, %v7352_v26 }
0x10d1   :  { %5677 = vtanh.f32 %v3421_v8 }
0x10db   :  { %v5678_v18 = vpop.eup %5677 }
0x10dc   :  { %v3424_v36 = vmul.f32 %v5678_v18, %v3423_v19 }
0x10de   :  { %v3426_v35 = vadd.f32 %v3425_v28, %v3424_v36 }
0x10e0   :  { %v3429_v43 = vsel %vm78_vm1, %v6884_v6, %v3426_v35  ;;  %v3436_v20 = vsel %vm78_vm1, %v3426_v35, %v6884_v6  ;;  %3428 = vst [vmem:[#allocation11 + $0x8] sm:$0xff] %v3426_v35 }
0x10e1   :  { %3437 = vst [vmem:[#allocation10] sm:$0xff] %v3429_v43  ;;  %3444 = vst [vmem:[#allocation10 + $0x38] sm:$0xff] %v3436_v20 }
0x10e2   :  { %5779 = shalt.err (!%p5776_p8)
}
0x10e3   :  { %s5780_s27 = scalar_lea.hbm %s7276_s5, 256 }
0x10e4   :  { %p5781_p9 = scmp.ne.s32.totalorder %s7276_s5, %s5780_s27  ;;  %p5784_p10 = scmp.lt.u32.totalorder %s5780_s27, %s7276_s5 }
0x10e6   :  { %p5786_p11 = pnand %p5784_p10, %p5781_p9 }
0x10e8   :  { %5789 = shalt.err (!%p5786_p11)
}
0x10e9   :  { %3468 = dma.vmem_to_hbm [thread:$0]  %s3463_s20, 256, %s7276_s5, [#allocation12], %s5824_s30, %s5824_s30, %s5825_s6  }
0x10ea   :  { %s5790_s9 = scalar_lea.vmem %s7228_s23, 1024  ;;  %p5795_p13 = scmp.lt.s32.totalorder %s7228_s23, %s7228_s23 }
0x10eb   :  { %p5791_p12 = scmp.ne.s32.totalorder %s7228_s23, %s5790_s9  ;;  %p5796_p0 = scmp.lt.s32.totalorder %s5790_s9, %s5790_s9 }
0x10ed   :  { %p5797_p1 = por %p5796_p0, %p5795_p13 }
0x10ef   :  { %p5798_p2 = pnand %p5797_p1, %p5791_p12 }
0x10f1   :  { %5801 = shalt.err (!%p5798_p2)
}
0x10f2   :  { %s5802_s12 = scalar_lea.hbm %s7275_s4, 1024 }
0x10f3   :  { %p5803_p3 = scmp.ne.s32.totalorder %s7275_s4, %s5802_s12  ;;  %p5806_p4 = scmp.lt.u32.totalorder %s5802_s12, %s7275_s4 }
0x10f5   :  { %p5808_p5 = pnand %p5806_p4, %p5803_p3 }
0x10f7   :  { %5811 = shalt.err (!%p5808_p5)
}
0x10f8   :  { %3456 = dma.vmem_to_hbm [thread:$0]  %s7228_s23, 1024, %s7275_s4, [#allocation4], %s5824_s30, %s5824_s30, %s5825_s6  }
0x10f9   :  { %5818 = dma.done.wait [#allocation4], 1024  }
0x10fa   :  { %5819 = vsyncadd [#allocation4], 4294966272 }
0x10fb   :  { %5820 = dma.done.wait [#allocation12], 256  }
0x10fc   :  { %5821 = vsyncadd [#allocation12], 4294967040 }
0x10fd   :  { %3475 = vsyncpa [#allocation3], 1 }
0x10fe   :  { %3476 = vsyncpa [#allocation6], 1 }
0x10ff   :  { %3477 = vsyncpa [#allocation9], 1 }
0x1100   :  { %3478 = vsyncpa [#allocation4], 1 }
0x1101   :  { %3479 = vsyncpa [#allocation12], 1 }

</bundles_post_ra>
